<compile_context>
chip_gen: v6e
topology: v6e:2x2x1
jax: 0.10.0
libtpu: 0.0.40
codegen_flags: <defaults>
</compile_context>

<pallas_src>
import jax
import jax.numpy as jnp
from jax.experimental import pallas as pl
from jax.experimental.pallas import tpu as pltpu


def bigru_head_kernel(ids_ref,                 # (T,) int32 in SMEM (scalar prefetch)
                      emb_ref,                 # (V, D)   f32
                      w_ih_ref, b_ih_ref,      # (D, 6H)  bf16, (1, 6H) f32  gate-major
                      w_hh_ref, b_hh_ref,      # (2H, 6H) bf16, (1, 6H) f32  gate-major blockdiag
                      w_out_ref, b_out_ref,    # (2H, O)  f32,  (1, O)  f32
                      pred_ref,                # (1, O)   f32
                      x_ref):                  # scratch: (T, D) f32
    T = x_ref.shape[0]
    H = w_hh_ref.shape[0] // 2

    # --- Embedding gather (T is small & static -> fully unrolled) -----------
    for t in range(T):
        x_ref[pl.ds(t, 1), :] = emb_ref[pl.ds(ids_ref[t], 1), :]

    # --- Merged input projection, both directions, one MXU matmul -----------
    # Column layout of xp (gate-major, direction-minor):
    #   [ r_f | r_b | z_f | z_b | n_f | n_b ]   each block H wide
    x = x_ref[...].astype(jnp.bfloat16)
    xp = (jnp.dot(x, w_ih_ref[...], preferred_element_type=jnp.float32)
          + b_ih_ref[...])                                   # (T, 6H) value in vregs

    b_hh = b_hh_ref[...]                                     # hoisted (1, 6H)

    # --- Fused fwd/bwd recurrence: one block-diagonal matmul per step -------
    # h = [h_f | h_b] (1, 2H).  Forward consumes time t, backward time T-1-t;
    # after T steps h == concat(h_n forward, h_n backward) as in PyTorch.
    h = jnp.zeros((1, 2 * H), jnp.float32)
    for t in range(T):                                       # static unroll
        rt = T - 1 - t
        xf = xp[t:t + 1, :]                                  # (1, 6H) row for fwd
        xb = xp[rt:rt + 1, :]                                # (1, 6H) row for bwd
        # Per-step gate-major xp: fwd columns from row t, bwd from row T-1-t.
        # All slices are 128-lane aligned -> pure vreg selection.
        xp_step = jnp.concatenate(
            [xf[:, 0:H],         xb[:, H:2 * H],
             xf[:, 2 * H:3 * H], xb[:, 3 * H:4 * H],
             xf[:, 4 * H:5 * H], xb[:, 5 * H:6 * H]], axis=1)      # (1, 6H)

        hh = (jnp.dot(h.astype(jnp.bfloat16), w_hh_ref[...],
                      preferred_element_type=jnp.float32)
              + b_hh)                                        # (1, 6H) gate-major

        r = jax.nn.sigmoid(xp_step[:, 0:2 * H] + hh[:, 0:2 * H])
        z = jax.nn.sigmoid(xp_step[:, 2 * H:4 * H] + hh[:, 2 * H:4 * H])
        n = jnp.tanh(xp_step[:, 4 * H:6 * H] + r * hh[:, 4 * H:6 * H])
        h = (1.0 - z) * n + z * h                            # (1, 2H) = [h_f | h_b]

    # --- relu -> linear head (h already is the concat) -----------------------
    act = jnp.maximum(h, 0.0)
    pred_ref[...] = (jnp.dot(act, w_out_ref[...],
                             preferred_element_type=jnp.float32)
                     + b_out_ref[...])                       # (1, out_dim)


def init_params(key, vocab_size, hidden_dim=128, gru_hidden=128, out_dim=2):
    ks = jax.random.split(key, 12)
    H = gru_hidden
    k_gru = 1.0 / jnp.sqrt(H)
    k_lin = 1.0 / jnp.sqrt(2 * H)

    def unif(k, shape, bound):
        return jax.random.uniform(k, shape, jnp.float32, -bound, bound)

    return {
        # nn.Embedding default init: N(0, 1)
        "embedding": jax.random.normal(ks[0], (vocab_size, hidden_dim),
                                       jnp.float32),
        # GRU forward direction (PyTorch layout: (3H, in) / (3H, H), gates r,z,n)
        "w_ih_f": unif(ks[1], (3 * H, hidden_dim), k_gru),
        "w_hh_f": unif(ks[2], (3 * H, H), k_gru),
        "b_ih_f": unif(ks[3], (3 * H,), k_gru),
        "b_hh_f": unif(ks[4], (3 * H,), k_gru),
        # GRU backward direction
        "w_ih_b": unif(ks[5], (3 * H, hidden_dim), k_gru),
        "w_hh_b": unif(ks[6], (3 * H, H), k_gru),
        "b_ih_b": unif(ks[7], (3 * H,), k_gru),
        "b_hh_b": unif(ks[8], (3 * H,), k_gru),
        # Linear(2H, out_dim)
        "w_out": unif(ks[9], (out_dim, 2 * H), k_lin),
        "b_out": unif(ks[10], (out_dim,), k_lin),
    }


def prepare_params(params):
    """One-time layout prep (not per call):
      * gate-major merged input projection  W_ih_gm : (D, 6H)  bf16
      * gate-major block-diagonal recurrent W_hh_gm : (2H, 6H) bf16
      * matching (1, 6H) f32 biases, transposed f32 output head."""
    H = params["w_hh_f"].shape[1]

    def gm_cols(mf_t, mb_t):                     # (*, 3H) cols [r|z|n] each
        parts = []
        for g in range(3):
            parts.append(mf_t[:, g * H:(g + 1) * H])
            parts.append(mb_t[:, g * H:(g + 1) * H])
        return jnp.concatenate(parts, axis=1)    # (*, 6H) gate-major

    def gm_bias(bf, bb):
        parts = []
        for g in range(3):
            parts.append(bf[g * H:(g + 1) * H])
            parts.append(bb[g * H:(g + 1) * H])
        return jnp.concatenate(parts).reshape(1, -1)

    w_ih_gm = gm_cols(params["w_ih_f"].T,
                      params["w_ih_b"].T).astype(jnp.bfloat16)       # (D, 6H)
    b_ih_gm = gm_bias(params["b_ih_f"],
                      params["b_ih_b"]).astype(jnp.float32)          # (1, 6H)

    whh_f_t = params["w_hh_f"].T                                     # (H, 3H)
    whh_b_t = params["w_hh_b"].T                                     # (H, 3H)
    zeros = jnp.zeros((H, H), jnp.float32)
    blocks = []
    for g in range(3):
        # forward gate-g block: top = W_hh_f gate g, bottom = 0
        blocks.append(jnp.concatenate(
            [whh_f_t[:, g * H:(g + 1) * H], zeros], axis=0))         # (2H, H)
        # backward gate-g block: top = 0, bottom = W_hh_b gate g
        blocks.append(jnp.concatenate(
            [zeros, whh_b_t[:, g * H:(g + 1) * H]], axis=0))         # (2H, H)
    w_hh_gm = jnp.concatenate(blocks, axis=1).astype(jnp.bfloat16)   # (2H, 6H)
    b_hh_gm = gm_bias(params["b_hh_f"],
                      params["b_hh_b"]).astype(jnp.float32)          # (1, 6H)

    return {
        "embedding": params["embedding"].astype(jnp.float32),        # (V, D)
        "w_ih_gm": w_ih_gm, "b_ih_gm": b_ih_gm,
        "w_hh_gm": w_hh_gm, "b_hh_gm": b_hh_gm,
        "w_out": params["w_out"].T.astype(jnp.float32),              # (2H, O)
        "b_out": params["b_out"].reshape(1, -1).astype(jnp.float32), # (1, O)
    }


@jax.jit
def bigru_forward(input_seq, prepped):
    V, D = prepped["embedding"].shape
    T = input_seq.shape[0]
    out_dim = prepped["w_out"].shape[1]

    # Clamp token ids: VMEM refs have no runtime bounds check.
    ids = jnp.clip(input_seq.astype(jnp.int32), 0, V - 1)

    vmem_spec = pl.BlockSpec(memory_space=pltpu.MemorySpace.VMEM)
    tensor_args = (
        prepped["embedding"],
        prepped["w_ih_gm"], prepped["b_ih_gm"],
        prepped["w_hh_gm"], prepped["b_hh_gm"],
        prepped["w_out"], prepped["b_out"],
    )

    grid_spec = pltpu.PrefetchScalarGridSpec(
        num_scalar_prefetch=1,                 # token ids -> SMEM
        grid=(1,),
        in_specs=[vmem_spec] * len(tensor_args),
        out_specs=vmem_spec,
        scratch_shapes=[
            pltpu.VMEM((T, D), jnp.float32),   # gathered embeddings
        ],
    )

    pred = pl.pallas_call(
        bigru_head_kernel,
        out_shape=jax.ShapeDtypeStruct((1, out_dim), jnp.float32),
        grid_spec=grid_spec,
        compiler_params=pltpu.CompilerParams(
            dimension_semantics=("arbitrary",),
            vmem_limit_bytes=32 * 1024 * 1024),
    )(ids, *tensor_args)

    prediction = pred.reshape(-1)              # squeeze -> (out_dim,)
    idx = jnp.argmax(prediction)               # stays on device (no host sync)
    return prediction, idx


if __name__ == "__main__":
    vocab_size = 50
    hidden_dim = 128
    out_dim = 2
    seq_len = 8

    key = jax.random.PRNGKey(0)
    k_params, k_seq = jax.random.split(key)
    params = init_params(k_params, vocab_size, hidden_dim=hidden_dim,
                         gru_hidden=128, out_dim=out_dim)
    prepped = prepare_params(params)

    input_seq = jax.random.randint(k_seq, (seq_len,), 0, vocab_size,
                                   dtype=jnp.int32)

    prediction, idx = bigru_forward(input_seq, prepped)
    jax.block_until_ready((prediction, idx))

    assert prediction.shape == (out_dim,)
    idx_host = int(idx)                        # single host read, outside jit
    assert 0 <= idx_host < out_dim
    print("KERNEL_OK")
</pallas_src>

<mosaic_0001>
module attributes {stable_mosaic.version = 11 : i64} {
  func.func @bigru_head_kernel(%arg0: i32, %arg1: memref<8xi32, #tpu.memory_space<smem>>, %arg2: memref<50x128xf32, #tpu.memory_space<vmem>>, %arg3: memref<128x768xbf16, #tpu.memory_space<vmem>>, %arg4: memref<1x768xf32, #tpu.memory_space<vmem>>, %arg5: memref<256x768xbf16, #tpu.memory_space<vmem>>, %arg6: memref<1x768xf32, #tpu.memory_space<vmem>>, %arg7: memref<256x2xf32, #tpu.memory_space<vmem>>, %arg8: memref<1x2xf32, #tpu.memory_space<vmem>>, %arg9: memref<1x2xf32, #tpu.memory_space<vmem>>, %arg10: memref<8x128xf32, #tpu.memory_space<vmem>>) attributes {dimension_semantics = [#tpu.dimension_semantics<arbitrary>], iteration_bounds = array<i64: 1>, scalar_prefetch = 1 : i64, scratch_operands = 1 : i64, tpu.core_type = #tpu.core_type<tc>, window_params = [{pipeline_mode = #tpu.pipeline_mode<synchronous>, transform_indices = @transform_0, window_bounds = array<i64: 50, 128>}, {pipeline_mode = #tpu.pipeline_mode<synchronous>, transform_indices = @transform_1, window_bounds = array<i64: 128, 768>}, {pipeline_mode = #tpu.pipeline_mode<synchronous>, transform_indices = @transform_2, window_bounds = array<i64: 1, 768>}, {pipeline_mode = #tpu.pipeline_mode<synchronous>, transform_indices = @transform_3, window_bounds = array<i64: 256, 768>}, {pipeline_mode = #tpu.pipeline_mode<synchronous>, transform_indices = @transform_4, window_bounds = array<i64: 1, 768>}, {pipeline_mode = #tpu.pipeline_mode<synchronous>, transform_indices = @transform_5, window_bounds = array<i64: 256, 2>}, {pipeline_mode = #tpu.pipeline_mode<synchronous>, transform_indices = @transform_6, window_bounds = array<i64: 1, 2>}, {pipeline_mode = #tpu.pipeline_mode<synchronous>, transform_indices = @transform_7, window_bounds = array<i64: 1, 2>}]} {
    %c0 = arith.constant 0 : index
    %0 = memref.load %arg1[%c0] : memref<8xi32, #tpu.memory_space<smem>>
    %1 = arith.index_cast %0 : i32 to index
    %c0_0 = arith.constant 0 : index
    %2 = vector.load %arg2[%1, %c0_0] : memref<50x128xf32, #tpu.memory_space<vmem>>, vector<1x128xf32>
    %c0_1 = arith.constant 0 : index
    %c0_2 = arith.constant 0 : index
    %3 = vector.load %arg10[%c0_1, %c0_2] : memref<8x128xf32, #tpu.memory_space<vmem>>, vector<1x128xf32>
    tpu.vector_store %arg10[%c0_1, %c0_2], %2 {strides = array<i32>} : memref<8x128xf32, #tpu.memory_space<vmem>>, vector<1x128xf32>,
    %c1 = arith.constant 1 : index
    %4 = memref.load %arg1[%c1] : memref<8xi32, #tpu.memory_space<smem>>
    %5 = arith.index_cast %4 : i32 to index
    %c0_3 = arith.constant 0 : index
    %6 = vector.load %arg2[%5, %c0_3] : memref<50x128xf32, #tpu.memory_space<vmem>>, vector<1x128xf32>
    %c1_4 = arith.constant 1 : index
    %c0_5 = arith.constant 0 : index
    %7 = vector.load %arg10[%c1_4, %c0_5] : memref<8x128xf32, #tpu.memory_space<vmem>>, vector<1x128xf32>
    tpu.vector_store %arg10[%c1_4, %c0_5], %6 {strides = array<i32>} : memref<8x128xf32, #tpu.memory_space<vmem>>, vector<1x128xf32>,
    %c2 = arith.constant 2 : index
    %8 = memref.load %arg1[%c2] : memref<8xi32, #tpu.memory_space<smem>>
    %9 = arith.index_cast %8 : i32 to index
    %c0_6 = arith.constant 0 : index
    %10 = vector.load %arg2[%9, %c0_6] : memref<50x128xf32, #tpu.memory_space<vmem>>, vector<1x128xf32>
    %c2_7 = arith.constant 2 : index
    %c0_8 = arith.constant 0 : index
    %11 = vector.load %arg10[%c2_7, %c0_8] : memref<8x128xf32, #tpu.memory_space<vmem>>, vector<1x128xf32>
    tpu.vector_store %arg10[%c2_7, %c0_8], %10 {strides = array<i32>} : memref<8x128xf32, #tpu.memory_space<vmem>>, vector<1x128xf32>,
    %c3 = arith.constant 3 : index
    %12 = memref.load %arg1[%c3] : memref<8xi32, #tpu.memory_space<smem>>
    %13 = arith.index_cast %12 : i32 to index
    %c0_9 = arith.constant 0 : index
    %14 = vector.load %arg2[%13, %c0_9] : memref<50x128xf32, #tpu.memory_space<vmem>>, vector<1x128xf32>
    %c3_10 = arith.constant 3 : index
    %c0_11 = arith.constant 0 : index
    %15 = vector.load %arg10[%c3_10, %c0_11] : memref<8x128xf32, #tpu.memory_space<vmem>>, vector<1x128xf32>
    tpu.vector_store %arg10[%c3_10, %c0_11], %14 {strides = array<i32>} : memref<8x128xf32, #tpu.memory_space<vmem>>, vector<1x128xf32>,
    %c4 = arith.constant 4 : index
    %16 = memref.load %arg1[%c4] : memref<8xi32, #tpu.memory_space<smem>>
    %17 = arith.index_cast %16 : i32 to index
    %c0_12 = arith.constant 0 : index
    %18 = vector.load %arg2[%17, %c0_12] : memref<50x128xf32, #tpu.memory_space<vmem>>, vector<1x128xf32>
    %c4_13 = arith.constant 4 : index
    %c0_14 = arith.constant 0 : index
    %19 = vector.load %arg10[%c4_13, %c0_14] : memref<8x128xf32, #tpu.memory_space<vmem>>, vector<1x128xf32>
    tpu.vector_store %arg10[%c4_13, %c0_14], %18 {strides = array<i32>} : memref<8x128xf32, #tpu.memory_space<vmem>>, vector<1x128xf32>,
    %c5 = arith.constant 5 : index
    %20 = memref.load %arg1[%c5] : memref<8xi32, #tpu.memory_space<smem>>
    %21 = arith.index_cast %20 : i32 to index
    %c0_15 = arith.constant 0 : index
    %22 = vector.load %arg2[%21, %c0_15] : memref<50x128xf32, #tpu.memory_space<vmem>>, vector<1x128xf32>
    %c5_16 = arith.constant 5 : index
    %c0_17 = arith.constant 0 : index
    %23 = vector.load %arg10[%c5_16, %c0_17] : memref<8x128xf32, #tpu.memory_space<vmem>>, vector<1x128xf32>
    tpu.vector_store %arg10[%c5_16, %c0_17], %22 {strides = array<i32>} : memref<8x128xf32, #tpu.memory_space<vmem>>, vector<1x128xf32>,
    %c6 = arith.constant 6 : index
    %24 = memref.load %arg1[%c6] : memref<8xi32, #tpu.memory_space<smem>>
    %25 = arith.index_cast %24 : i32 to index
    %c0_18 = arith.constant 0 : index
    %26 = vector.load %arg2[%25, %c0_18] : memref<50x128xf32, #tpu.memory_space<vmem>>, vector<1x128xf32>
    %c6_19 = arith.constant 6 : index
    %c0_20 = arith.constant 0 : index
    %27 = vector.load %arg10[%c6_19, %c0_20] : memref<8x128xf32, #tpu.memory_space<vmem>>, vector<1x128xf32>
    tpu.vector_store %arg10[%c6_19, %c0_20], %26 {strides = array<i32>} : memref<8x128xf32, #tpu.memory_space<vmem>>, vector<1x128xf32>,
    %c7 = arith.constant 7 : index
    %28 = memref.load %arg1[%c7] : memref<8xi32, #tpu.memory_space<smem>>
    %29 = arith.index_cast %28 : i32 to index
    %c0_21 = arith.constant 0 : index
    %30 = vector.load %arg2[%29, %c0_21] : memref<50x128xf32, #tpu.memory_space<vmem>>, vector<1x128xf32>
    %c7_22 = arith.constant 7 : index
    %c0_23 = arith.constant 0 : index
    %31 = vector.load %arg10[%c7_22, %c0_23] : memref<8x128xf32, #tpu.memory_space<vmem>>, vector<1x128xf32>
    tpu.vector_store %arg10[%c7_22, %c0_23], %30 {strides = array<i32>} : memref<8x128xf32, #tpu.memory_space<vmem>>, vector<1x128xf32>,
    %c0_24 = arith.constant 0 : index
    %c0_25 = arith.constant 0 : index
    %32 = vector.load %arg10[%c0_24, %c0_25] : memref<8x128xf32, #tpu.memory_space<vmem>>, vector<8x128xf32>
    %33 = arith.truncf %32 : vector<8x128xf32> to vector<8x128xbf16>
    %c0_26 = arith.constant 0 : index
    %c0_27 = arith.constant 0 : index
    %34 = vector.load %arg3[%c0_26, %c0_27] : memref<128x768xbf16, #tpu.memory_space<vmem>>, vector<128x768xbf16>
    %cst = arith.constant dense<0.000000e+00> : vector<8x768xf32>
    %35 = tpu.matmul %33, %34, %cst {dimension_numbers = #tpu.dot_dimension_numbers<[1], [0], [0], [1], [0, 0, 1, 1], [], []>} : vector<8x128xbf16>, vector<128x768xbf16>, vector<8x768xf32> -> vector<8x768xf32>
    %c0_28 = arith.constant 0 : index
    %c0_29 = arith.constant 0 : index
    %36 = vector.load %arg4[%c0_28, %c0_29] : memref<1x768xf32, #tpu.memory_space<vmem>>, vector<1x768xf32>
    %37 = vector.broadcast %36 : vector<1x768xf32> to vector<8x768xf32>
    %38 = arith.addf %35, %37 : vector<8x768xf32>
    %c0_30 = arith.constant 0 : index
    %c0_31 = arith.constant 0 : index
    %39 = vector.load %arg6[%c0_30, %c0_31] : memref<1x768xf32, #tpu.memory_space<vmem>>, vector<1x768xf32>
    %cst_32 = arith.constant 0.000000e+00 : f32
    %40 = vector.broadcast %cst_32 : f32 to vector<1x256xf32>
    %41 = vector.extract_strided_slice %38 {offsets = [0, 0], sizes = [1, 768], strides = [1, 1]} : vector<8x768xf32> to vector<1x768xf32>
    %42 = vector.extract_strided_slice %38 {offsets = [7, 0], sizes = [1, 768], strides = [1, 1]} : vector<8x768xf32> to vector<1x768xf32>
    %43 = vector.extract_strided_slice %41 {offsets = [0, 0], sizes = [1, 128], strides = [1, 1]} : vector<1x768xf32> to vector<1x128xf32>
    %44 = vector.extract_strided_slice %42 {offsets = [0, 128], sizes = [1, 128], strides = [1, 1]} : vector<1x768xf32> to vector<1x128xf32>
    %45 = vector.extract_strided_slice %41 {offsets = [0, 256], sizes = [1, 128], strides = [1, 1]} : vector<1x768xf32> to vector<1x128xf32>
    %46 = vector.extract_strided_slice %42 {offsets = [0, 384], sizes = [1, 128], strides = [1, 1]} : vector<1x768xf32> to vector<1x128xf32>
    %47 = vector.extract_strided_slice %41 {offsets = [0, 512], sizes = [1, 128], strides = [1, 1]} : vector<1x768xf32> to vector<1x128xf32>
    %48 = vector.extract_strided_slice %42 {offsets = [0, 640], sizes = [1, 128], strides = [1, 1]} : vector<1x768xf32> to vector<1x128xf32>
    %49 = tpu.concatenate %43, %44, %45, %46, %47, %48 in 1 : vector<1x128xf32>, vector<1x128xf32>, vector<1x128xf32>, vector<1x128xf32>, vector<1x128xf32>, vector<1x128xf32> -> vector<1x768xf32>
    %50 = arith.truncf %40 : vector<1x256xf32> to vector<1x256xbf16>
    %c0_33 = arith.constant 0 : index
    %c0_34 = arith.constant 0 : index
    %51 = vector.load %arg5[%c0_33, %c0_34] : memref<256x768xbf16, #tpu.memory_space<vmem>>, vector<256x768xbf16>
    %cst_35 = arith.constant dense<0.000000e+00> : vector<1x768xf32>
    %52 = tpu.matmul %50, %51, %cst_35 {dimension_numbers = #tpu.dot_dimension_numbers<[1], [0], [0], [1], [0, 0, 1, 1], [], []>} : vector<1x256xbf16>, vector<256x768xbf16>, vector<1x768xf32> -> vector<1x768xf32>
    %53 = arith.addf %52, %39 : vector<1x768xf32>
    %54 = vector.extract_strided_slice %49 {offsets = [0, 0], sizes = [1, 256], strides = [1, 1]} : vector<1x768xf32> to vector<1x256xf32>
    %55 = vector.extract_strided_slice %53 {offsets = [0, 0], sizes = [1, 256], strides = [1, 1]} : vector<1x768xf32> to vector<1x256xf32>
    %56 = arith.addf %54, %55 : vector<1x256xf32>
    %57 = arith.negf %56 : vector<1x256xf32>
    %58 = math.exp %57 : vector<1x256xf32>
    %cst_36 = arith.constant 1.000000e+00 : f32
    %59 = vector.broadcast %cst_36 : f32 to vector<1x256xf32>
    %60 = arith.addf %59, %58 : vector<1x256xf32>
    %61 = arith.divf %59, %60 : vector<1x256xf32>
    %62 = vector.extract_strided_slice %49 {offsets = [0, 256], sizes = [1, 256], strides = [1, 1]} : vector<1x768xf32> to vector<1x256xf32>
    %63 = vector.extract_strided_slice %53 {offsets = [0, 256], sizes = [1, 256], strides = [1, 1]} : vector<1x768xf32> to vector<1x256xf32>
    %64 = arith.addf %62, %63 : vector<1x256xf32>
    %65 = arith.negf %64 : vector<1x256xf32>
    %66 = math.exp %65 : vector<1x256xf32>
    %cst_37 = arith.constant 1.000000e+00 : f32
    %67 = vector.broadcast %cst_37 : f32 to vector<1x256xf32>
    %68 = arith.addf %67, %66 : vector<1x256xf32>
    %69 = arith.divf %67, %68 : vector<1x256xf32>
    %70 = vector.extract_strided_slice %49 {offsets = [0, 512], sizes = [1, 256], strides = [1, 1]} : vector<1x768xf32> to vector<1x256xf32>
    %71 = vector.extract_strided_slice %53 {offsets = [0, 512], sizes = [1, 256], strides = [1, 1]} : vector<1x768xf32> to vector<1x256xf32>
    %72 = arith.mulf %61, %71 : vector<1x256xf32>
    %73 = arith.addf %70, %72 : vector<1x256xf32>
    %74 = math.tanh %73 : vector<1x256xf32>
    %cst_38 = arith.constant 1.000000e+00 : f32
    %75 = vector.broadcast %cst_38 : f32 to vector<1x256xf32>
    %76 = arith.subf %75, %69 : vector<1x256xf32>
    %77 = arith.mulf %76, %74 : vector<1x256xf32>
    %78 = arith.mulf %69, %40 : vector<1x256xf32>
    %79 = arith.addf %77, %78 : vector<1x256xf32>
    %80 = vector.extract_strided_slice %38 {offsets = [1, 0], sizes = [1, 768], strides = [1, 1]} : vector<8x768xf32> to vector<1x768xf32>
    %81 = vector.extract_strided_slice %38 {offsets = [6, 0], sizes = [1, 768], strides = [1, 1]} : vector<8x768xf32> to vector<1x768xf32>
    %82 = vector.extract_strided_slice %80 {offsets = [0, 0], sizes = [1, 128], strides = [1, 1]} : vector<1x768xf32> to vector<1x128xf32>
    %83 = vector.extract_strided_slice %81 {offsets = [0, 128], sizes = [1, 128], strides = [1, 1]} : vector<1x768xf32> to vector<1x128xf32>
    %84 = vector.extract_strided_slice %80 {offsets = [0, 256], sizes = [1, 128], strides = [1, 1]} : vector<1x768xf32> to vector<1x128xf32>
    %85 = vector.extract_strided_slice %81 {offsets = [0, 384], sizes = [1, 128], strides = [1, 1]} : vector<1x768xf32> to vector<1x128xf32>
    %86 = vector.extract_strided_slice %80 {offsets = [0, 512], sizes = [1, 128], strides = [1, 1]} : vector<1x768xf32> to vector<1x128xf32>
    %87 = vector.extract_strided_slice %81 {offsets = [0, 640], sizes = [1, 128], strides = [1, 1]} : vector<1x768xf32> to vector<1x128xf32>
    %88 = tpu.concatenate %82, %83, %84, %85, %86, %87 in 1 : vector<1x128xf32>, vector<1x128xf32>, vector<1x128xf32>, vector<1x128xf32>, vector<1x128xf32>, vector<1x128xf32> -> vector<1x768xf32>
    %89 = arith.truncf %79 : vector<1x256xf32> to vector<1x256xbf16>
    %c0_39 = arith.constant 0 : index
    %c0_40 = arith.constant 0 : index
    %90 = vector.load %arg5[%c0_39, %c0_40] : memref<256x768xbf16, #tpu.memory_space<vmem>>, vector<256x768xbf16>
    %cst_41 = arith.constant dense<0.000000e+00> : vector<1x768xf32>
    %91 = tpu.matmul %89, %90, %cst_41 {dimension_numbers = #tpu.dot_dimension_numbers<[1], [0], [0], [1], [0, 0, 1, 1], [], []>} : vector<1x256xbf16>, vector<256x768xbf16>, vector<1x768xf32> -> vector<1x768xf32>
    %92 = arith.addf %91, %39 : vector<1x768xf32>
    %93 = vector.extract_strided_slice %88 {offsets = [0, 0], sizes = [1, 256], strides = [1, 1]} : vector<1x768xf32> to vector<1x256xf32>
    %94 = vector.extract_strided_slice %92 {offsets = [0, 0], sizes = [1, 256], strides = [1, 1]} : vector<1x768xf32> to vector<1x256xf32>
    %95 = arith.addf %93, %94 : vector<1x256xf32>
    %96 = arith.negf %95 : vector<1x256xf32>
    %97 = math.exp %96 : vector<1x256xf32>
    %cst_42 = arith.constant 1.000000e+00 : f32
    %98 = vector.broadcast %cst_42 : f32 to vector<1x256xf32>
    %99 = arith.addf %98, %97 : vector<1x256xf32>
    %100 = arith.divf %98, %99 : vector<1x256xf32>
    %101 = vector.extract_strided_slice %88 {offsets = [0, 256], sizes = [1, 256], strides = [1, 1]} : vector<1x768xf32> to vector<1x256xf32>
    %102 = vector.extract_strided_slice %92 {offsets = [0, 256], sizes = [1, 256], strides = [1, 1]} : vector<1x768xf32> to vector<1x256xf32>
    %103 = arith.addf %101, %102 : vector<1x256xf32>
    %104 = arith.negf %103 : vector<1x256xf32>
    %105 = math.exp %104 : vector<1x256xf32>
    %cst_43 = arith.constant 1.000000e+00 : f32
    %106 = vector.broadcast %cst_43 : f32 to vector<1x256xf32>
    %107 = arith.addf %106, %105 : vector<1x256xf32>
    %108 = arith.divf %106, %107 : vector<1x256xf32>
    %109 = vector.extract_strided_slice %88 {offsets = [0, 512], sizes = [1, 256], strides = [1, 1]} : vector<1x768xf32> to vector<1x256xf32>
    %110 = vector.extract_strided_slice %92 {offsets = [0, 512], sizes = [1, 256], strides = [1, 1]} : vector<1x768xf32> to vector<1x256xf32>
    %111 = arith.mulf %100, %110 : vector<1x256xf32>
    %112 = arith.addf %109, %111 : vector<1x256xf32>
    %113 = math.tanh %112 : vector<1x256xf32>
    %cst_44 = arith.constant 1.000000e+00 : f32
    %114 = vector.broadcast %cst_44 : f32 to vector<1x256xf32>
    %115 = arith.subf %114, %108 : vector<1x256xf32>
    %116 = arith.mulf %115, %113 : vector<1x256xf32>
    %117 = arith.mulf %108, %79 : vector<1x256xf32>
    %118 = arith.addf %116, %117 : vector<1x256xf32>
    %119 = vector.extract_strided_slice %38 {offsets = [2, 0], sizes = [1, 768], strides = [1, 1]} : vector<8x768xf32> to vector<1x768xf32>
    %120 = vector.extract_strided_slice %38 {offsets = [5, 0], sizes = [1, 768], strides = [1, 1]} : vector<8x768xf32> to vector<1x768xf32>
    %121 = vector.extract_strided_slice %119 {offsets = [0, 0], sizes = [1, 128], strides = [1, 1]} : vector<1x768xf32> to vector<1x128xf32>
    %122 = vector.extract_strided_slice %120 {offsets = [0, 128], sizes = [1, 128], strides = [1, 1]} : vector<1x768xf32> to vector<1x128xf32>
    %123 = vector.extract_strided_slice %119 {offsets = [0, 256], sizes = [1, 128], strides = [1, 1]} : vector<1x768xf32> to vector<1x128xf32>
    %124 = vector.extract_strided_slice %120 {offsets = [0, 384], sizes = [1, 128], strides = [1, 1]} : vector<1x768xf32> to vector<1x128xf32>
    %125 = vector.extract_strided_slice %119 {offsets = [0, 512], sizes = [1, 128], strides = [1, 1]} : vector<1x768xf32> to vector<1x128xf32>
    %126 = vector.extract_strided_slice %120 {offsets = [0, 640], sizes = [1, 128], strides = [1, 1]} : vector<1x768xf32> to vector<1x128xf32>
    %127 = tpu.concatenate %121, %122, %123, %124, %125, %126 in 1 : vector<1x128xf32>, vector<1x128xf32>, vector<1x128xf32>, vector<1x128xf32>, vector<1x128xf32>, vector<1x128xf32> -> vector<1x768xf32>
    %128 = arith.truncf %118 : vector<1x256xf32> to vector<1x256xbf16>
    %c0_45 = arith.constant 0 : index
    %c0_46 = arith.constant 0 : index
    %129 = vector.load %arg5[%c0_45, %c0_46] : memref<256x768xbf16, #tpu.memory_space<vmem>>, vector<256x768xbf16>
    %cst_47 = arith.constant dense<0.000000e+00> : vector<1x768xf32>
    %130 = tpu.matmul %128, %129, %cst_47 {dimension_numbers = #tpu.dot_dimension_numbers<[1], [0], [0], [1], [0, 0, 1, 1], [], []>} : vector<1x256xbf16>, vector<256x768xbf16>, vector<1x768xf32> -> vector<1x768xf32>
    %131 = arith.addf %130, %39 : vector<1x768xf32>
    %132 = vector.extract_strided_slice %127 {offsets = [0, 0], sizes = [1, 256], strides = [1, 1]} : vector<1x768xf32> to vector<1x256xf32>
    %133 = vector.extract_strided_slice %131 {offsets = [0, 0], sizes = [1, 256], strides = [1, 1]} : vector<1x768xf32> to vector<1x256xf32>
    %134 = arith.addf %132, %133 : vector<1x256xf32>
    %135 = arith.negf %134 : vector<1x256xf32>
    %136 = math.exp %135 : vector<1x256xf32>
    %cst_48 = arith.constant 1.000000e+00 : f32
    %137 = vector.broadcast %cst_48 : f32 to vector<1x256xf32>
    %138 = arith.addf %137, %136 : vector<1x256xf32>
    %139 = arith.divf %137, %138 : vector<1x256xf32>
    %140 = vector.extract_strided_slice %127 {offsets = [0, 256], sizes = [1, 256], strides = [1, 1]} : vector<1x768xf32> to vector<1x256xf32>
    %141 = vector.extract_strided_slice %131 {offsets = [0, 256], sizes = [1, 256], strides = [1, 1]} : vector<1x768xf32> to vector<1x256xf32>
    %142 = arith.addf %140, %141 : vector<1x256xf32>
    %143 = arith.negf %142 : vector<1x256xf32>
    %144 = math.exp %143 : vector<1x256xf32>
    %cst_49 = arith.constant 1.000000e+00 : f32
    %145 = vector.broadcast %cst_49 : f32 to vector<1x256xf32>
    %146 = arith.addf %145, %144 : vector<1x256xf32>
    %147 = arith.divf %145, %146 : vector<1x256xf32>
    %148 = vector.extract_strided_slice %127 {offsets = [0, 512], sizes = [1, 256], strides = [1, 1]} : vector<1x768xf32> to vector<1x256xf32>
    %149 = vector.extract_strided_slice %131 {offsets = [0, 512], sizes = [1, 256], strides = [1, 1]} : vector<1x768xf32> to vector<1x256xf32>
    %150 = arith.mulf %139, %149 : vector<1x256xf32>
    %151 = arith.addf %148, %150 : vector<1x256xf32>
    %152 = math.tanh %151 : vector<1x256xf32>
    %cst_50 = arith.constant 1.000000e+00 : f32
    %153 = vector.broadcast %cst_50 : f32 to vector<1x256xf32>
    %154 = arith.subf %153, %147 : vector<1x256xf32>
    %155 = arith.mulf %154, %152 : vector<1x256xf32>
    %156 = arith.mulf %147, %118 : vector<1x256xf32>
    %157 = arith.addf %155, %156 : vector<1x256xf32>
    %158 = vector.extract_strided_slice %38 {offsets = [3, 0], sizes = [1, 768], strides = [1, 1]} : vector<8x768xf32> to vector<1x768xf32>
    %159 = vector.extract_strided_slice %38 {offsets = [4, 0], sizes = [1, 768], strides = [1, 1]} : vector<8x768xf32> to vector<1x768xf32>
    %160 = vector.extract_strided_slice %158 {offsets = [0, 0], sizes = [1, 128], strides = [1, 1]} : vector<1x768xf32> to vector<1x128xf32>
    %161 = vector.extract_strided_slice %159 {offsets = [0, 128], sizes = [1, 128], strides = [1, 1]} : vector<1x768xf32> to vector<1x128xf32>
    %162 = vector.extract_strided_slice %158 {offsets = [0, 256], sizes = [1, 128], strides = [1, 1]} : vector<1x768xf32> to vector<1x128xf32>
    %163 = vector.extract_strided_slice %159 {offsets = [0, 384], sizes = [1, 128], strides = [1, 1]} : vector<1x768xf32> to vector<1x128xf32>
    %164 = vector.extract_strided_slice %158 {offsets = [0, 512], sizes = [1, 128], strides = [1, 1]} : vector<1x768xf32> to vector<1x128xf32>
    %165 = vector.extract_strided_slice %159 {offsets = [0, 640], sizes = [1, 128], strides = [1, 1]} : vector<1x768xf32> to vector<1x128xf32>
    %166 = tpu.concatenate %160, %161, %162, %163, %164, %165 in 1 : vector<1x128xf32>, vector<1x128xf32>, vector<1x128xf32>, vector<1x128xf32>, vector<1x128xf32>, vector<1x128xf32> -> vector<1x768xf32>
    %167 = arith.truncf %157 : vector<1x256xf32> to vector<1x256xbf16>
    %c0_51 = arith.constant 0 : index
    %c0_52 = arith.constant 0 : index
    %168 = vector.load %arg5[%c0_51, %c0_52] : memref<256x768xbf16, #tpu.memory_space<vmem>>, vector<256x768xbf16>
    %cst_53 = arith.constant dense<0.000000e+00> : vector<1x768xf32>
    %169 = tpu.matmul %167, %168, %cst_53 {dimension_numbers = #tpu.dot_dimension_numbers<[1], [0], [0], [1], [0, 0, 1, 1], [], []>} : vector<1x256xbf16>, vector<256x768xbf16>, vector<1x768xf32> -> vector<1x768xf32>
    %170 = arith.addf %169, %39 : vector<1x768xf32>
    %171 = vector.extract_strided_slice %166 {offsets = [0, 0], sizes = [1, 256], strides = [1, 1]} : vector<1x768xf32> to vector<1x256xf32>
    %172 = vector.extract_strided_slice %170 {offsets = [0, 0], sizes = [1, 256], strides = [1, 1]} : vector<1x768xf32> to vector<1x256xf32>
    %173 = arith.addf %171, %172 : vector<1x256xf32>
    %174 = arith.negf %173 : vector<1x256xf32>
    %175 = math.exp %174 : vector<1x256xf32>
    %cst_54 = arith.constant 1.000000e+00 : f32
    %176 = vector.broadcast %cst_54 : f32 to vector<1x256xf32>
    %177 = arith.addf %176, %175 : vector<1x256xf32>
    %178 = arith.divf %176, %177 : vector<1x256xf32>
    %179 = vector.extract_strided_slice %166 {offsets = [0, 256], sizes = [1, 256], strides = [1, 1]} : vector<1x768xf32> to vector<1x256xf32>
    %180 = vector.extract_strided_slice %170 {offsets = [0, 256], sizes = [1, 256], strides = [1, 1]} : vector<1x768xf32> to vector<1x256xf32>
    %181 = arith.addf %179, %180 : vector<1x256xf32>
    %182 = arith.negf %181 : vector<1x256xf32>
    %183 = math.exp %182 : vector<1x256xf32>
    %cst_55 = arith.constant 1.000000e+00 : f32
    %184 = vector.broadcast %cst_55 : f32 to vector<1x256xf32>
    %185 = arith.addf %184, %183 : vector<1x256xf32>
    %186 = arith.divf %184, %185 : vector<1x256xf32>
    %187 = vector.extract_strided_slice %166 {offsets = [0, 512], sizes = [1, 256], strides = [1, 1]} : vector<1x768xf32> to vector<1x256xf32>
    %188 = vector.extract_strided_slice %170 {offsets = [0, 512], sizes = [1, 256], strides = [1, 1]} : vector<1x768xf32> to vector<1x256xf32>
    %189 = arith.mulf %178, %188 : vector<1x256xf32>
    %190 = arith.addf %187, %189 : vector<1x256xf32>
    %191 = math.tanh %190 : vector<1x256xf32>
    %cst_56 = arith.constant 1.000000e+00 : f32
    %192 = vector.broadcast %cst_56 : f32 to vector<1x256xf32>
    %193 = arith.subf %192, %186 : vector<1x256xf32>
    %194 = arith.mulf %193, %191 : vector<1x256xf32>
    %195 = arith.mulf %186, %157 : vector<1x256xf32>
    %196 = arith.addf %194, %195 : vector<1x256xf32>
    %197 = vector.extract_strided_slice %38 {offsets = [4, 0], sizes = [1, 768], strides = [1, 1]} : vector<8x768xf32> to vector<1x768xf32>
    %198 = vector.extract_strided_slice %38 {offsets = [3, 0], sizes = [1, 768], strides = [1, 1]} : vector<8x768xf32> to vector<1x768xf32>
    %199 = vector.extract_strided_slice %197 {offsets = [0, 0], sizes = [1, 128], strides = [1, 1]} : vector<1x768xf32> to vector<1x128xf32>
    %200 = vector.extract_strided_slice %198 {offsets = [0, 128], sizes = [1, 128], strides = [1, 1]} : vector<1x768xf32> to vector<1x128xf32>
    %201 = vector.extract_strided_slice %197 {offsets = [0, 256], sizes = [1, 128], strides = [1, 1]} : vector<1x768xf32> to vector<1x128xf32>
    %202 = vector.extract_strided_slice %198 {offsets = [0, 384], sizes = [1, 128], strides = [1, 1]} : vector<1x768xf32> to vector<1x128xf32>
    %203 = vector.extract_strided_slice %197 {offsets = [0, 512], sizes = [1, 128], strides = [1, 1]} : vector<1x768xf32> to vector<1x128xf32>
    %204 = vector.extract_strided_slice %198 {offsets = [0, 640], sizes = [1, 128], strides = [1, 1]} : vector<1x768xf32> to vector<1x128xf32>
    %205 = tpu.concatenate %199, %200, %201, %202, %203, %204 in 1 : vector<1x128xf32>, vector<1x128xf32>, vector<1x128xf32>, vector<1x128xf32>, vector<1x128xf32>, vector<1x128xf32> -> vector<1x768xf32>
    %206 = arith.truncf %196 : vector<1x256xf32> to vector<1x256xbf16>
    %c0_57 = arith.constant 0 : index
    %c0_58 = arith.constant 0 : index
    %207 = vector.load %arg5[%c0_57, %c0_58] : memref<256x768xbf16, #tpu.memory_space<vmem>>, vector<256x768xbf16>
    %cst_59 = arith.constant dense<0.000000e+00> : vector<1x768xf32>
    %208 = tpu.matmul %206, %207, %cst_59 {dimension_numbers = #tpu.dot_dimension_numbers<[1], [0], [0], [1], [0, 0, 1, 1], [], []>} : vector<1x256xbf16>, vector<256x768xbf16>, vector<1x768xf32> -> vector<1x768xf32>
    %209 = arith.addf %208, %39 : vector<1x768xf32>
    %210 = vector.extract_strided_slice %205 {offsets = [0, 0], sizes = [1, 256], strides = [1, 1]} : vector<1x768xf32> to vector<1x256xf32>
    %211 = vector.extract_strided_slice %209 {offsets = [0, 0], sizes = [1, 256], strides = [1, 1]} : vector<1x768xf32> to vector<1x256xf32>
    %212 = arith.addf %210, %211 : vector<1x256xf32>
    %213 = arith.negf %212 : vector<1x256xf32>
    %214 = math.exp %213 : vector<1x256xf32>
    %cst_60 = arith.constant 1.000000e+00 : f32
    %215 = vector.broadcast %cst_60 : f32 to vector<1x256xf32>
    %216 = arith.addf %215, %214 : vector<1x256xf32>
    %217 = arith.divf %215, %216 : vector<1x256xf32>
    %218 = vector.extract_strided_slice %205 {offsets = [0, 256], sizes = [1, 256], strides = [1, 1]} : vector<1x768xf32> to vector<1x256xf32>
    %219 = vector.extract_strided_slice %209 {offsets = [0, 256], sizes = [1, 256], strides = [1, 1]} : vector<1x768xf32> to vector<1x256xf32>
    %220 = arith.addf %218, %219 : vector<1x256xf32>
    %221 = arith.negf %220 : vector<1x256xf32>
    %222 = math.exp %221 : vector<1x256xf32>
    %cst_61 = arith.constant 1.000000e+00 : f32
    %223 = vector.broadcast %cst_61 : f32 to vector<1x256xf32>
    %224 = arith.addf %223, %222 : vector<1x256xf32>
    %225 = arith.divf %223, %224 : vector<1x256xf32>
    %226 = vector.extract_strided_slice %205 {offsets = [0, 512], sizes = [1, 256], strides = [1, 1]} : vector<1x768xf32> to vector<1x256xf32>
    %227 = vector.extract_strided_slice %209 {offsets = [0, 512], sizes = [1, 256], strides = [1, 1]} : vector<1x768xf32> to vector<1x256xf32>
    %228 = arith.mulf %217, %227 : vector<1x256xf32>
    %229 = arith.addf %226, %228 : vector<1x256xf32>
    %230 = math.tanh %229 : vector<1x256xf32>
    %cst_62 = arith.constant 1.000000e+00 : f32
    %231 = vector.broadcast %cst_62 : f32 to vector<1x256xf32>
    %232 = arith.subf %231, %225 : vector<1x256xf32>
    %233 = arith.mulf %232, %230 : vector<1x256xf32>
    %234 = arith.mulf %225, %196 : vector<1x256xf32>
    %235 = arith.addf %233, %234 : vector<1x256xf32>
    %236 = vector.extract_strided_slice %38 {offsets = [5, 0], sizes = [1, 768], strides = [1, 1]} : vector<8x768xf32> to vector<1x768xf32>
    %237 = vector.extract_strided_slice %38 {offsets = [2, 0], sizes = [1, 768], strides = [1, 1]} : vector<8x768xf32> to vector<1x768xf32>
    %238 = vector.extract_strided_slice %236 {offsets = [0, 0], sizes = [1, 128], strides = [1, 1]} : vector<1x768xf32> to vector<1x128xf32>
    %239 = vector.extract_strided_slice %237 {offsets = [0, 128], sizes = [1, 128], strides = [1, 1]} : vector<1x768xf32> to vector<1x128xf32>
    %240 = vector.extract_strided_slice %236 {offsets = [0, 256], sizes = [1, 128], strides = [1, 1]} : vector<1x768xf32> to vector<1x128xf32>
    %241 = vector.extract_strided_slice %237 {offsets = [0, 384], sizes = [1, 128], strides = [1, 1]} : vector<1x768xf32> to vector<1x128xf32>
    %242 = vector.extract_strided_slice %236 {offsets = [0, 512], sizes = [1, 128], strides = [1, 1]} : vector<1x768xf32> to vector<1x128xf32>
    %243 = vector.extract_strided_slice %237 {offsets = [0, 640], sizes = [1, 128], strides = [1, 1]} : vector<1x768xf32> to vector<1x128xf32>
    %244 = tpu.concatenate %238, %239, %240, %241, %242, %243 in 1 : vector<1x128xf32>, vector<1x128xf32>, vector<1x128xf32>, vector<1x128xf32>, vector<1x128xf32>, vector<1x128xf32> -> vector<1x768xf32>
    %245 = arith.truncf %235 : vector<1x256xf32> to vector<1x256xbf16>
    %c0_63 = arith.constant 0 : index
    %c0_64 = arith.constant 0 : index
    %246 = vector.load %arg5[%c0_63, %c0_64] : memref<256x768xbf16, #tpu.memory_space<vmem>>, vector<256x768xbf16>
    %cst_65 = arith.constant dense<0.000000e+00> : vector<1x768xf32>
    %247 = tpu.matmul %245, %246, %cst_65 {dimension_numbers = #tpu.dot_dimension_numbers<[1], [0], [0], [1], [0, 0, 1, 1], [], []>} : vector<1x256xbf16>, vector<256x768xbf16>, vector<1x768xf32> -> vector<1x768xf32>
    %248 = arith.addf %247, %39 : vector<1x768xf32>
    %249 = vector.extract_strided_slice %244 {offsets = [0, 0], sizes = [1, 256], strides = [1, 1]} : vector<1x768xf32> to vector<1x256xf32>
    %250 = vector.extract_strided_slice %248 {offsets = [0, 0], sizes = [1, 256], strides = [1, 1]} : vector<1x768xf32> to vector<1x256xf32>
    %251 = arith.addf %249, %250 : vector<1x256xf32>
    %252 = arith.negf %251 : vector<1x256xf32>
    %253 = math.exp %252 : vector<1x256xf32>
    %cst_66 = arith.constant 1.000000e+00 : f32
    %254 = vector.broadcast %cst_66 : f32 to vector<1x256xf32>
    %255 = arith.addf %254, %253 : vector<1x256xf32>
    %256 = arith.divf %254, %255 : vector<1x256xf32>
    %257 = vector.extract_strided_slice %244 {offsets = [0, 256], sizes = [1, 256], strides = [1, 1]} : vector<1x768xf32> to vector<1x256xf32>
    %258 = vector.extract_strided_slice %248 {offsets = [0, 256], sizes = [1, 256], strides = [1, 1]} : vector<1x768xf32> to vector<1x256xf32>
    %259 = arith.addf %257, %258 : vector<1x256xf32>
    %260 = arith.negf %259 : vector<1x256xf32>
    %261 = math.exp %260 : vector<1x256xf32>
    %cst_67 = arith.constant 1.000000e+00 : f32
    %262 = vector.broadcast %cst_67 : f32 to vector<1x256xf32>
    %263 = arith.addf %262, %261 : vector<1x256xf32>
    %264 = arith.divf %262, %263 : vector<1x256xf32>
    %265 = vector.extract_strided_slice %244 {offsets = [0, 512], sizes = [1, 256], strides = [1, 1]} : vector<1x768xf32> to vector<1x256xf32>
    %266 = vector.extract_strided_slice %248 {offsets = [0, 512], sizes = [1, 256], strides = [1, 1]} : vector<1x768xf32> to vector<1x256xf32>
    %267 = arith.mulf %256, %266 : vector<1x256xf32>
    %268 = arith.addf %265, %267 : vector<1x256xf32>
    %269 = math.tanh %268 : vector<1x256xf32>
    %cst_68 = arith.constant 1.000000e+00 : f32
    %270 = vector.broadcast %cst_68 : f32 to vector<1x256xf32>
    %271 = arith.subf %270, %264 : vector<1x256xf32>
    %272 = arith.mulf %271, %269 : vector<1x256xf32>
    %273 = arith.mulf %264, %235 : vector<1x256xf32>
    %274 = arith.addf %272, %273 : vector<1x256xf32>
    %275 = vector.extract_strided_slice %38 {offsets = [6, 0], sizes = [1, 768], strides = [1, 1]} : vector<8x768xf32> to vector<1x768xf32>
    %276 = vector.extract_strided_slice %38 {offsets = [1, 0], sizes = [1, 768], strides = [1, 1]} : vector<8x768xf32> to vector<1x768xf32>
    %277 = vector.extract_strided_slice %275 {offsets = [0, 0], sizes = [1, 128], strides = [1, 1]} : vector<1x768xf32> to vector<1x128xf32>
    %278 = vector.extract_strided_slice %276 {offsets = [0, 128], sizes = [1, 128], strides = [1, 1]} : vector<1x768xf32> to vector<1x128xf32>
    %279 = vector.extract_strided_slice %275 {offsets = [0, 256], sizes = [1, 128], strides = [1, 1]} : vector<1x768xf32> to vector<1x128xf32>
    %280 = vector.extract_strided_slice %276 {offsets = [0, 384], sizes = [1, 128], strides = [1, 1]} : vector<1x768xf32> to vector<1x128xf32>
    %281 = vector.extract_strided_slice %275 {offsets = [0, 512], sizes = [1, 128], strides = [1, 1]} : vector<1x768xf32> to vector<1x128xf32>
    %282 = vector.extract_strided_slice %276 {offsets = [0, 640], sizes = [1, 128], strides = [1, 1]} : vector<1x768xf32> to vector<1x128xf32>
    %283 = tpu.concatenate %277, %278, %279, %280, %281, %282 in 1 : vector<1x128xf32>, vector<1x128xf32>, vector<1x128xf32>, vector<1x128xf32>, vector<1x128xf32>, vector<1x128xf32> -> vector<1x768xf32>
    %284 = arith.truncf %274 : vector<1x256xf32> to vector<1x256xbf16>
    %c0_69 = arith.constant 0 : index
    %c0_70 = arith.constant 0 : index
    %285 = vector.load %arg5[%c0_69, %c0_70] : memref<256x768xbf16, #tpu.memory_space<vmem>>, vector<256x768xbf16>
    %cst_71 = arith.constant dense<0.000000e+00> : vector<1x768xf32>
    %286 = tpu.matmul %284, %285, %cst_71 {dimension_numbers = #tpu.dot_dimension_numbers<[1], [0], [0], [1], [0, 0, 1, 1], [], []>} : vector<1x256xbf16>, vector<256x768xbf16>, vector<1x768xf32> -> vector<1x768xf32>
    %287 = arith.addf %286, %39 : vector<1x768xf32>
    %288 = vector.extract_strided_slice %283 {offsets = [0, 0], sizes = [1, 256], strides = [1, 1]} : vector<1x768xf32> to vector<1x256xf32>
    %289 = vector.extract_strided_slice %287 {offsets = [0, 0], sizes = [1, 256], strides = [1, 1]} : vector<1x768xf32> to vector<1x256xf32>
    %290 = arith.addf %288, %289 : vector<1x256xf32>
    %291 = arith.negf %290 : vector<1x256xf32>
    %292 = math.exp %291 : vector<1x256xf32>
    %cst_72 = arith.constant 1.000000e+00 : f32
    %293 = vector.broadcast %cst_72 : f32 to vector<1x256xf32>
    %294 = arith.addf %293, %292 : vector<1x256xf32>
    %295 = arith.divf %293, %294 : vector<1x256xf32>
    %296 = vector.extract_strided_slice %283 {offsets = [0, 256], sizes = [1, 256], strides = [1, 1]} : vector<1x768xf32> to vector<1x256xf32>
    %297 = vector.extract_strided_slice %287 {offsets = [0, 256], sizes = [1, 256], strides = [1, 1]} : vector<1x768xf32> to vector<1x256xf32>
    %298 = arith.addf %296, %297 : vector<1x256xf32>
    %299 = arith.negf %298 : vector<1x256xf32>
    %300 = math.exp %299 : vector<1x256xf32>
    %cst_73 = arith.constant 1.000000e+00 : f32
    %301 = vector.broadcast %cst_73 : f32 to vector<1x256xf32>
    %302 = arith.addf %301, %300 : vector<1x256xf32>
    %303 = arith.divf %301, %302 : vector<1x256xf32>
    %304 = vector.extract_strided_slice %283 {offsets = [0, 512], sizes = [1, 256], strides = [1, 1]} : vector<1x768xf32> to vector<1x256xf32>
    %305 = vector.extract_strided_slice %287 {offsets = [0, 512], sizes = [1, 256], strides = [1, 1]} : vector<1x768xf32> to vector<1x256xf32>
    %306 = arith.mulf %295, %305 : vector<1x256xf32>
    %307 = arith.addf %304, %306 : vector<1x256xf32>
    %308 = math.tanh %307 : vector<1x256xf32>
    %cst_74 = arith.constant 1.000000e+00 : f32
    %309 = vector.broadcast %cst_74 : f32 to vector<1x256xf32>
    %310 = arith.subf %309, %303 : vector<1x256xf32>
    %311 = arith.mulf %310, %308 : vector<1x256xf32>
    %312 = arith.mulf %303, %274 : vector<1x256xf32>
    %313 = arith.addf %311, %312 : vector<1x256xf32>
    %314 = vector.extract_strided_slice %38 {offsets = [7, 0], sizes = [1, 768], strides = [1, 1]} : vector<8x768xf32> to vector<1x768xf32>
    %315 = vector.extract_strided_slice %38 {offsets = [0, 0], sizes = [1, 768], strides = [1, 1]} : vector<8x768xf32> to vector<1x768xf32>
    %316 = vector.extract_strided_slice %314 {offsets = [0, 0], sizes = [1, 128], strides = [1, 1]} : vector<1x768xf32> to vector<1x128xf32>
    %317 = vector.extract_strided_slice %315 {offsets = [0, 128], sizes = [1, 128], strides = [1, 1]} : vector<1x768xf32> to vector<1x128xf32>
    %318 = vector.extract_strided_slice %314 {offsets = [0, 256], sizes = [1, 128], strides = [1, 1]} : vector<1x768xf32> to vector<1x128xf32>
    %319 = vector.extract_strided_slice %315 {offsets = [0, 384], sizes = [1, 128], strides = [1, 1]} : vector<1x768xf32> to vector<1x128xf32>
    %320 = vector.extract_strided_slice %314 {offsets = [0, 512], sizes = [1, 128], strides = [1, 1]} : vector<1x768xf32> to vector<1x128xf32>
    %321 = vector.extract_strided_slice %315 {offsets = [0, 640], sizes = [1, 128], strides = [1, 1]} : vector<1x768xf32> to vector<1x128xf32>
    %322 = tpu.concatenate %316, %317, %318, %319, %320, %321 in 1 : vector<1x128xf32>, vector<1x128xf32>, vector<1x128xf32>, vector<1x128xf32>, vector<1x128xf32>, vector<1x128xf32> -> vector<1x768xf32>
    %323 = arith.truncf %313 : vector<1x256xf32> to vector<1x256xbf16>
    %c0_75 = arith.constant 0 : index
    %c0_76 = arith.constant 0 : index
    %324 = vector.load %arg5[%c0_75, %c0_76] : memref<256x768xbf16, #tpu.memory_space<vmem>>, vector<256x768xbf16>
    %cst_77 = arith.constant dense<0.000000e+00> : vector<1x768xf32>
    %325 = tpu.matmul %323, %324, %cst_77 {dimension_numbers = #tpu.dot_dimension_numbers<[1], [0], [0], [1], [0, 0, 1, 1], [], []>} : vector<1x256xbf16>, vector<256x768xbf16>, vector<1x768xf32> -> vector<1x768xf32>
    %326 = arith.addf %325, %39 : vector<1x768xf32>
    %327 = vector.extract_strided_slice %322 {offsets = [0, 0], sizes = [1, 256], strides = [1, 1]} : vector<1x768xf32> to vector<1x256xf32>
    %328 = vector.extract_strided_slice %326 {offsets = [0, 0], sizes = [1, 256], strides = [1, 1]} : vector<1x768xf32> to vector<1x256xf32>
    %329 = arith.addf %327, %328 : vector<1x256xf32>
    %330 = arith.negf %329 : vector<1x256xf32>
    %331 = math.exp %330 : vector<1x256xf32>
    %cst_78 = arith.constant 1.000000e+00 : f32
    %332 = vector.broadcast %cst_78 : f32 to vector<1x256xf32>
    %333 = arith.addf %332, %331 : vector<1x256xf32>
    %334 = arith.divf %332, %333 : vector<1x256xf32>
    %335 = vector.extract_strided_slice %322 {offsets = [0, 256], sizes = [1, 256], strides = [1, 1]} : vector<1x768xf32> to vector<1x256xf32>
    %336 = vector.extract_strided_slice %326 {offsets = [0, 256], sizes = [1, 256], strides = [1, 1]} : vector<1x768xf32> to vector<1x256xf32>
    %337 = arith.addf %335, %336 : vector<1x256xf32>
    %338 = arith.negf %337 : vector<1x256xf32>
    %339 = math.exp %338 : vector<1x256xf32>
    %cst_79 = arith.constant 1.000000e+00 : f32
    %340 = vector.broadcast %cst_79 : f32 to vector<1x256xf32>
    %341 = arith.addf %340, %339 : vector<1x256xf32>
    %342 = arith.divf %340, %341 : vector<1x256xf32>
    %343 = vector.extract_strided_slice %322 {offsets = [0, 512], sizes = [1, 256], strides = [1, 1]} : vector<1x768xf32> to vector<1x256xf32>
    %344 = vector.extract_strided_slice %326 {offsets = [0, 512], sizes = [1, 256], strides = [1, 1]} : vector<1x768xf32> to vector<1x256xf32>
    %345 = arith.mulf %334, %344 : vector<1x256xf32>
    %346 = arith.addf %343, %345 : vector<1x256xf32>
    %347 = math.tanh %346 : vector<1x256xf32>
    %cst_80 = arith.constant 1.000000e+00 : f32
    %348 = vector.broadcast %cst_80 : f32 to vector<1x256xf32>
    %349 = arith.subf %348, %342 : vector<1x256xf32>
    %350 = arith.mulf %349, %347 : vector<1x256xf32>
    %351 = arith.mulf %342, %313 : vector<1x256xf32>
    %352 = arith.addf %350, %351 : vector<1x256xf32>
    %cst_81 = arith.constant 0.000000e+00 : f32
    %353 = vector.broadcast %cst_81 : f32 to vector<1x256xf32>
    %354 = arith.maximumf %352, %353 : vector<1x256xf32>
    %c0_82 = arith.constant 0 : index
    %c0_83 = arith.constant 0 : index
    %355 = vector.load %arg7[%c0_82, %c0_83] : memref<256x2xf32, #tpu.memory_space<vmem>>, vector<256x2xf32>
    %cst_84 = arith.constant dense<0.000000e+00> : vector<1x2xf32>
    %356 = tpu.matmul %354, %355, %cst_84 {dimension_numbers = #tpu.dot_dimension_numbers<[1], [0], [0], [1], [0, 0, 1, 1], [], []>} : vector<1x256xf32>, vector<256x2xf32>, vector<1x2xf32> -> vector<1x2xf32>
    %c0_85 = arith.constant 0 : index
    %c0_86 = arith.constant 0 : index
    %357 = vector.load %arg8[%c0_85, %c0_86] : memref<1x2xf32, #tpu.memory_space<vmem>>, vector<1x2xf32>
    %358 = arith.addf %356, %357 : vector<1x2xf32>
    %c0_87 = arith.constant 0 : index
    %c0_88 = arith.constant 0 : index
    %359 = vector.load %arg9[%c0_87, %c0_88] : memref<1x2xf32, #tpu.memory_space<vmem>>, vector<1x2xf32>
    tpu.vector_store %arg9[%c0_87, %c0_88], %358 {strides = array<i32>} : memref<1x2xf32, #tpu.memory_space<vmem>>, vector<1x2xf32>,
    return
  }
  func.func @transform_0(%arg0: i32, %arg1: memref<8xi32, #tpu.memory_space<smem>>) -> (i32, i32) {
    %c0_i32 = arith.constant 0 : i32
    %c0_i32_0 = arith.constant 0 : i32
    %c0_i32_1 = arith.constant 0 : i32
    return %c0_i32, %c0_i32_0 : i32, i32
  }
  func.func @transform_1(%arg0: i32, %arg1: memref<8xi32, #tpu.memory_space<smem>>) -> (i32, i32) {
    %c0_i32 = arith.constant 0 : i32
    %c0_i32_0 = arith.constant 0 : i32
    %c0_i32_1 = arith.constant 0 : i32
    return %c0_i32, %c0_i32_0 : i32, i32
  }
  func.func @transform_2(%arg0: i32, %arg1: memref<8xi32, #tpu.memory_space<smem>>) -> (i32, i32) {
    %c0_i32 = arith.constant 0 : i32
    %c0_i32_0 = arith.constant 0 : i32
    %c0_i32_1 = arith.constant 0 : i32
    return %c0_i32, %c0_i32_0 : i32, i32
  }
  func.func @transform_3(%arg0: i32, %arg1: memref<8xi32, #tpu.memory_space<smem>>) -> (i32, i32) {
    %c0_i32 = arith.constant 0 : i32
    %c0_i32_0 = arith.constant 0 : i32
    %c0_i32_1 = arith.constant 0 : i32
    return %c0_i32, %c0_i32_0 : i32, i32
  }
  func.func @transform_4(%arg0: i32, %arg1: memref<8xi32, #tpu.memory_space<smem>>) -> (i32, i32) {
    %c0_i32 = arith.constant 0 : i32
    %c0_i32_0 = arith.constant 0 : i32
    %c0_i32_1 = arith.constant 0 : i32
    return %c0_i32, %c0_i32_0 : i32, i32
  }
  func.func @transform_5(%arg0: i32, %arg1: memref<8xi32, #tpu.memory_space<smem>>) -> (i32, i32) {
    %c0_i32 = arith.constant 0 : i32
    %c0_i32_0 = arith.constant 0 : i32
    %c0_i32_1 = arith.constant 0 : i32
    return %c0_i32, %c0_i32_0 : i32, i32
  }
  func.func @transform_6(%arg0: i32, %arg1: memref<8xi32, #tpu.memory_space<smem>>) -> (i32, i32) {
    %c0_i32 = arith.constant 0 : i32
    %c0_i32_0 = arith.constant 0 : i32
    %c0_i32_1 = arith.constant 0 : i32
    return %c0_i32, %c0_i32_0 : i32, i32
  }
  func.func @transform_7(%arg0: i32, %arg1: memref<8xi32, #tpu.memory_space<smem>>) -> (i32, i32) {
    %c0_i32 = arith.constant 0 : i32
    %c0_i32_0 = arith.constant 0 : i32
    %c0_i32_1 = arith.constant 0 : i32
    return %c0_i32, %c0_i32_0 : i32, i32
  }
}

</mosaic_0001>

<bundles_post_ra>
// kernel: bigru_forward.1
= control target key start
LH: loop header
LB: loop body
LE: loop exit
PB: predicated region body
PF: predicated region fallthrough
CT: control target
= control target key end

     0   :  { %s5514_s0 = inlined_call_operand.vmem [shape: s32[8], index: 0, kind: input, shape index: {}]   ;;  %s5515_s1 = inlined_call_operand.vmem [shape: f32[50,128], index: 1, kind: input, shape index: {}]   ;;  %s5516_s2 = inlined_call_operand.hbm [shape: bf16[128,768], index: 2, kind: input, shape index: {}]   ;;  %s5517_s3 = inlined_call_operand.vmem [shape: f32[1,768], index: 3, kind: input, shape index: {}]   ;;  %s5518_s4 = inlined_call_operand.hbm [shape: bf16[256,768], index: 4, kind: input, shape index: {}]   ;;  %s5519_s5 = inlined_call_operand.vmem [shape: f32[1,768], index: 5, kind: input, shape index: {}]   ;;  %s5520_s6 = inlined_call_operand.vmem [shape: f32[256,2], index: 6, kind: input, shape index: {}]   ;;  %s5521_s7 = inlined_call_operand.vmem [shape: f32[1,2], index: 7, kind: input, shape index: {}]   ;;  %s5522_s8 = inlined_call_operand.vmem [shape: f32[1,2], index: 8, kind: output, shape index: {}]  }
   0x1   :  { %s13_s29 = sshll.u32 %s5514_s0, 4  ;;  %s14_s29 = int_to_ptr.vmem [resolvable:$true] %s13_s29 }
   0x2   :  { %s3641_s30 = scalar_lea.vmem %s14_s29, 16  ;;  %p3646_p1 = scmp.lt.s32.totalorder %s14_s29, %s14_s29 }
   0x3   :  { %p3642_p0 = scmp.ne.s32.totalorder %s14_s29, %s3641_s30  ;;  %p3647_p2 = scmp.lt.s32.totalorder %s3641_s30, %s3641_s30 }
   0x5   :  { %p3648_p3 = por %p3647_p2, %p3646_p1 }
   0x7   :  { %p3649_p4 = pnand %p3648_p3, %p3642_p0 }
   0x9   :  { %3652 = shalt.err (!%p3649_p4)  }
   0xa   :  { %s3699_s9 = smov [#allocation4]  }
   0xb   :  { %16 = dma.vmem_to_smem %s14_s29, 16, %s3699_s9, [#allocation3] }
   0xc   :  { %3693 = dma.done.wait [#allocation3], 16 }
   0xd   :  { %3694 = vsyncadd [#allocation3], 4294967280 }
   0xe   :  { %18 = sfence }
   0xf   :  { %19 = vsyncpa [#allocation6], 0 }
  0x10   :  { %20 = vsyncpa [#allocation8], 0  ;;  %s3700_s10 = smov [#allocation5]  }
  0x11   :  { %s28_s11 = sshll.u32 %s3700_s10, 4  ;;  %s29_s11 = int_to_ptr.vmem [resolvable:$true] %s28_s11 }
  0x12   :  { %s3661_s12 = scalar_lea.vmem %s29_s11, 6144  ;;  %p3666_p6 = scmp.lt.s32.totalorder %s29_s11, %s29_s11 }
  0x13   :  { %p3662_p5 = scmp.ne.s32.totalorder %s29_s11, %s3661_s12  ;;  %p3667_p7 = scmp.lt.s32.totalorder %s3661_s12, %s3661_s12 }
  0x15   :  { %p3668_p8 = por %p3667_p7, %p3666_p6 }
  0x17   :  { %p3669_p9 = pnand %p3668_p8, %p3662_p5 }
  0x19   :  { %3672 = shalt.err (!%p3669_p9)
}
  0x1a   :  { %s3701_s0 = smov 384   ;;  %s3702_s13 = smov 24  }
  0x1b   :  { %34 = dma.hbm_to_vmem [thread:$0]  %s5516_s2, 6144, %s29_s11, [#allocation6], %s3701_s0, %s3701_s0, %s3702_s13  }
  0x1c   :  { %s3703_s16 = smov [#allocation7]  }
  0x1d   :  { %s42_s17 = sshll.u32 %s3703_s16, 4  ;;  %s43_s17 = int_to_ptr.vmem [resolvable:$true] %s42_s17 }
  0x1e   :  { %s3681_s18 = scalar_lea.vmem %s43_s17, 12288  ;;  %p3686_p11 = scmp.lt.s32.totalorder %s43_s17, %s43_s17 }
  0x1f   :  { %p3682_p10 = scmp.ne.s32.totalorder %s43_s17, %s3681_s18  ;;  %p3687_p12 = scmp.lt.s32.totalorder %s3681_s18, %s3681_s18 }
  0x21   :  { %p3688_p13 = por %p3687_p12, %p3686_p11 }
  0x23   :  { %p3689_p0 = pnand %p3688_p13, %p3682_p10 }
  0x25   :  { %3692 = shalt.err (!%p3689_p0)
}
  0x26   :  { %48 = dma.hbm_to_vmem [thread:$0]  %s5518_s4, 12288, %s43_s17, [#allocation8], %s3701_s0, %s3701_s0, %s3702_s13  }
  0x27   :  { %3695 = dma.done.wait [#allocation6], 6144  }
  0x28   :  { %3696 = vsyncadd [#allocation6], 4294961152 }
  0x29   :  { %3697 = dma.done.wait [#allocation8], 12288  }
  0x2a   :  { %3698 = vsyncadd [#allocation8], 4294955008  ;;  %v5523_v0 = vmov 0   ;;  %v3073_v1 = vld [vmem:[#allocation5 + $0x154] ss:$24 sps:$4 sm:$0xff]   ;;  %s3761_s2 = sld [smem:[#allocation4]] }
  0x2b   :  { %489 = vmatprep.mubr.bf16.mxu1 %v5523_v0  ;;  %448 = vmatprep.mubr.bf16.mxu0 %v5523_v0  ;;  %v3075_v2 = vld [vmem:[#allocation5 + $0x15c] ss:$24 sps:$4 sm:$0xff]   ;;  %v3077_v3 = vld [vmem:[#allocation5 + $0x150] ss:$24 sps:$4 sm:$0xff]   ;;  %s3763_s21 = sld [smem:[#allocation4 + $0x1]]  ;;  %vm2833_vm0 = vcmask 8192  }
  0x2c   :  { %416 = vmatprep.subr.bf16.mxu0 %v3073_v1  ;;  %v3078_v4 = vld [vmem:[#allocation5 + $0x158] ss:$24 sps:$4 sm:$0xff]   ;;  %457 = vmatprep.subr.bf16.mxu1 %v3075_v2  ;;  %v3079_v5 = vld [vmem:[#allocation5 + $0x124] ss:$24 sps:$4 sm:$0xff]   ;;  %v3084_v8 = vld [vmem:[#allocation5 + $0x128] ss:$24 sps:$4 sm:$0xff]  }
  0x2d   :  { %417 = vmatpush1.bf16.msra.mxu0 %v3077_v3  ;;  %458 = vmatpush1.bf16.msra.mxu1 %v3078_v4  ;;  %v3081_v6 = vld [vmem:[#allocation5 + $0x12c] ss:$24 sps:$4 sm:$0xff]   ;;  %v3083_v7 = vld [vmem:[#allocation5 + $0x120] ss:$24 sps:$4 sm:$0xff]   ;;  %s3765_s4 = sld [smem:[#allocation4 + $0x2]] }
  0x2e   :  { %418 = vmatprep.subr.bf16.mxu0 %v3079_v5  ;;  %459 = vmatprep.subr.bf16.mxu1 %v3081_v6  ;;  %v3085_v9 = vld [vmem:[#allocation5 + $0xf4] ss:$24 sps:$4 sm:$0xff]   ;;  %s3767_s22 = sld [smem:[#allocation4 + $0x3]]  ;;  %v3089_v11 = vld [vmem:[#allocation5 + $0xf0] ss:$24 sps:$4 sm:$0xff]  }
  0x2f   :  { %v3087_v10 = vld [vmem:[#allocation5 + $0xfc] ss:$24 sps:$4 sm:$0xff]   ;;  %v3090_v12 = vld [vmem:[#allocation5 + $0xf8] ss:$24 sps:$4 sm:$0xff]   ;;  %s3769_s23 = sld [smem:[#allocation4 + $0x4]] }
  0x30   :  { %v3091_v13 = vld [vmem:[#allocation5 + $0xc4] ss:$24 sps:$4 sm:$0xff]   ;;  %s3771_s24 = sld [smem:[#allocation4 + $0x5]]  ;;  %v3095_v15 = vld [vmem:[#allocation5 + $0xc0] ss:$24 sps:$4 sm:$0xff]   ;;  %s63_s29 = scalar_lea.vmem %s5515_s1, %s3761_s2 }
  0x31   :  { %419 = vmatpush1.bf16.msra.mxu0 %v3083_v7  ;;  %460 = vmatpush1.bf16.msra.mxu1 %v3084_v8  ;;  %v3093_v14 = vld [vmem:[#allocation5 + $0xcc] ss:$24 sps:$4 sm:$0xff]   ;;  %s3773_s25 = sld [smem:[#allocation4 + $0x6]]  ;;  %v3096_v16 = vld [vmem:[#allocation5 + $0xc8] ss:$24 sps:$4 sm:$0xff]   ;;  %s67_s10 = scalar_lea.vmem %s5515_s1, %s3763_s21 }
  0x32   :  { %420 = vmatprep.subr.bf16.mxu0 %v3085_v9  ;;  %461 = vmatprep.subr.bf16.mxu1 %v3087_v10  ;;  %s3775_s26 = sld [smem:[#allocation4 + $0x7]]  ;;  %v3097_v17 = vld [vmem:[#allocation5 + $0x94] ss:$24 sps:$4 sm:$0xff]   ;;  %v3101_v19 = vld [vmem:[#allocation5 + $0x90] ss:$24 sps:$4 sm:$0xff]  }
  0x33   :  { %v3099_v18 = vld [vmem:[#allocation5 + $0x9c] ss:$24 sps:$4 sm:$0xff]   ;;  %v3102_v20 = vld [vmem:[#allocation5 + $0x98] ss:$24 sps:$4 sm:$0xff]   ;;  %v3105_v22 = vld [vmem:[#allocation5 + $0x6c] ss:$24 sps:$4 sm:$0xff]   ;;  %s71_s0 = scalar_lea.vmem %s5515_s1, %s3765_s4 }
  0x34   :  { %v3103_v21 = vld [vmem:[#allocation5 + $0x64] ss:$24 sps:$4 sm:$0xff]   ;;  %s75_s15 = scalar_lea.vmem %s5515_s1, %s3767_s22  ;;  %v3107_v23 = vld [vmem:[#allocation5 + $0x60] ss:$24 sps:$4 sm:$0xff]   ;;  %v3109_v25 = vld [vmem:[#allocation5 + $0x34] ss:$24 sps:$4 sm:$0xff]  }
  0x35   :  { %421 = vmatpush1.bf16.msra.mxu0 %v3089_v11  ;;  %462 = vmatpush1.bf16.msra.mxu1 %v3090_v12  ;;  %s79_s18 = scalar_lea.vmem %s5515_s1, %s3769_s23  ;;  %v3108_v24 = vld [vmem:[#allocation5 + $0x68] ss:$24 sps:$4 sm:$0xff]   ;;  %v3111_v26 = vld [vmem:[#allocation5 + $0x3c] ss:$24 sps:$4 sm:$0xff]   ;;  %v64_v27 = vld [vmem:[%s63_s29] sm:$0x1] }
  0x36   :  { %422 = vmatprep.subr.bf16.mxu0 %v3091_v13  ;;  %463 = vmatprep.subr.bf16.mxu1 %v3093_v14  ;;  %s83_s2 = scalar_lea.vmem %s5515_s1, %s3771_s24  ;;  %v68_v28 = vld [vmem:[%s67_s10] sm:$0x1]  ;;  %v3113_v29 = vld [vmem:[#allocation5 + $0x30] ss:$24 sps:$4 sm:$0xff]   ;;  %65 = vst [vmem:[#allocation2] sm:$0x1] %v64_v27 }
  0x37   :  { %s87_s4 = scalar_lea.vmem %s5515_s1, %s3773_s25  ;;  %v3114_v30 = vld [vmem:[#allocation5 + $0x38] ss:$24 sps:$4 sm:$0xff]   ;;  %69 = vst [vmem:[#allocation2 + $0x1] sm:$0x1] %v68_v28  ;;  %v3115_v37 = vld [vmem:[#allocation5 + $0x4] ss:$24 sps:$4 sm:$0xff]  }
  0x38   :  { %s91_s22 = scalar_lea.vmem %s5515_s1, %s3775_s26  ;;  %v72_v31 = vld [vmem:[%s71_s0] sm:$0x1]  ;;  %v3117_v38 = vld [vmem:[#allocation5 + $0xc] ss:$24 sps:$4 sm:$0xff]   ;;  %v3120_v40 = vld [vmem:[#allocation5 + $0x8] ss:$24 sps:$4 sm:$0xff]  }
  0x39   :  { %423 = vmatpush1.bf16.msra.mxu0 %v3095_v15  ;;  %464 = vmatpush1.bf16.msra.mxu1 %v3096_v16  ;;  %v76_v32 = vld [vmem:[%s75_s15] sm:$0x1]  ;;  %73 = vst [vmem:[#allocation2 + $0x2] sm:$0x1] %v72_v31  ;;  %v3123_v41 = vld [vmem:[#allocation5 + $0x164] ss:$24 sps:$4 sm:$0xff]  }
  0x3a   :  { %424 = vmatprep.subr.bf16.mxu0 %v3097_v17  ;;  %465 = vmatprep.subr.bf16.mxu1 %v3099_v18  ;;  %v80_v33 = vld [vmem:[%s79_s18] sm:$0x1]  ;;  %77 = vst [vmem:[#allocation2 + $0x3] sm:$0x1] %v76_v32  ;;  %v3809_v42 = vld [vmem:[#allocation7 + $0x154] ss:$24 sps:$4 sm:$0xff]  }
  0x3b   :  { %81 = vst [vmem:[#allocation2 + $0x4] sm:$0x1] %v80_v33  ;;  %v84_v34 = vld [vmem:[%s83_s2] sm:$0x1]  ;;  %v3813_v46 = vld [vmem:[#allocation7 + $0x150] ss:$24 sps:$4 sm:$0xff]  }
  0x3c   :  { %v88_v35 = vld [vmem:[%s87_s4] sm:$0x1]  ;;  %85 = vst [vmem:[#allocation2 + $0x5] sm:$0x1] %v84_v34  ;;  %v3129_v47 = vld [vmem:[#allocation5 + $0x134] ss:$24 sps:$4 sm:$0xff]  }
  0x3d   :  { %425 = vmatpush1.bf16.msra.mxu0 %v3101_v19  ;;  %466 = vmatpush1.bf16.msra.mxu1 %v3102_v20  ;;  %v92_v36 = vld [vmem:[%s91_s22] sm:$0x1]  ;;  %89 = vst [vmem:[#allocation2 + $0x6] sm:$0x1] %v88_v35  ;;  %v3816_v48 = vld [vmem:[#allocation7 + $0x124] ss:$24 sps:$4 sm:$0xff]  }
  0x3e   :  { %426 = vmatprep.subr.bf16.mxu0 %v3103_v21  ;;  %467 = vmatprep.subr.bf16.mxu1 %v3105_v22  ;;  %93 = vst [vmem:[#allocation2 + $0x7] sm:$0x1] %v92_v36  ;;  %v3119_v39 = vld [vmem:[#allocation5] ss:$24 sps:$4 sm:$0xff]   ;;  %v3127_v49 = vld [vmem:[#allocation5 + $0x130] ss:$24 sps:$4 sm:$0xff]  }
  0x3f   :  { %v3121_v44 = vld [vmem:[#allocation5 + $0x160] ss:$24 sps:$4 sm:$0xff]   ;;  %v3135_v51 = vld [vmem:[#allocation5 + $0x104] ss:$24 sps:$4 sm:$0xff]   ;;  %v3824_v52 = vld [vmem:[#allocation7 + $0xf4] ss:$24 sps:$4 sm:$0xff]  }
  0x40   :  { %v3821_v50 = vld [vmem:[#allocation7 + $0x120] ss:$24 sps:$4 sm:$0xff]   ;;  %v3829_v54 = vld [vmem:[#allocation7 + $0xf0] ss:$24 sps:$4 sm:$0xff]   ;;  %v3141_v55 = vld [vmem:[#allocation5 + $0xd4] ss:$24 sps:$4 sm:$0xff]  }
  0x41   :  { %427 = vmatpush1.bf16.msra.mxu0 %v3107_v23  ;;  %468 = vmatpush1.bf16.msra.mxu1 %v3108_v24  ;;  %v3133_v53 = vld [vmem:[#allocation5 + $0x100] ss:$24 sps:$4 sm:$0xff]   ;;  %v3832_v56 = vld [vmem:[#allocation7 + $0xc4] ss:$24 sps:$4 sm:$0xff]   ;;  %v3139_v57 = vld [vmem:[#allocation5 + $0xd0] ss:$24 sps:$4 sm:$0xff]  }
  0x42   :  { %428 = vmatprep.subr.bf16.mxu0 %v3109_v25  ;;  %469 = vmatprep.subr.bf16.mxu1 %v3111_v26  ;;  %v3835_v58 = vld [vmem:[#allocation7 + $0xc0] ss:$24 sps:$4 sm:$0xff]   ;;  %v3147_v59 = vld [vmem:[#allocation5 + $0xa4] ss:$24 sps:$4 sm:$0xff]   ;;  %v3838_v60 = vld [vmem:[#allocation7 + $0x94] ss:$24 sps:$4 sm:$0xff]  }
  0x43   :  { %v3145_v61 = vld [vmem:[#allocation5 + $0xa0] ss:$24 sps:$4 sm:$0xff]   ;;  %v3840_v62 = vld [vmem:[#allocation7 + $0x90] ss:$24 sps:$4 sm:$0xff]   ;;  %v3153_v63 = vld [vmem:[#allocation5 + $0x74] ss:$24 sps:$4 sm:$0xff]  }
  0x44   :  { %v3844_v1 = vld [vmem:[#allocation7 + $0x64] ss:$24 sps:$4 sm:$0xff]   ;;  %v3151_v2 = vld [vmem:[#allocation5 + $0x70] ss:$24 sps:$4 sm:$0xff]   ;;  %v3847_v3 = vld [vmem:[#allocation7 + $0x60] ss:$24 sps:$4 sm:$0xff]  }
  0x45   :  { %429 = vmatpush1.bf16.msra.mxu0 %v3113_v29  ;;  %470 = vmatpush1.bf16.msra.mxu1 %v3114_v30  ;;  %v94_v43 = vld [vmem:[#allocation2] sm:$0xff]  ;;  %v3850_v5 = vld [vmem:[#allocation7 + $0x34] ss:$24 sps:$4 sm:$0xff]   ;;  %v3852_v7 = vld [vmem:[#allocation7 + $0x30] ss:$24 sps:$4 sm:$0xff]  }
  0x46   :  { %430 = vmatprep.subr.bf16.mxu0 %v3115_v37  ;;  %471 = vmatprep.subr.bf16.mxu1 %v3117_v38  ;;  %v3811_v45 = vpack.c.bf16 %v94_v43, %v94_v43  ;;  %v3159_v4 = vld [vmem:[#allocation5 + $0x44] ss:$24 sps:$4 sm:$0xff]   ;;  %v3157_v6 = vld [vmem:[#allocation5 + $0x40] ss:$24 sps:$4 sm:$0xff]   ;;  %v3165_v8 = vld [vmem:[#allocation5 + $0x14] ss:$24 sps:$4 sm:$0xff]  }
  0x47   :  { %v3856_v9 = vld [vmem:[#allocation7 + $0x4] ss:$24 sps:$4 sm:$0xff]   ;;  %v3163_v10 = vld [vmem:[#allocation5 + $0x10] ss:$24 sps:$4 sm:$0xff]   ;;  %v3859_v11 = vld [vmem:[#allocation7] ss:$24 sps:$4 sm:$0xff]  }
  0x48   :  { %v3862_v12 = vld [vmem:[#allocation7 + $0x2d4] ss:$24 sps:$4 sm:$0xff]   ;;  %v3866_v14 = vld [vmem:[#allocation7 + $0x2d0] ss:$24 sps:$4 sm:$0xff]   ;;  %v3871_v16 = vld [vmem:[#allocation7 + $0x2a4] ss:$24 sps:$4 sm:$0xff]  }
  0x49   :  { %431 = vmatpush1.bf16.msra.mxu0 %v3119_v39  ;;  %472 = vmatpush1.bf16.msra.mxu1 %v3120_v40  ;;  %v3864_v13 = vld [vmem:[#allocation7 + $0x15c] ss:$24 sps:$4 sm:$0xff]   ;;  %v3868_v15 = vld [vmem:[#allocation7 + $0x158] ss:$24 sps:$4 sm:$0xff]   ;;  %v3875_v17 = vld [vmem:[#allocation7 + $0x12c] ss:$24 sps:$4 sm:$0xff]  }
  0x4a   :  { %498 = vmatprep.subr.bf16.mxu0 %v3123_v41  ;;  %1156 = vmatprep.subr.bf16.mxu1 %v3809_v42  ;;  %5782 = vst [vmem:[#allocation12_spill] sm:$0xff] %v3868_v15  ;;  %5783 = vst [vmem:[#allocation13_spill] sm:$0xff] %v3875_v17  ;;  %v3878_v18 = vld [vmem:[#allocation7 + $0x2a0] ss:$24 sps:$4 sm:$0xff]   ;;  %v3886_v20 = vld [vmem:[#allocation7 + $0x274] ss:$24 sps:$4 sm:$0xff]  }
  0x4b   :  { %v3882_v19 = vld [vmem:[#allocation7 + $0x128] ss:$24 sps:$4 sm:$0xff]   ;;  %v3888_v21 = vld [vmem:[#allocation7 + $0xfc] ss:$24 sps:$4 sm:$0xff]   ;;  %v3893_v23 = vld [vmem:[#allocation7 + $0xf8] ss:$24 sps:$4 sm:$0xff]  }
  0x4c   :  { %490 = vmatmul.mubr.bf16.vlgmr.msra.gmra.mxu1 %v3811_v45  ;;  %449 = vmatmul.mubr.bf16.vlgmr.msra.gmra.mxu0 %v3811_v45  ;;  %5784 = vst [vmem:[#allocation14_spill] sm:$0xff] %v3882_v19  ;;  %5785 = vst [vmem:[#allocation15_spill] sm:$0xff] %v3888_v21  ;;  %v3891_v22 = vld [vmem:[#allocation7 + $0x270] ss:$24 sps:$4 sm:$0xff]   ;;  %v3897_v24 = vld [vmem:[#allocation7 + $0x244] ss:$24 sps:$4 sm:$0xff]  }
  0x4d   :  { %499 = vmatpush1.bf16.msra.mxu0 %v3121_v44  ;;  %1157 = vmatpush1.bf16.msra.mxu1 %v3813_v46  ;;  %5786 = vst [vmem:[#allocation16_spill] sm:$0xff] %v3893_v23  ;;  %v3901_v25 = vld [vmem:[#allocation7 + $0xcc] ss:$24 sps:$4 sm:$0xff]   ;;  %v3903_v26 = vld [vmem:[#allocation7 + $0x240] ss:$24 sps:$4 sm:$0xff]  }
  0x4e   :  { %500 = vmatprep.subr.bf16.mxu0 %v3129_v47  ;;  %1158 = vmatprep.subr.bf16.mxu1 %v3816_v48  ;;  %5787 = vst [vmem:[#allocation17_spill] sm:$0xff] %v3901_v25  ;;  %v3907_v27 = vld [vmem:[#allocation7 + $0xc8] ss:$24 sps:$4 sm:$0xff]   ;;  %v3911_v28 = vld [vmem:[#allocation7 + $0x214] ss:$24 sps:$4 sm:$0xff]  }
  0x4f   :  { %530 = vmatprep.mubr.bf16.mxu0 %v5523_v0  ;;  %1188 = vmatprep.mubr.bf16.mxu1 %v5523_v0  ;;  %5788 = vst [vmem:[#allocation18_spill] sm:$0xff] %v3907_v27  ;;  %v3913_v29 = vld [vmem:[#allocation7 + $0x9c] ss:$24 sps:$4 sm:$0xff]   ;;  %v3915_v30 = vld [vmem:[#allocation7 + $0x210] ss:$24 sps:$4 sm:$0xff]  }
  0x50   :  { %5789 = vst [vmem:[#allocation19_spill] sm:$0xff] %v3913_v29  ;;  %v3917_v31 = vld [vmem:[#allocation7 + $0x98] ss:$24 sps:$4 sm:$0xff]   ;;  %v3921_v32 = vld [vmem:[#allocation7 + $0x1e4] ss:$24 sps:$4 sm:$0xff]  }
  0x51   :  { %501 = vmatpush1.bf16.msra.mxu0 %v3127_v49  ;;  %1159 = vmatpush1.bf16.msra.mxu1 %v3821_v50  ;;  %5790 = vst [vmem:[#allocation20_spill] sm:$0xff] %v3917_v31  ;;  %v3925_v33 = vld [vmem:[#allocation7 + $0x6c] ss:$24 sps:$4 sm:$0xff]   ;;  %v3927_v34 = vld [vmem:[#allocation7 + $0x1e0] ss:$24 sps:$4 sm:$0xff]  }
  0x52   :  { %502 = vmatprep.subr.bf16.mxu0 %v3135_v51  ;;  %1160 = vmatprep.subr.bf16.mxu1 %v3824_v52  ;;  %5791 = vst [vmem:[#allocation21_spill] sm:$0xff] %v3925_v33  ;;  %v3931_v35 = vld [vmem:[#allocation7 + $0x68] ss:$24 sps:$4 sm:$0xff]   ;;  %v3935_v36 = vld [vmem:[#allocation7 + $0x1b4] ss:$24 sps:$4 sm:$0xff]  }
  0x53   :  { %5792 = vst [vmem:[#allocation22_spill] sm:$0xff] %v3931_v35  ;;  %v3937_v37 = vld [vmem:[#allocation7 + $0x3c] ss:$24 sps:$4 sm:$0xff]   ;;  %v3939_v38 = vld [vmem:[#allocation7 + $0x1b0] ss:$24 sps:$4 sm:$0xff]  }
  0x54   :  { %5793 = vst [vmem:[#allocation23_spill] sm:$0xff] %v3937_v37  ;;  %v3943_v39 = vld [vmem:[#allocation7 + $0x38] ss:$24 sps:$4 sm:$0xff]   ;;  %v3947_v40 = vld [vmem:[#allocation7 + $0x184] ss:$24 sps:$4 sm:$0xff]  }
  0x55   :  { %503 = vmatpush1.bf16.msra.mxu0 %v3133_v53  ;;  %1161 = vmatpush1.bf16.msra.mxu1 %v3829_v54  ;;  %5794 = vst [vmem:[#allocation24_spill] sm:$0xff] %v3943_v39  ;;  %v3949_v41 = vld [vmem:[#allocation7 + $0xc] ss:$24 sps:$4 sm:$0xff]   ;;  %v3951_v43 = vld [vmem:[#allocation7 + $0x180] ss:$24 sps:$4 sm:$0xff]  }
  0x56   :  { %504 = vmatprep.subr.bf16.mxu0 %v3141_v55  ;;  %1162 = vmatprep.subr.bf16.mxu1 %v3832_v56  ;;  %5795 = vst [vmem:[#allocation25_spill] sm:$0xff] %v3949_v41  ;;  %5796 = vst [vmem:[#allocation26_spill] sm:$0xff] %v3951_v43  ;;  %v3955_v44 = vld [vmem:[#allocation7 + $0x8] ss:$24 sps:$4 sm:$0xff]   ;;  %v3961_v47 = vld [vmem:[#allocation7 + $0x164] ss:$24 sps:$4 sm:$0xff]  }
  0x57   :  { %5797 = vst [vmem:[#allocation27_spill] sm:$0xff] %v3955_v44  ;;  %5799 = vst [vmem:[#allocation29_spill] sm:$0xff] %v3961_v47  ;;  %v3963_v49 = vld [vmem:[#allocation7 + $0x2d8] ss:$24 sps:$4 sm:$0xff]   ;;  %v3971_v53 = vld [vmem:[#allocation7 + $0x2ac] ss:$24 sps:$4 sm:$0xff]  }
  0x58   :  { %5800 = vst [vmem:[#allocation30_spill] sm:$0xff] %v3963_v49  ;;  %v3967_v51 = vld [vmem:[#allocation7 + $0x160] ss:$24 sps:$4 sm:$0xff]   ;;  %5802 = vst [vmem:[#allocation32_spill] sm:$0xff] %v3971_v53  ;;  %v3973_v55 = vld [vmem:[#allocation7 + $0x134] ss:$24 sps:$4 sm:$0xff]  }
  0x59   :  { %505 = vmatpush1.bf16.msra.mxu0 %v3139_v57  ;;  %1163 = vmatpush1.bf16.msra.mxu1 %v3835_v58  ;;  %5801 = vst [vmem:[#allocation31_spill] sm:$0xff] %v3967_v51  ;;  %5803 = vst [vmem:[#allocation33_spill] sm:$0xff] %v3973_v55  ;;  %v3978_v57 = vld [vmem:[#allocation7 + $0x2a8] ss:$24 sps:$4 sm:$0xff]  }
  0x5a   :  { %506 = vmatprep.subr.bf16.mxu0 %v3147_v59  ;;  %1164 = vmatprep.subr.bf16.mxu1 %v3838_v60  ;;  %5804 = vst [vmem:[#allocation34_spill] sm:$0xff] %v3978_v57  ;;  %v3980_v59 = vld [vmem:[#allocation7 + $0x130] ss:$24 sps:$4 sm:$0xff]  }
  0x5b   :  { %5805 = vst [vmem:[#allocation35_spill] sm:$0xff] %v3980_v59 }
  0x5d   :  { %507 = vmatpush1.bf16.msra.mxu0 %v3145_v61  ;;  %1165 = vmatpush1.bf16.msra.mxu1 %v3840_v62  ;;  %v3984_v61 = vld [vmem:[#allocation7 + $0x27c] ss:$24 sps:$4 sm:$0xff]  }
  0x5e   :  { %508 = vmatprep.subr.bf16.mxu0 %v3153_v63  ;;  %1166 = vmatprep.subr.bf16.mxu1 %v3844_v1  ;;  %5806 = vst [vmem:[#allocation36_spill] sm:$0xff] %v3984_v61  ;;  %v3986_v63 = vld [vmem:[#allocation7 + $0x104] ss:$24 sps:$4 sm:$0xff]  }
  0x5f   :  { %5807 = vst [vmem:[#allocation37_spill] sm:$0xff] %v3986_v63 }
  0x61   :  { %509 = vmatpush1.bf16.msra.mxu0 %v3151_v2  ;;  %1167 = vmatpush1.bf16.msra.mxu1 %v3847_v3  ;;  %v3991_v2 = vld [vmem:[#allocation7 + $0x278] ss:$24 sps:$4 sm:$0xff]  }
  0x62   :  { %510 = vmatprep.subr.bf16.mxu0 %v3159_v4  ;;  %1168 = vmatprep.subr.bf16.mxu1 %v3850_v5  ;;  %5808 = vst [vmem:[#allocation38_spill] sm:$0xff] %v3991_v2  ;;  %v3993_v4 = vld [vmem:[#allocation7 + $0x100] ss:$24 sps:$4 sm:$0xff]  }
  0x63   :  { %5809 = vst [vmem:[#allocation39_spill] sm:$0xff] %v3993_v4 }
  0x65   :  { %511 = vmatpush1.bf16.msra.mxu0 %v3157_v6  ;;  %1169 = vmatpush1.bf16.msra.mxu1 %v3852_v7  ;;  %v3997_v6 = vld [vmem:[#allocation7 + $0x24c] ss:$24 sps:$4 sm:$0xff]  }
  0x66   :  { %512 = vmatprep.subr.bf16.mxu0 %v3165_v8  ;;  %1170 = vmatprep.subr.bf16.mxu1 %v3856_v9  ;;  %5810 = vst [vmem:[#allocation40_spill] sm:$0xff] %v3997_v6  ;;  %v3999_v8 = vld [vmem:[#allocation7 + $0xd4] ss:$24 sps:$4 sm:$0xff]  }
  0x67   :  { %5811 = vst [vmem:[#allocation41_spill] sm:$0xff] %v3999_v8 }
  0x69   :  { %513 = vmatpush1.bf16.msra.mxu0 %v3163_v10  ;;  %1171 = vmatpush1.bf16.msra.mxu1 %v3859_v11  ;;  %v4003_v10 = vld [vmem:[#allocation7 + $0x248] ss:$24 sps:$4 sm:$0xff]  }
  0x6a   :  { %1172 = vmatprep.subr.bf16.mxu1 %v3862_v12  ;;  %1197 = vmatprep.subr.bf16.mxu0 %v3864_v13  ;;  %5812 = vst [vmem:[#allocation42_spill] sm:$0xff] %v4003_v10 }
  0x6c   :  { %531 = vmatmul.mubr.bf16.vlgmr.msra.gmra.mxu0 %v3811_v45  ;;  %v3959_v45 = vld [vmem:[#allocation7 + $0x2dc] ss:$24 sps:$4 sm:$0xff]  }
  0x6d   :  { %1173 = vmatpush2.bf16.msra.mxu1 %v3866_v14  ;;  %1198 = vmatpush1.bf16.msra.mxu0 %v3868_v15  ;;  %5798 = vst [vmem:[#allocation28_spill] sm:$0xff] %v3959_v45 }
  0x6e   :  { %1174 = vmatprep.subr.bf16.mxu1 %v3871_v16  ;;  %1199 = vmatprep.subr.bf16.mxu0 %v3875_v17 }
  0x6f   :  { %1229 = vmatprep.mubr.bf16.mxu0 %v5523_v0 }
  0x71   :  { %1175 = vmatpush2.bf16.msra.mxu1 %v3878_v18  ;;  %1200 = vmatpush1.bf16.msra.mxu0 %v3882_v19 }
  0x72   :  { %1176 = vmatprep.subr.bf16.mxu1 %v3886_v20  ;;  %1201 = vmatprep.subr.bf16.mxu0 %v3888_v21 }
  0x75   :  { %1177 = vmatpush2.bf16.msra.mxu1 %v3891_v22  ;;  %1202 = vmatpush1.bf16.msra.mxu0 %v3893_v23 }
  0x76   :  { %1178 = vmatprep.subr.bf16.mxu1 %v3897_v24  ;;  %1203 = vmatprep.subr.bf16.mxu0 %v3901_v25 }
  0x79   :  { %1179 = vmatpush2.bf16.msra.mxu1 %v3903_v26  ;;  %1204 = vmatpush1.bf16.msra.mxu0 %v3907_v27 }
  0x7a   :  { %1180 = vmatprep.subr.bf16.mxu1 %v3911_v28  ;;  %1205 = vmatprep.subr.bf16.mxu0 %v3913_v29 }
  0x7d   :  { %1181 = vmatpush2.bf16.msra.mxu1 %v3915_v30  ;;  %1206 = vmatpush1.bf16.msra.mxu0 %v3917_v31 }
  0x7e   :  { %1182 = vmatprep.subr.bf16.mxu1 %v3921_v32  ;;  %1207 = vmatprep.subr.bf16.mxu0 %v3925_v33 }
  0x81   :  { %1183 = vmatpush2.bf16.msra.mxu1 %v3927_v34  ;;  %1208 = vmatpush1.bf16.msra.mxu0 %v3931_v35 }
  0x82   :  { %1184 = vmatprep.subr.bf16.mxu1 %v3935_v36  ;;  %1209 = vmatprep.subr.bf16.mxu0 %v3937_v37 }
  0x85   :  { %1185 = vmatpush2.bf16.msra.mxu1 %v3939_v38  ;;  %1210 = vmatpush1.bf16.msra.mxu0 %v3943_v39 }
  0x86   :  { %1186 = vmatprep.subr.bf16.mxu1 %v3947_v40  ;;  %1211 = vmatprep.subr.bf16.mxu0 %v3949_v41 }
  0x89   :  { %1187 = vmatpush2.bf16.msra.mxu1 %v3951_v43  ;;  %1212 = vmatpush1.bf16.msra.mxu0 %v3955_v44 }
  0x8a   :  { %1213 = vmatprep.subr.bf16.mxu0 %v3959_v45  ;;  %1238 = vmatprep.subr.bf16.mxu1 %v3961_v47 }
  0x8c   :  { %1189 = vmatmul.mubr.bf16.vlgmr.msra.gmra.mxu1 %v5523_v0 }
  0x8d   :  { %1214 = vmatpush2.bf16.msra.mxu0 %v3963_v49  ;;  %1239 = vmatpush1.bf16.msra.mxu1 %v3967_v51  ;;  %v4017_v51 = vld [vmem:[#allocation7 + $0xa0] ss:$24 sps:$4 sm:$0xff]  }
  0x8e   :  { %1215 = vmatprep.subr.bf16.mxu0 %v3971_v53  ;;  %1240 = vmatprep.subr.bf16.mxu1 %v3973_v55  ;;  %v4011_v55 = vld [vmem:[#allocation7 + $0xa4] ss:$24 sps:$4 sm:$0xff]   ;;  %5817 = vst [vmem:[#allocation47_spill] sm:$0xff] %v4017_v51 }
  0x8f   :  { %1270 = vmatprep.mubr.bf16.mxu1 %v5523_v0  ;;  %v4005_v0 = vld [vmem:[#allocation7 + $0xd0] ss:$24 sps:$4 sm:$0xff]   ;;  %5815 = vst [vmem:[#allocation45_spill] sm:$0xff] %v4011_v55 }
  0x90   :  { %5813 = vst [vmem:[#allocation43_spill] sm:$0xff] %v4005_v0 }
  0x91   :  { %1216 = vmatpush2.bf16.msra.mxu0 %v3978_v57  ;;  %1241 = vmatpush1.bf16.msra.mxu1 %v3980_v59  ;;  %v4009_v59 = vld [vmem:[#allocation7 + $0x21c] ss:$24 sps:$4 sm:$0xff]  }
  0x92   :  { %1217 = vmatprep.subr.bf16.mxu0 %v3984_v61  ;;  %1242 = vmatprep.subr.bf16.mxu1 %v3986_v63  ;;  %5814 = vst [vmem:[#allocation44_spill] sm:$0xff] %v4009_v59  ;;  %v4015_v63 = vld [vmem:[#allocation7 + $0x218] ss:$24 sps:$4 sm:$0xff]  }
  0x93   :  { %5816 = vst [vmem:[#allocation46_spill] sm:$0xff] %v4015_v63 }
  0x95   :  { %1218 = vmatpush2.bf16.msra.mxu0 %v3991_v2  ;;  %1243 = vmatpush1.bf16.msra.mxu1 %v3993_v4  ;;  %v4021_v4 = vld [vmem:[#allocation7 + $0x1ec] ss:$24 sps:$4 sm:$0xff]  }
  0x96   :  { %1219 = vmatprep.subr.bf16.mxu0 %v3997_v6  ;;  %1244 = vmatprep.subr.bf16.mxu1 %v3999_v8  ;;  %5818 = vst [vmem:[#allocation48_spill] sm:$0xff] %v4021_v4  ;;  %v4023_v6 = vld [vmem:[#allocation7 + $0x74] ss:$24 sps:$4 sm:$0xff]   ;;  %v4027_v8 = vld [vmem:[#allocation7 + $0x1e8] ss:$24 sps:$4 sm:$0xff]  }
  0x97   :  { %5819 = vst [vmem:[#allocation49_spill] sm:$0xff] %v4023_v6  ;;  %5820 = vst [vmem:[#allocation50_spill] sm:$0xff] %v4027_v8 }
  0x99   :  { %1220 = vmatpush2.bf16.msra.mxu0 %v4003_v10  ;;  %1245 = vmatpush1.bf16.msra.mxu1 %v4005_v0  ;;  %v4029_v10 = vld [vmem:[#allocation7 + $0x70] ss:$24 sps:$4 sm:$0xff]   ;;  %v4033_v0 = vld [vmem:[#allocation7 + $0x1bc] ss:$24 sps:$4 sm:$0xff]  }
  0x9a   :  { %1221 = vmatprep.subr.bf16.mxu0 %v4009_v59  ;;  %1246 = vmatprep.subr.bf16.mxu1 %v4011_v55  ;;  %5821 = vst [vmem:[#allocation51_spill] sm:$0xff] %v4029_v10  ;;  %5822 = vst [vmem:[#allocation52_spill] sm:$0xff] %v4033_v0  ;;  %v4035_v59 = vld [vmem:[#allocation7 + $0x44] ss:$24 sps:$4 sm:$0xff]   ;;  %v4039_v55 = vld [vmem:[#allocation7 + $0x1b8] ss:$24 sps:$4 sm:$0xff]  }
  0x9b   :  { %5823 = vst [vmem:[#allocation53_spill] sm:$0xff] %v4035_v59  ;;  %5824 = vst [vmem:[#allocation54_spill] sm:$0xff] %v4039_v55 }
  0x9d   :  { %1222 = vmatpush2.bf16.msra.mxu0 %v4015_v63  ;;  %1247 = vmatpush1.bf16.msra.mxu1 %v4017_v51  ;;  %v4041_v63 = vld [vmem:[#allocation7 + $0x40] ss:$24 sps:$4 sm:$0xff]   ;;  %v4045_v51 = vld [vmem:[#allocation7 + $0x18c] ss:$24 sps:$4 sm:$0xff]  }
  0x9e   :  { %1223 = vmatprep.subr.bf16.mxu0 %v4021_v4  ;;  %1248 = vmatprep.subr.bf16.mxu1 %v4023_v6  ;;  %5825 = vst [vmem:[#allocation55_spill] sm:$0xff] %v4041_v63  ;;  %5826 = vst [vmem:[#allocation56_spill] sm:$0xff] %v4045_v51  ;;  %v4047_v4 = vld [vmem:[#allocation7 + $0x14] ss:$24 sps:$4 sm:$0xff]   ;;  %v4051_v6 = vld [vmem:[#allocation7 + $0x188] ss:$24 sps:$4 sm:$0xff]  }
  0x9f   :  { %5827 = vst [vmem:[#allocation57_spill] sm:$0xff] %v4047_v4  ;;  %5828 = vst [vmem:[#allocation58_spill] sm:$0xff] %v4051_v6 }
  0xa1   :  { %1224 = vmatpush2.bf16.msra.mxu0 %v4027_v8  ;;  %1249 = vmatpush1.bf16.msra.mxu1 %v4029_v10  ;;  %v4053_v8 = vld [vmem:[#allocation7 + $0x10] ss:$24 sps:$4 sm:$0xff]   ;;  %v4057_v10 = vld [vmem:[#allocation7 + $0x2e4] ss:$24 sps:$4 sm:$0xff]  }
  0xa2   :  { %1225 = vmatprep.subr.bf16.mxu0 %v4033_v0  ;;  %1250 = vmatprep.subr.bf16.mxu1 %v4035_v59  ;;  %5829 = vst [vmem:[#allocation59_spill] sm:$0xff] %v4053_v8  ;;  %5830 = vst [vmem:[#allocation60_spill] sm:$0xff] %v4057_v10  ;;  %v4061_v59 = vld [vmem:[#allocation7 + $0x2e0] ss:$24 sps:$4 sm:$0xff]  }
  0xa3   :  { %5831 = vst [vmem:[#allocation61_spill] sm:$0xff] %v4061_v59 }
  0xa5   :  { %1226 = vmatpush2.bf16.msra.mxu0 %v4039_v55  ;;  %1251 = vmatpush1.bf16.msra.mxu1 %v4041_v63  ;;  %v4064_v55 = vld [vmem:[#allocation7 + $0x2b4] ss:$24 sps:$4 sm:$0xff]   ;;  %v5833_v63 = vmov 0  }
  0xa6   :  { %1227 = vmatprep.subr.bf16.mxu0 %v4045_v51  ;;  %1252 = vmatprep.subr.bf16.mxu1 %v4047_v4  ;;  %5832 = vst [vmem:[#allocation62_spill] sm:$0xff] %v4064_v55  ;;  %v4069_v51 = vld [vmem:[#allocation7 + $0x2b0] ss:$24 sps:$4 sm:$0xff]   ;;  %v4073_v4 = vld [vmem:[#allocation7 + $0x284] ss:$24 sps:$4 sm:$0xff]  }
  0xa7   :  { %5834 = vst [vmem:[#allocation63_spill] sm:$0xff] %v4069_v51  ;;  %5835 = vst [vmem:[#allocation64_spill] sm:$0xff] %v4073_v4 }
  0xa9   :  { %1228 = vmatpush2.bf16.msra.mxu0 %v4051_v6  ;;  %1253 = vmatpush1.bf16.msra.mxu1 %v4053_v8  ;;  %v4081_v8 = vld [vmem:[#allocation7 + $0x254] ss:$24 sps:$4 sm:$0xff]  }
  0xaa   :  { %1254 = vmatprep.subr.bf16.mxu1 %v4057_v10  ;;  %1329 = vmatprep.subr.bf16.mxu0 %v3809_v42  ;;  %v4077_v10 = vld [vmem:[#allocation7 + $0x280] ss:$24 sps:$4 sm:$0xff]   ;;  %5837 = vst [vmem:[#allocation66_spill] sm:$0xff] %v4081_v8 }
  0xab   :  { %5836 = vst [vmem:[#allocation65_spill] sm:$0xff] %v4077_v10 }
  0xac   :  { %1230 = vmatmul.mubr.bf16.vlgmr.msra.gmra.mxu0 %v5833_v63 }
  0xad   :  { %1255 = vmatpush2.bf16.msra.mxu1 %v4061_v59  ;;  %1330 = vmatpush1.bf16.msra.mxu0 %v3813_v46  ;;  %v4085_v59 = vld [vmem:[#allocation7 + $0x250] ss:$24 sps:$4 sm:$0xff]  }
  0xae   :  { %1256 = vmatprep.subr.bf16.mxu1 %v4064_v55  ;;  %1331 = vmatprep.subr.bf16.mxu0 %v3816_v48  ;;  %5838 = vst [vmem:[#allocation67_spill] sm:$0xff] %v4085_v59  ;;  %v4089_v55 = vld [vmem:[#allocation7 + $0x224] ss:$24 sps:$4 sm:$0xff]  }
  0xaf   :  { %5839 = vst [vmem:[#allocation68_spill] sm:$0xff] %v4089_v55 }
  0xb1   :  { %1257 = vmatpush2.bf16.msra.mxu1 %v4069_v51  ;;  %1332 = vmatpush1.bf16.msra.mxu0 %v3821_v50  ;;  %v4093_v51 = vld [vmem:[#allocation7 + $0x220] ss:$24 sps:$4 sm:$0xff]  }
  0xb2   :  { %1258 = vmatprep.subr.bf16.mxu1 %v4073_v4  ;;  %1333 = vmatprep.subr.bf16.mxu0 %v3824_v52  ;;  %5840 = vst [vmem:[#allocation69_spill] sm:$0xff] %v4093_v51  ;;  %v4097_v4 = vld [vmem:[#allocation7 + $0x1f4] ss:$24 sps:$4 sm:$0xff]  }
  0xb5   :  { %1259 = vmatpush2.bf16.msra.mxu1 %v4077_v10  ;;  %1334 = vmatpush1.bf16.msra.mxu0 %v3829_v54  ;;  %v4101_v10 = vld [vmem:[#allocation7 + $0x1f0] ss:$24 sps:$4 sm:$0xff]  }
  0xb6   :  { %1260 = vmatprep.subr.bf16.mxu1 %v4081_v8  ;;  %1335 = vmatprep.subr.bf16.mxu0 %v3832_v56  ;;  %v4105_v8 = vld [vmem:[#allocation7 + $0x1c4] ss:$24 sps:$4 sm:$0xff]  }
  0xb9   :  { %1261 = vmatpush2.bf16.msra.mxu1 %v4085_v59  ;;  %1336 = vmatpush1.bf16.msra.mxu0 %v3835_v58  ;;  %v4109_v59 = vld [vmem:[#allocation7 + $0x1c0] ss:$24 sps:$4 sm:$0xff]  }
  0xba   :  { %1262 = vmatprep.subr.bf16.mxu1 %v4089_v55  ;;  %1337 = vmatprep.subr.bf16.mxu0 %v3838_v60  ;;  %v4113_v55 = vld [vmem:[#allocation7 + $0x194] ss:$24 sps:$4 sm:$0xff]  }
  0xbd   :  { %1263 = vmatpush2.bf16.msra.mxu1 %v4093_v51  ;;  %1338 = vmatpush1.bf16.msra.mxu0 %v3840_v62  ;;  %v4117_v51 = vld [vmem:[#allocation7 + $0x190] ss:$24 sps:$4 sm:$0xff]  }
  0xbe   :  { %1264 = vmatprep.subr.bf16.mxu1 %v4097_v4  ;;  %1339 = vmatprep.subr.bf16.mxu0 %v3844_v1 }
  0xc1   :  { %1265 = vmatpush2.bf16.msra.mxu1 %v4101_v10  ;;  %1340 = vmatpush1.bf16.msra.mxu0 %v3847_v3 }
  0xc2   :  { %1266 = vmatprep.subr.bf16.mxu1 %v4105_v8  ;;  %1341 = vmatprep.subr.bf16.mxu0 %v3850_v5 }
  0xc5   :  { %1267 = vmatpush2.bf16.msra.mxu1 %v4109_v59  ;;  %1342 = vmatpush1.bf16.msra.mxu0 %v3852_v7 }
  0xc6   :  { %1268 = vmatprep.subr.bf16.mxu1 %v4113_v55  ;;  %1343 = vmatprep.subr.bf16.mxu0 %v3856_v9 }
  0xc9   :  { %1269 = vmatpush2.bf16.msra.mxu1 %v4117_v51  ;;  %1344 = vmatpush1.bf16.msra.mxu0 %v3859_v11 }
  0xca   :  { %1370 = vmatprep.subr.bf16.mxu1 %v3864_v13  ;;  %1345 = vmatprep.subr.bf16.mxu0 %v3862_v12 }
  0xcc   :  { %1271 = vmatmul.mubr.bf16.vlgmr.msra.gmra.mxu1 %v5833_v63  ;;  %v5841_v63 = vld [vmem:[#allocation40_spill] sm:$0xff] }
  0xcd   :  { %1371 = vmatpush1.bf16.msra.mxu1 %v3868_v15  ;;  %1346 = vmatpush2.bf16.msra.mxu0 %v3866_v14 }
  0xce   :  { %1372 = vmatprep.subr.bf16.mxu1 %v3875_v17  ;;  %1347 = vmatprep.subr.bf16.mxu0 %v3871_v16 }
  0xd1   :  { %1373 = vmatpush1.bf16.msra.mxu1 %v3882_v19  ;;  %1348 = vmatpush2.bf16.msra.mxu0 %v3878_v18 }
  0xd2   :  { %1374 = vmatprep.subr.bf16.mxu1 %v3888_v21  ;;  %1349 = vmatprep.subr.bf16.mxu0 %v3886_v20 }
  0xd5   :  { %1375 = vmatpush1.bf16.msra.mxu1 %v3893_v23  ;;  %1350 = vmatpush2.bf16.msra.mxu0 %v3891_v22 }
  0xd6   :  { %1376 = vmatprep.subr.bf16.mxu1 %v3901_v25  ;;  %1351 = vmatprep.subr.bf16.mxu0 %v3897_v24 }
  0xd9   :  { %1377 = vmatpush1.bf16.msra.mxu1 %v3907_v27  ;;  %1352 = vmatpush2.bf16.msra.mxu0 %v3903_v26 }
  0xda   :  { %1378 = vmatprep.subr.bf16.mxu1 %v3913_v29  ;;  %1353 = vmatprep.subr.bf16.mxu0 %v3911_v28  ;;  %v146_v29 = vlaneseq }
  0xdd   :  { %1379 = vmatpush1.bf16.msra.mxu1 %v3917_v31  ;;  %1354 = vmatpush2.bf16.msra.mxu0 %v3915_v30 }
  0xde   :  { %1380 = vmatprep.subr.bf16.mxu1 %v3925_v33  ;;  %1355 = vmatprep.subr.bf16.mxu0 %v3921_v32 }
  0xe1   :  { %1381 = vmatpush1.bf16.msra.mxu1 %v3931_v35  ;;  %1356 = vmatpush2.bf16.msra.mxu0 %v3927_v34 }
  0xe2   :  { %1382 = vmatprep.subr.bf16.mxu1 %v3937_v37  ;;  %1357 = vmatprep.subr.bf16.mxu0 %v3935_v36  ;;  %v5846_v37 = vld [vmem:[#allocation50_spill] sm:$0xff] }
  0xe5   :  { %1383 = vmatpush1.bf16.msra.mxu1 %v3943_v39  ;;  %1358 = vmatpush2.bf16.msra.mxu0 %v3939_v38  ;;  %v5844_v39 = vld [vmem:[#allocation46_spill] sm:$0xff] }
  0xe6   :  { %1384 = vmatprep.subr.bf16.mxu1 %v3949_v41  ;;  %1359 = vmatprep.subr.bf16.mxu0 %v3947_v40  ;;  %v5842_v41 = vld [vmem:[#allocation42_spill] sm:$0xff] }
  0xe9   :  { %1385 = vmatpush1.bf16.msra.mxu1 %v3955_v44  ;;  %1360 = vmatpush2.bf16.msra.mxu0 %v3951_v43  ;;  %v5843_v44 = vld [vmem:[#allocation44_spill] sm:$0xff] }
  0xea   :  { %1386 = vmatprep.subr.bf16.mxu1 %v3959_v45  ;;  %1411 = vmatprep.subr.bf16.mxu0 %v3961_v47  ;;  %v5845_v45 = vld [vmem:[#allocation48_spill] sm:$0xff] }
  0xed   :  { %1387 = vmatpush2.bf16.msra.mxu1 %v3963_v49 }
  0xee   :  { %1388 = vmatprep.subr.bf16.mxu1 %v3971_v53  ;;  %v5847_v53 = vld [vmem:[#allocation54_spill] sm:$0xff] }
  0xf1   :  { %1389 = vmatpush2.bf16.msra.mxu1 %v3978_v57  ;;  %v5848_v57 = vld [vmem:[#allocation56_spill] sm:$0xff] }
  0xf2   :  { %1390 = vmatprep.subr.bf16.mxu1 %v3984_v61 }
  0xf5   :  { %1391 = vmatpush2.bf16.msra.mxu1 %v3991_v2 }
  0xf6   :  { %1392 = vmatprep.subr.bf16.mxu1 %v5841_v63 }
  0xf9   :  { %1393 = vmatpush2.bf16.msra.mxu1 %v5842_v41 }
  0xfa   :  { %1394 = vmatprep.subr.bf16.mxu1 %v5843_v44 }
  0xfd   :  { %1395 = vmatpush2.bf16.msra.mxu1 %v5844_v39 }
  0xfe   :  { %1396 = vmatprep.subr.bf16.mxu1 %v5845_v45 }
 0x101   :  { %1397 = vmatpush2.bf16.msra.mxu1 %v5846_v37 }
 0x102   :  { %1398 = vmatprep.subr.bf16.mxu1 %v4033_v0 }
 0x105   :  { %1399 = vmatpush2.bf16.msra.mxu1 %v5847_v53 }
 0x106   :  { %1400 = vmatprep.subr.bf16.mxu1 %v5848_v57 }
 0x109   :  { %1401 = vmatpush2.bf16.msra.mxu1 %v4051_v6 }
 0x10a   :  { %1534 = vmatprep.subr.bf16.mxu1 %v3809_v42  ;;  %v147_v42 = vshrl.u32 %v146_v29, 7 }
 0x10c   :  { %v491_v63 = vpop.f32.mrf.mxu1  ;;  %v450_v41 = vpop.f32.mrf.mxu0  ;;  %v152_v27 = vsub.s32 1, %v147_v42  ;;  %v160_v17 = vsub.s32 3, %v147_v42  ;;  %v156_v47 = vsub.s32 2, %v147_v42 }
 0x10e   :  { %v493_v2 = vpop.f32.mrf.mxu1  ;;  %v452_v44 = vpop.f32.mrf.mxu0 }
 0x110   :  { %v495_v61 = vpop.f32.mrf.mxu1  ;;  %v454_v39 = vpop.f32.mrf.mxu0 }
 0x111   :  { %v539_v61 = vld [vmem:[%s5519_s5] sm:$0x3f]  ;;  %v148_v39 = vsub.s32 0, %v147_v42 }
 0x112   :  { %v496_v49 = vpop.f32.mrf.mxu1  ;;  %v455_v45 = vpop.f32.mrf.mxu0  ;;  %v4187_v25 = vrot.slane %v539_v61, %v152_v27 }
 0x113   :  { %v144_v45 = vld [vmem:[%s5517_s3] sm:$0x3f]  ;;  %v4185_v49 = vrot.slane %v539_v61, %v148_v39 }
 0x12c   :  { %v4175_v35 = vpop.f32.mrf.mxu0 }
 0x12e   :  { %v4177_v37 = vpop.f32.mrf.mxu0 }
 0x130   :  { %v536_v0 = vpop.f32.mrf.mxu0 }
 0x131   :  { %v153_v0 = vrot.slane %v144_v45, %v152_v27  ;;  %v4199_v27 = vrot.slane %v539_v61, %v156_v47 }
 0x132   :  { %v537_v53 = vpop.f32.mrf.mxu0 }
 0x133   :  { %v149_v53 = vrot.slane %v144_v45, %v148_v39 }
 0x14c   :  { %v1190_v33 = vpop.f32.mrf.mxu1 }
 0x14d   :  { %v1191_v29 = vadd.f32 %v1190_v33, %v4185_v49  ;;  %v157_v33 = vrot.slane %v144_v45, %v156_v47 }
 0x14e   :  { %v1192_v57 = vpop.f32.mrf.mxu1 }
 0x14f   :  { %v1193_v23 = vadd.f32 %v1192_v57, %v4187_v25 }
 0x150   :  { %v1194_v31 = vpop.f32.mrf.mxu1 }
 0x151   :  { %v4189_v31 = vadd.f32 %v452_v44, %v153_v0  ;;  %v161_v44 = vrot.slane %v144_v45, %v160_v17 }
 0x152   :  { %v1195_v6 = vpop.f32.mrf.mxu1 }
 0x153   :  { %5849 = vst [vmem:[#allocation70_spill] sm:$0xff] %v4189_v31  ;;  %v4192_v6 = vadd.f32 %v450_v41, %v149_v53  ;;  %v5622_v19 = vrot.slane %v4189_v31, 7  ;;  %v4201_v41 = vrot.slane %v539_v61, %v160_v17  ;;  %v4203_v53 = vadd.f32 %v493_v2, %v161_v44 }
 0x154   :  { %v4206_v31 = vadd.f32 %v491_v63, %v157_v33  ;;  %v168_v63 = vsub.s32 5, %v147_v42 }
 0x155   :  { %5850 = vst [vmem:[#allocation71_spill] sm:$0xff] %v4192_v6  ;;  %v1279_v21 = vadd.f32 %v1191_v29, %v4192_v6  ;;  %v1280_v15 = vadd.f32 %v1193_v23, %v5622_v19  ;;  %5851 = vst [vmem:[#allocation72_spill] sm:$0xff] %v4203_v53 }
 0x156   :  { %5852 = vst [vmem:[#allocation73_spill] sm:$0xff] %v4206_v31 }
 0x157   :  { %v3000_v39 = vmul.f32 -1.442695, %v1279_v21  ;;  %v3001_v0 = vmul.f32 -1.442695, %v1280_v15  ;;  %v5627_v15 = vrot.slane %v4203_v53, 7  ;;  %v4215_v53 = vrot.slane %v539_v61, %v168_v63 }
 0x159   :  { %3289 = vpow2.f32 %v3000_v39 }
 0x15a   :  { %3291 = vpow2.f32 %v3001_v0 }
 0x166   :  { %v3290_v2 = vpop.eup %3289 }
 0x167   :  { %v3292_v44 = vpop.eup %3291  ;;  %v1287_v0 = vadd.f32 1.0, %v3290_v2 }
 0x16c   :  { %v1231_v43 = vpop.f32.mrf.mxu0 }
 0x16d   :  { %v1232_v29 = vadd.f32 %v1231_v43, %v4199_v27  ;;  %v1288_v43 = vadd.f32 1.0, %v3292_v44 }
 0x16e   :  { %v1233_v57 = vpop.f32.mrf.mxu0 }
 0x16f   :  { %v1234_v21 = vadd.f32 %v1233_v57, %v4201_v41  ;;  %v1293_v19 = vadd.f32 %v1232_v29, %v4206_v31  ;;  %v169_v29 = vrot.slane %v144_v45, %v168_v63 }
 0x170   :  { %v1235_v6 = vpop.f32.mrf.mxu0 }
 0x171   :  { %v1294_v17 = vadd.f32 %v1234_v21, %v5627_v15  ;;  %v3002_v47 = vmul.f32 -1.442695, %v1293_v19  ;;  %v164_v6 = vsub.s32 4, %v147_v42 }
 0x172   :  { %v1236_v23 = vpop.f32.mrf.mxu0 }
 0x173   :  { %v3003_v39 = vmul.f32 -1.442695, %v1294_v17  ;;  %3293 = vpow2.f32 %v3002_v47  ;;  %v4213_v57 = vrot.slane %v539_v61, %v164_v6  ;;  %v165_v31 = vrot.slane %v144_v45, %v164_v6 }
 0x174   :  { %v4218_v17 = vadd.f32 %v4177_v37, %v169_v29 }
 0x175   :  { %3295 = vpow2.f32 %v3003_v39  ;;  %v4222_v42 = vadd.f32 %v4175_v35, %v165_v31 }
 0x176   :  { %3297 = vrcp.f32 %v1287_v0  ;;  %v5628_v37 = vrot.slane %v4218_v17, 7 }
 0x177   :  { %3299 = vrcp.f32 %v1288_v43 }
 0x180   :  { %v3294_v33 = vpop.eup %3293 }
 0x181   :  { %v1301_v19 = vadd.f32 1.0, %v3294_v33 }
 0x182   :  { %v3296_v23 = vpop.eup %3295 }
 0x183   :  { %v1302_v47 = vadd.f32 1.0, %v3296_v23  ;;  %v3298_v2 = vpop.eup %3297  ;;  %3301 = vrcp.f32 %v1301_v19 }
 0x184   :  { %v3300_v45 = vpop.eup %3299 }
 0x185   :  { %3303 = vrcp.f32 %v1302_v47 }
 0x18c   :  { %v1272_v21 = vpop.f32.mrf.mxu1 }
 0x18d   :  { %v1273_v39 = vadd.f32 %v1272_v21, %v4213_v57 }
 0x18e   :  { %v1274_v44 = vpop.f32.mrf.mxu1 }
 0x18f   :  { %v1307_v0 = vmul.f32 %v3298_v2, %v1273_v39  ;;  %v1275_v43 = vadd.f32 %v1274_v44, %v4215_v53 }
 0x190   :  { %v1276_v61 = vpop.f32.mrf.mxu1  ;;  %v3302_v35 = vpop.eup %3301 }
 0x191   :  { %v1309_v63 = vadd.f32 %v1307_v0, %v4222_v42  ;;  %v1308_v6 = vmul.f32 %v3300_v45, %v1275_v43  ;;  %v1313_v23 = vsub.f32 1.0, %v3302_v35  ;;  %v1317_v44 = vmul.f32 0.0, %v3302_v35  ;;  %v5857_v35 = vld [vmem:[#allocation39_spill] sm:$0xff] }
 0x192   :  { %v1277_v33 = vpop.f32.mrf.mxu1  ;;  %v3304_v31 = vpop.eup %3303 }
 0x193   :  { %3305 = vtanh.f32 %v1309_v63  ;;  %v1310_v29 = vadd.f32 %v1308_v6, %v5628_v37  ;;  %v1314_v21 = vsub.f32 1.0, %v3304_v31  ;;  %v1318_v61 = vmul.f32 0.0, %v3304_v31  ;;  %v5853_v63 = vld [vmem:[#allocation31_spill] sm:$0xff]  ;;  %v5854_v6 = vld [vmem:[#allocation33_spill] sm:$0xff]  ;;  %v5913_v37 = vld [vmem:[#allocation70_spill] sm:$0xff] }
 0x194   :  { %v5855_v33 = vld [vmem:[#allocation35_spill] sm:$0xff]  ;;  %v5858_v31 = vld [vmem:[#allocation41_spill] sm:$0xff] }
 0x195   :  { %3307 = vtanh.f32 %v1310_v29  ;;  %v5856_v29 = vld [vmem:[#allocation37_spill] sm:$0xff] }
 0x1a0   :  { %v3306_v19 = vpop.eup %3305 }
 0x1a1   :  { %v1315_v39 = vmul.f32 %v3306_v19, %v1313_v23  ;;  %v5859_v23 = vld [vmem:[#allocation43_spill] sm:$0xff] }
 0x1a2   :  { %v3308_v2 = vpop.eup %3307  ;;  %v5891_v19 = vld [vmem:[#allocation23_spill] sm:$0xff] }
 0x1a3   :  { %v1316_v47 = vmul.f32 %v3308_v2, %v1314_v21  ;;  %v4229_v0 = vadd.f32 %v1317_v44, %v1315_v39  ;;  %v5892_v21 = vld [vmem:[#allocation24_spill] sm:$0xff]  ;;  %v5893_v39 = vld [vmem:[#allocation25_spill] sm:$0xff]  ;;  %v5894_v2 = vld [vmem:[#allocation27_spill] sm:$0xff] }
 0x1a4   :  { %v5895_v44 = vld [vmem:[#allocation28_spill] sm:$0xff] }
 0x1a5   :  { %v4231_v15 = vadd.f32 %v1318_v61, %v1316_v47  ;;  %v4237_v45 = vpack.c.bf16 %v4229_v0, %v4229_v0  ;;  %v5896_v47 = vld [vmem:[#allocation30_spill] sm:$0xff]  ;;  %v5897_v61 = vld [vmem:[#allocation32_spill] sm:$0xff] }
 0x1a7   :  { %v1328_v43 = vpack.c.bf16 %v4231_v15, %v4231_v15 }
 0x1a9   :  { %1361 = vmatprep.mubr.bf16.mxu0 %v1328_v43  ;;  %1402 = vmatprep.mubr.bf16.mxu1 %v1328_v43 }
 0x1aa   :  { %1362 = vmatmul.mubr.bf16.vlgmr.msra.gmra.mxu0 %v4237_v45  ;;  %1403 = vmatmul.mubr.bf16.vlgmr.msra.gmra.mxu1 %v4237_v45 }
 0x1ab   :  { %1412 = vmatpush1.bf16.msra.mxu0 %v5853_v63  ;;  %1443 = vmatprep.mubr.bf16.mxu0 %v1328_v43  ;;  %v5898_v43 = vld [vmem:[#allocation34_spill] sm:$0xff] }
 0x1ac   :  { %1413 = vmatprep.subr.bf16.mxu0 %v5854_v6  ;;  %1535 = vmatpush1.bf16.msra.mxu1 %v3813_v46  ;;  %v5860_v46 = vld [vmem:[#allocation45_spill] sm:$0xff] }
 0x1ad   :  { %1536 = vmatprep.subr.bf16.mxu1 %v3816_v48  ;;  %v5861_v48 = vld [vmem:[#allocation47_spill] sm:$0xff] }
 0x1af   :  { %1414 = vmatpush1.bf16.msra.mxu0 %v5855_v33 }
 0x1b0   :  { %1415 = vmatprep.subr.bf16.mxu0 %v5856_v29  ;;  %1537 = vmatpush1.bf16.msra.mxu1 %v3821_v50  ;;  %v5862_v50 = vld [vmem:[#allocation49_spill] sm:$0xff] }
 0x1b1   :  { %1538 = vmatprep.subr.bf16.mxu1 %v3824_v52  ;;  %v5863_v52 = vld [vmem:[#allocation51_spill] sm:$0xff] }
 0x1b3   :  { %1416 = vmatpush1.bf16.msra.mxu0 %v5857_v35 }
 0x1b4   :  { %1417 = vmatprep.subr.bf16.mxu0 %v5858_v31  ;;  %1539 = vmatpush1.bf16.msra.mxu1 %v3829_v54  ;;  %v5864_v54 = vld [vmem:[#allocation53_spill] sm:$0xff] }
 0x1b5   :  { %1540 = vmatprep.subr.bf16.mxu1 %v3832_v56  ;;  %v5865_v56 = vld [vmem:[#allocation55_spill] sm:$0xff] }
 0x1b7   :  { %1418 = vmatpush1.bf16.msra.mxu0 %v5859_v23 }
 0x1b8   :  { %1419 = vmatprep.subr.bf16.mxu0 %v5860_v46  ;;  %1541 = vmatpush1.bf16.msra.mxu1 %v3835_v58  ;;  %v5866_v58 = vld [vmem:[#allocation57_spill] sm:$0xff] }
 0x1b9   :  { %1542 = vmatprep.subr.bf16.mxu1 %v3838_v60  ;;  %v5867_v60 = vld [vmem:[#allocation59_spill] sm:$0xff] }
 0x1bb   :  { %1420 = vmatpush1.bf16.msra.mxu0 %v5861_v48 }
 0x1bc   :  { %1421 = vmatprep.subr.bf16.mxu0 %v5862_v50  ;;  %1543 = vmatpush1.bf16.msra.mxu1 %v3840_v62  ;;  %v5868_v62 = vld [vmem:[#allocation60_spill] sm:$0xff] }
 0x1bd   :  { %1544 = vmatprep.subr.bf16.mxu1 %v3844_v1  ;;  %v5869_v1 = vld [vmem:[#allocation61_spill] sm:$0xff] }
 0x1bf   :  { %1422 = vmatpush1.bf16.msra.mxu0 %v5863_v52 }
 0x1c0   :  { %1423 = vmatprep.subr.bf16.mxu0 %v5864_v54  ;;  %1545 = vmatpush1.bf16.msra.mxu1 %v3847_v3  ;;  %v5870_v3 = vld [vmem:[#allocation62_spill] sm:$0xff] }
 0x1c1   :  { %1546 = vmatprep.subr.bf16.mxu1 %v3850_v5  ;;  %v5871_v5 = vld [vmem:[#allocation63_spill] sm:$0xff] }
 0x1c3   :  { %1424 = vmatpush1.bf16.msra.mxu0 %v5865_v56 }
 0x1c4   :  { %1425 = vmatprep.subr.bf16.mxu0 %v5866_v58  ;;  %1547 = vmatpush1.bf16.msra.mxu1 %v3852_v7  ;;  %v5872_v7 = vld [vmem:[#allocation64_spill] sm:$0xff] }
 0x1c5   :  { %1548 = vmatprep.subr.bf16.mxu1 %v3856_v9  ;;  %v5873_v9 = vld [vmem:[#allocation65_spill] sm:$0xff] }
 0x1c7   :  { %1426 = vmatpush1.bf16.msra.mxu0 %v5867_v60 }
 0x1c8   :  { %1427 = vmatprep.subr.bf16.mxu0 %v5868_v62  ;;  %1549 = vmatpush1.bf16.msra.mxu1 %v3859_v11  ;;  %v5874_v11 = vld [vmem:[#allocation66_spill] sm:$0xff] }
 0x1c9   :  { %1550 = vmatprep.subr.bf16.mxu1 %v3862_v12  ;;  %v5875_v12 = vld [vmem:[#allocation67_spill] sm:$0xff] }
 0x1cb   :  { %1428 = vmatpush2.bf16.msra.mxu0 %v5869_v1 }
 0x1cc   :  { %1429 = vmatprep.subr.bf16.mxu0 %v5870_v3  ;;  %1551 = vmatpush2.bf16.msra.mxu1 %v3866_v14  ;;  %v5876_v14 = vld [vmem:[#allocation68_spill] sm:$0xff] }
 0x1cd   :  { %1552 = vmatprep.subr.bf16.mxu1 %v3871_v16  ;;  %v5877_v16 = vld [vmem:[#allocation69_spill] sm:$0xff] }
 0x1cf   :  { %1430 = vmatpush2.bf16.msra.mxu0 %v5871_v5 }
 0x1d0   :  { %1431 = vmatprep.subr.bf16.mxu0 %v5872_v7  ;;  %1553 = vmatpush2.bf16.msra.mxu1 %v3878_v18  ;;  %v5878_v18 = vld [vmem:[#allocation26_spill] sm:$0xff] }
 0x1d1   :  { %1554 = vmatprep.subr.bf16.mxu1 %v3886_v20  ;;  %v5879_v20 = vld [vmem:[#allocation29_spill] sm:$0xff] }
 0x1d3   :  { %1432 = vmatpush2.bf16.msra.mxu0 %v5873_v9 }
 0x1d4   :  { %1433 = vmatprep.subr.bf16.mxu0 %v5874_v11  ;;  %1555 = vmatpush2.bf16.msra.mxu1 %v3891_v22  ;;  %v5880_v22 = vld [vmem:[#allocation12_spill] sm:$0xff] }
 0x1d5   :  { %1556 = vmatprep.subr.bf16.mxu1 %v3897_v24  ;;  %v5881_v24 = vld [vmem:[#allocation13_spill] sm:$0xff] }
 0x1d7   :  { %1434 = vmatpush2.bf16.msra.mxu0 %v5875_v12 }
 0x1d8   :  { %1435 = vmatprep.subr.bf16.mxu0 %v5876_v14  ;;  %1557 = vmatpush2.bf16.msra.mxu1 %v3903_v26  ;;  %v5882_v26 = vld [vmem:[#allocation14_spill] sm:$0xff] }
 0x1d9   :  { %1558 = vmatprep.subr.bf16.mxu1 %v3911_v28  ;;  %v5883_v28 = vld [vmem:[#allocation15_spill] sm:$0xff] }
 0x1db   :  { %1436 = vmatpush2.bf16.msra.mxu0 %v5877_v16 }
 0x1dc   :  { %1437 = vmatprep.subr.bf16.mxu0 %v4097_v4  ;;  %1559 = vmatpush2.bf16.msra.mxu1 %v3915_v30  ;;  %v5884_v30 = vld [vmem:[#allocation16_spill] sm:$0xff] }
 0x1dd   :  { %1560 = vmatprep.subr.bf16.mxu1 %v3921_v32  ;;  %v5885_v32 = vld [vmem:[#allocation17_spill] sm:$0xff] }
 0x1df   :  { %1438 = vmatpush2.bf16.msra.mxu0 %v4101_v10 }
 0x1e0   :  { %1439 = vmatprep.subr.bf16.mxu0 %v4105_v8  ;;  %1561 = vmatpush2.bf16.msra.mxu1 %v3927_v34  ;;  %v5886_v34 = vld [vmem:[#allocation18_spill] sm:$0xff] }
 0x1e1   :  { %1562 = vmatprep.subr.bf16.mxu1 %v3935_v36  ;;  %v5888_v36 = vld [vmem:[#allocation20_spill] sm:$0xff] }
 0x1e3   :  { %1440 = vmatpush2.bf16.msra.mxu0 %v4109_v59 }
 0x1e4   :  { %1441 = vmatprep.subr.bf16.mxu0 %v4113_v55  ;;  %1563 = vmatpush2.bf16.msra.mxu1 %v3939_v38  ;;  %v5889_v38 = vld [vmem:[#allocation21_spill] sm:$0xff] }
 0x1e5   :  { %1564 = vmatprep.subr.bf16.mxu1 %v3947_v40  ;;  %v5890_v40 = vld [vmem:[#allocation22_spill] sm:$0xff] }
 0x1e7   :  { %1442 = vmatpush2.bf16.msra.mxu0 %v4117_v51 }
 0x1e8   :  { %1575 = vmatprep.subr.bf16.mxu0 %v3864_v13  ;;  %1565 = vmatpush2.bf16.msra.mxu1 %v5878_v18  ;;  %v5887_v13 = vld [vmem:[#allocation19_spill] sm:$0xff]  ;;  %v5900_v18 = vld [vmem:[#allocation38_spill] sm:$0xff] }
 0x1e9   :  { %1616 = vmatprep.subr.bf16.mxu1 %v5879_v20  ;;  %v5901_v20 = vld [vmem:[#allocation40_spill] sm:$0xff] }
 0x1ea   :  { %1444 = vmatmul.mubr.bf16.vlgmr.msra.gmra.mxu0 %v4237_v45  ;;  %v5899_v45 = vld [vmem:[#allocation36_spill] sm:$0xff] }
 0x1eb   :  { %1576 = vmatpush1.bf16.msra.mxu0 %v5880_v22  ;;  %v5902_v22 = vld [vmem:[#allocation42_spill] sm:$0xff] }
 0x1ec   :  { %1577 = vmatprep.subr.bf16.mxu0 %v5881_v24  ;;  %v5903_v24 = vld [vmem:[#allocation44_spill] sm:$0xff] }
 0x1ef   :  { %1578 = vmatpush1.bf16.msra.mxu0 %v5882_v26  ;;  %v5904_v26 = vld [vmem:[#allocation46_spill] sm:$0xff] }
 0x1f0   :  { %1579 = vmatprep.subr.bf16.mxu0 %v5883_v28  ;;  %v5905_v28 = vld [vmem:[#allocation48_spill] sm:$0xff] }
 0x1f3   :  { %1580 = vmatpush1.bf16.msra.mxu0 %v5884_v30  ;;  %v5906_v30 = vld [vmem:[#allocation50_spill] sm:$0xff] }
 0x1f4   :  { %1581 = vmatprep.subr.bf16.mxu0 %v5885_v32  ;;  %v5907_v32 = vld [vmem:[#allocation52_spill] sm:$0xff] }
 0x1f7   :  { %1582 = vmatpush1.bf16.msra.mxu0 %v5886_v34  ;;  %v5908_v34 = vld [vmem:[#allocation54_spill] sm:$0xff] }
 0x1f8   :  { %1583 = vmatprep.subr.bf16.mxu0 %v5887_v13  ;;  %v5909_v13 = vld [vmem:[#allocation56_spill] sm:$0xff] }
 0x1fb   :  { %1584 = vmatpush1.bf16.msra.mxu0 %v5888_v36  ;;  %v5910_v36 = vld [vmem:[#allocation58_spill] sm:$0xff] }
 0x1fc   :  { %1585 = vmatprep.subr.bf16.mxu0 %v5889_v38  ;;  %v4337_v38 = vld [vmem:[#allocation7 + $0x154] ss:$24 sps:$4 sm:$0xff]  }
 0x1fd   :  { %5911 = vst [vmem:[#allocation31_spill] sm:$0xff] %v4337_v38 }
 0x1ff   :  { %1586 = vmatpush1.bf16.msra.mxu0 %v5890_v40 }
 0x200   :  { %1587 = vmatprep.subr.bf16.mxu0 %v5891_v19 }
 0x203   :  { %1588 = vmatpush1.bf16.msra.mxu0 %v5892_v21 }
 0x204   :  { %1589 = vmatprep.subr.bf16.mxu0 %v5893_v39 }
 0x207   :  { %1590 = vmatpush1.bf16.msra.mxu0 %v5894_v2 }
 0x208   :  { %1591 = vmatprep.subr.bf16.mxu0 %v5895_v44 }
 0x20b   :  { %1592 = vmatpush2.bf16.msra.mxu0 %v5896_v47 }
 0x20c   :  { %1593 = vmatprep.subr.bf16.mxu0 %v5897_v61 }
 0x20f   :  { %1594 = vmatpush2.bf16.msra.mxu0 %v5898_v43 }
 0x210   :  { %1595 = vmatprep.subr.bf16.mxu0 %v5899_v45 }
 0x213   :  { %1596 = vmatpush2.bf16.msra.mxu0 %v5900_v18 }
 0x214   :  { %1597 = vmatprep.subr.bf16.mxu0 %v5901_v20 }
 0x217   :  { %1598 = vmatpush2.bf16.msra.mxu0 %v5902_v22  ;;  %v5912_v22 = vld [vmem:[#allocation71_spill] sm:$0xff] }
 0x218   :  { %1599 = vmatprep.subr.bf16.mxu0 %v5903_v24 }
 0x21b   :  { %1600 = vmatpush2.bf16.msra.mxu0 %v5904_v26 }
 0x21c   :  { %1601 = vmatprep.subr.bf16.mxu0 %v5905_v28 }
 0x21f   :  { %1602 = vmatpush2.bf16.msra.mxu0 %v5906_v30 }
 0x220   :  { %1603 = vmatprep.subr.bf16.mxu0 %v5907_v32 }
 0x223   :  { %1604 = vmatpush2.bf16.msra.mxu0 %v5908_v34 }
 0x224   :  { %1605 = vmatprep.subr.bf16.mxu0 %v5909_v13 }
 0x227   :  { %1606 = vmatpush2.bf16.msra.mxu0 %v5910_v36  ;;  %v5632_v36 = vrot.slane %v5913_v37, 5 }
 0x228   :  { %1737 = vmatprep.subr.bf16.mxu0 %v4337_v38 }
 0x26a   :  { %v1363_v40 = vpop.f32.mrf.mxu0  ;;  %v1404_v19 = vpop.f32.mrf.mxu1 }
 0x26b   :  { %v1364_v43 = vadd.f32 %v1363_v40, %v4185_v49  ;;  %v1405_v34 = vadd.f32 %v1404_v19, %v4199_v27 }
 0x26c   :  { %v1365_v21 = vpop.f32.mrf.mxu0  ;;  %v1406_v39 = vpop.f32.mrf.mxu1 }
 0x26d   :  { %v1366_v45 = vadd.f32 %v1365_v21, %v4187_v25  ;;  %v1454_v18 = vrot.slane %v1364_v43, 7  ;;  %v5914_v21 = vld [vmem:[#allocation73_spill] sm:$0xff]  ;;  %v5915_v43 = vld [vmem:[#allocation72_spill] sm:$0xff] }
 0x26e   :  { %v1367_v2 = vpop.f32.mrf.mxu0  ;;  %v1408_v44 = vpop.f32.mrf.mxu1 }
 0x26f   :  { %v1455_v20 = vrot.slane %v1366_v45, 7  ;;  %v1458_v24 = vadd.f32 %v1454_v18, %v5912_v22  ;;  %v1407_v44 = vadd.f32 %v1406_v39, %v4201_v41  ;;  %v5634_v45 = vrot.slane %v5915_v43, 5 }
 0x270   :  { %v1368_v47 = vpop.f32.mrf.mxu0  ;;  %v1409_v61 = vpop.f32.mrf.mxu1 }
 0x271   :  { %v1459_v38 = vadd.f32 %v1455_v20, %v5632_v36  ;;  %v3004_v13 = vmul.f32 -1.442695, %v1458_v24  ;;  %v1474_v47 = vrot.slane %v1405_v34, 7  ;;  %v1475_v40 = vrot.slane %v1407_v44, 7 }
 0x273   :  { %v3005_v2 = vmul.f32 -1.442695, %v1459_v38  ;;  %3309 = vpow2.f32 %v3004_v13  ;;  %v1478_v61 = vadd.f32 %v1474_v47, %v5914_v21  ;;  %v1479_v18 = vadd.f32 %v1475_v40, %v5634_v45 }
 0x275   :  { %3311 = vpow2.f32 %v3005_v2  ;;  %v3006_v22 = vmul.f32 -1.442695, %v1478_v61  ;;  %v3007_v37 = vmul.f32 -1.442695, %v1479_v18 }
 0x277   :  { %3313 = vpow2.f32 %v3006_v22 }
 0x278   :  { %3315 = vpow2.f32 %v3007_v37 }
 0x280   :  { %v3310_v20 = vpop.eup %3309 }
 0x281   :  { %v1466_v19 = vadd.f32 1.0, %v3310_v20 }
 0x282   :  { %v3312_v24 = vpop.eup %3311 }
 0x283   :  { %v1467_v13 = vadd.f32 1.0, %v3312_v24  ;;  %3317 = vrcp.f32 %v1466_v19 }
 0x284   :  { %v3314_v34 = vpop.eup %3313 }
 0x285   :  { %3319 = vrcp.f32 %v1467_v13  ;;  %v3316_v38 = vpop.eup %3315  ;;  %v1486_v2 = vadd.f32 1.0, %v3314_v34  ;;  %v5635_v13 = vrot.slane %v4218_v17, 5 }
 0x286   :  { %v1487_v36 = vadd.f32 1.0, %v3316_v38 }
 0x287   :  { %3321 = vrcp.f32 %v1486_v2 }
 0x288   :  { %3323 = vrcp.f32 %v1487_v36 }
 0x290   :  { %v3318_v61 = vpop.eup %3317 }
 0x292   :  { %v3320_v37 = vpop.eup %3319 }
 0x2aa   :  { %v1445_v39 = vpop.f32.mrf.mxu0 }
 0x2ab   :  { %v1446_v44 = vadd.f32 %v1445_v39, %v4213_v57  ;;  %v3322_v39 = vpop.eup %3321 }
 0x2ac   :  { %v1447_v47 = vpop.f32.mrf.mxu0  ;;  %v1504_v2 = vsub.f32 1.0, %v3322_v39 }
 0x2ad   :  { %v1494_v43 = vrot.slane %v1446_v44, 7  ;;  %v1448_v40 = vadd.f32 %v1447_v47, %v4215_v53  ;;  %v3324_v44 = vpop.eup %3323  ;;  %v1510_v47 = vrot.slane %v4229_v0, 7 }
 0x2ae   :  { %v1449_v18 = vpop.f32.mrf.mxu0 }
 0x2af   :  { %v1498_v22 = vmul.f32 %v3318_v61, %v1494_v43  ;;  %v1495_v20 = vrot.slane %v1448_v40, 7  ;;  %v1511_v40 = vrot.slane %v4231_v15, 7  ;;  %v1505_v61 = vsub.f32 1.0, %v3324_v44  ;;  %v4374_v15 = vld [vmem:[#allocation7 + $0x150] ss:$24 sps:$4 sm:$0xff]  }
 0x2b0   :  { %v1450_v24 = vpop.f32.mrf.mxu0  ;;  %v1514_v18 = vmul.f32 %v3322_v39, %v1510_v47  ;;  %v4382_v39 = vld [vmem:[#allocation7 + $0x120] ss:$24 sps:$4 sm:$0xff]   ;;  %v4506_v47 = vld [vmem:[#allocation7 + $0x12c] ss:$24 sps:$4 sm:$0xff]  }
 0x2b1   :  { %v1500_v19 = vadd.f32 %v1498_v22, %v4222_v42  ;;  %v1499_v34 = vmul.f32 %v3320_v37, %v1495_v20  ;;  %v1515_v45 = vmul.f32 %v3324_v44, %v1511_v40  ;;  %v4393_v44 = vld [vmem:[#allocation7 + $0xc4] ss:$24 sps:$4 sm:$0xff]   ;;  %5929 = vst [vmem:[#allocation59_spill] sm:$0xff] %v4506_v47 }
 0x2b2   :  { %v4518_v40 = vld [vmem:[#allocation7 + $0xcc] ss:$24 sps:$4 sm:$0xff]  }
 0x2b3   :  { %3325 = vtanh.f32 %v1500_v19  ;;  %v1501_v38 = vadd.f32 %v1499_v34, %v5635_v13  ;;  %5933 = vst [vmem:[#allocation63_spill] sm:$0xff] %v4518_v40  ;;  %v4548_v13 = vld [vmem:[#allocation7 + $0x2dc] ss:$24 sps:$4 sm:$0xff]  }
 0x2b4   :  { %5943 = vst [vmem:[#allocation13_spill] sm:$0xff] %v4548_v13 }
 0x2b5   :  { %3327 = vtanh.f32 %v1501_v38 }
 0x2c0   :  { %v3326_v43 = vpop.eup %3325 }
 0x2c1   :  { %v1506_v36 = vmul.f32 %v3326_v43, %v1504_v2  ;;  %v4512_v2 = vld [vmem:[#allocation7 + $0xfc] ss:$24 sps:$4 sm:$0xff]   ;;  %v4515_v43 = vld [vmem:[#allocation7 + $0xf8] ss:$24 sps:$4 sm:$0xff]  }
 0x2c2   :  { %v3328_v22 = vpop.eup %3327  ;;  %5931 = vst [vmem:[#allocation61_spill] sm:$0xff] %v4512_v2  ;;  %5932 = vst [vmem:[#allocation62_spill] sm:$0xff] %v4515_v43 }
 0x2c3   :  { %v1507_v24 = vmul.f32 %v3328_v22, %v1505_v61  ;;  %v4360_v20 = vadd.f32 %v1514_v18, %v1506_v36  ;;  %v4521_v61 = vld [vmem:[#allocation7 + $0xc8] ss:$24 sps:$4 sm:$0xff]   ;;  %v4524_v36 = vld [vmem:[#allocation7 + $0x9c] ss:$24 sps:$4 sm:$0xff]   ;;  %v4527_v18 = vld [vmem:[#allocation7 + $0x98] ss:$24 sps:$4 sm:$0xff]  }
 0x2c4   :  { %5934 = vst [vmem:[#allocation64_spill] sm:$0xff] %v4521_v61  ;;  %5935 = vst [vmem:[#allocation65_spill] sm:$0xff] %v4524_v36  ;;  %v4530_v22 = vld [vmem:[#allocation7 + $0x6c] ss:$24 sps:$4 sm:$0xff]  }
 0x2c5   :  { %v4362_v37 = vadd.f32 %v1515_v45, %v1507_v24  ;;  %v1524_v19 = vpack.c.bf16 %v4360_v20, %v4360_v20  ;;  %v4377_v45 = vld [vmem:[#allocation7 + $0x124] ss:$24 sps:$4 sm:$0xff]   ;;  %5936 = vst [vmem:[#allocation66_spill] sm:$0xff] %v4527_v18  ;;  %5937 = vst [vmem:[#allocation67_spill] sm:$0xff] %v4530_v22  ;;  %v4533_v24 = vld [vmem:[#allocation7 + $0x68] ss:$24 sps:$4 sm:$0xff]  }
 0x2c6   :  { %5938 = vst [vmem:[#allocation68_spill] sm:$0xff] %v4533_v24 }
 0x2c7   :  { %v1525_v0 = vpack.c.bf16 %v4362_v37, %v4362_v37  ;;  %v4368_v38 = vshrl.u32 %v1524_v19, 16  ;;  %v4536_v19 = vld [vmem:[#allocation7 + $0x3c] ss:$24 sps:$4 sm:$0xff]  }
 0x2c8   :  { %5939 = vst [vmem:[#allocation69_spill] sm:$0xff] %v4536_v19 }
 0x2c9   :  { %v1530_v34 = vshrl.u32 %v1525_v0, 16  ;;  %v4539_v0 = vld [vmem:[#allocation7 + $0x38] ss:$24 sps:$4 sm:$0xff]  }
 0x2ca   :  { %5940 = vst [vmem:[#allocation26_spill] sm:$0xff] %v4539_v0 }
 0x2cb   :  { %1566 = vmatprep.mubr.bf16.mxu1 %v1530_v34  ;;  %1607 = vmatprep.mubr.bf16.mxu0 %v1530_v34 }
 0x2cc   :  { %1567 = vmatmul.mubr.bf16.vlgmr.msra.gmra.mxu1 %v4368_v38  ;;  %1608 = vmatmul.mubr.bf16.vlgmr.msra.gmra.mxu0 %v4368_v38 }
 0x2cd   :  { %1617 = vmatpush1.bf16.msra.mxu1 %v5853_v63  ;;  %1648 = vmatprep.mubr.bf16.mxu1 %v1530_v34  ;;  %v4385_v63 = vld [vmem:[#allocation7 + $0xf4] ss:$24 sps:$4 sm:$0xff]  }
 0x2ce   :  { %1618 = vmatprep.subr.bf16.mxu1 %v5854_v6  ;;  %1738 = vmatpush1.bf16.msra.mxu0 %v4374_v15  ;;  %v4390_v6 = vld [vmem:[#allocation7 + $0xf0] ss:$24 sps:$4 sm:$0xff]   ;;  %v4542_v34 = vld [vmem:[#allocation7 + $0xc] ss:$24 sps:$4 sm:$0xff]  }
 0x2cf   :  { %1739 = vmatprep.subr.bf16.mxu0 %v4377_v45  ;;  %5941 = vst [vmem:[#allocation29_spill] sm:$0xff] %v4542_v34 }
 0x2d1   :  { %1619 = vmatpush1.bf16.msra.mxu1 %v5855_v33  ;;  %v4398_v33 = vld [vmem:[#allocation7 + $0xc0] ss:$24 sps:$4 sm:$0xff]  }
 0x2d2   :  { %1620 = vmatprep.subr.bf16.mxu1 %v5856_v29  ;;  %1740 = vmatpush1.bf16.msra.mxu0 %v4382_v39  ;;  %v4401_v29 = vld [vmem:[#allocation7 + $0x94] ss:$24 sps:$4 sm:$0xff]  }
 0x2d3   :  { %1741 = vmatprep.subr.bf16.mxu0 %v4385_v63 }
 0x2d5   :  { %1621 = vmatpush1.bf16.msra.mxu1 %v5857_v35  ;;  %v4406_v35 = vld [vmem:[#allocation7 + $0x90] ss:$24 sps:$4 sm:$0xff]  }
 0x2d6   :  { %1622 = vmatprep.subr.bf16.mxu1 %v5858_v31  ;;  %1742 = vmatpush1.bf16.msra.mxu0 %v4390_v6  ;;  %v4409_v31 = vld [vmem:[#allocation7 + $0x64] ss:$24 sps:$4 sm:$0xff]  }
 0x2d7   :  { %1743 = vmatprep.subr.bf16.mxu0 %v4393_v44 }
 0x2d9   :  { %1623 = vmatpush1.bf16.msra.mxu1 %v5859_v23  ;;  %v4414_v23 = vld [vmem:[#allocation7 + $0x60] ss:$24 sps:$4 sm:$0xff]  }
 0x2da   :  { %1624 = vmatprep.subr.bf16.mxu1 %v5860_v46  ;;  %1744 = vmatpush1.bf16.msra.mxu0 %v4398_v33  ;;  %v4417_v46 = vld [vmem:[#allocation7 + $0x34] ss:$24 sps:$4 sm:$0xff]  }
 0x2db   :  { %1745 = vmatprep.subr.bf16.mxu0 %v4401_v29 }
 0x2dd   :  { %1625 = vmatpush1.bf16.msra.mxu1 %v5861_v48  ;;  %v4422_v48 = vld [vmem:[#allocation7 + $0x30] ss:$24 sps:$4 sm:$0xff]  }
 0x2de   :  { %1626 = vmatprep.subr.bf16.mxu1 %v5862_v50  ;;  %1746 = vmatpush1.bf16.msra.mxu0 %v4406_v35  ;;  %v4425_v50 = vld [vmem:[#allocation7 + $0x4] ss:$24 sps:$4 sm:$0xff]  }
 0x2df   :  { %1747 = vmatprep.subr.bf16.mxu0 %v4409_v31 }
 0x2e1   :  { %1627 = vmatpush1.bf16.msra.mxu1 %v5863_v52  ;;  %v4430_v52 = vld [vmem:[#allocation7] ss:$24 sps:$4 sm:$0xff]  }
 0x2e2   :  { %1628 = vmatprep.subr.bf16.mxu1 %v5864_v54  ;;  %1748 = vmatpush1.bf16.msra.mxu0 %v4414_v23  ;;  %v4433_v54 = vld [vmem:[#allocation7 + $0x2d4] ss:$24 sps:$4 sm:$0xff]  }
 0x2e3   :  { %1749 = vmatprep.subr.bf16.mxu0 %v4417_v46 }
 0x2e5   :  { %1629 = vmatpush1.bf16.msra.mxu1 %v5865_v56  ;;  %v4438_v56 = vld [vmem:[#allocation7 + $0x2d0] ss:$24 sps:$4 sm:$0xff]  }
 0x2e6   :  { %1630 = vmatprep.subr.bf16.mxu1 %v5866_v58  ;;  %1750 = vmatpush1.bf16.msra.mxu0 %v4422_v48  ;;  %v4441_v58 = vld [vmem:[#allocation7 + $0x2a4] ss:$24 sps:$4 sm:$0xff]  }
 0x2e7   :  { %1751 = vmatprep.subr.bf16.mxu0 %v4425_v50 }
 0x2e9   :  { %1631 = vmatpush1.bf16.msra.mxu1 %v5867_v60  ;;  %v4446_v60 = vld [vmem:[#allocation7 + $0x2a0] ss:$24 sps:$4 sm:$0xff]  }
 0x2ea   :  { %1632 = vmatprep.subr.bf16.mxu1 %v5868_v62  ;;  %1752 = vmatpush1.bf16.msra.mxu0 %v4430_v52  ;;  %v4449_v62 = vld [vmem:[#allocation7 + $0x274] ss:$24 sps:$4 sm:$0xff]  }
 0x2eb   :  { %1753 = vmatprep.subr.bf16.mxu0 %v4433_v54 }
 0x2ed   :  { %1633 = vmatpush2.bf16.msra.mxu1 %v5869_v1  ;;  %v4454_v1 = vld [vmem:[#allocation7 + $0x270] ss:$24 sps:$4 sm:$0xff]  }
 0x2ee   :  { %1634 = vmatprep.subr.bf16.mxu1 %v5870_v3  ;;  %1754 = vmatpush2.bf16.msra.mxu0 %v4438_v56  ;;  %v4457_v3 = vld [vmem:[#allocation7 + $0x244] ss:$24 sps:$4 sm:$0xff]  }
 0x2ef   :  { %1755 = vmatprep.subr.bf16.mxu0 %v4441_v58  ;;  %5916 = vst [vmem:[#allocation33_spill] sm:$0xff] %v4457_v3 }
 0x2f1   :  { %1635 = vmatpush2.bf16.msra.mxu1 %v5871_v5  ;;  %v4462_v5 = vld [vmem:[#allocation7 + $0x240] ss:$24 sps:$4 sm:$0xff]  }
 0x2f2   :  { %1636 = vmatprep.subr.bf16.mxu1 %v5872_v7  ;;  %1756 = vmatpush2.bf16.msra.mxu0 %v4446_v60  ;;  %5917 = vst [vmem:[#allocation35_spill] sm:$0xff] %v4462_v5  ;;  %v4465_v7 = vld [vmem:[#allocation7 + $0x214] ss:$24 sps:$4 sm:$0xff]  }
 0x2f3   :  { %1757 = vmatprep.subr.bf16.mxu0 %v4449_v62  ;;  %5918 = vst [vmem:[#allocation37_spill] sm:$0xff] %v4465_v7 }
 0x2f5   :  { %1637 = vmatpush2.bf16.msra.mxu1 %v5873_v9  ;;  %v4470_v9 = vld [vmem:[#allocation7 + $0x210] ss:$24 sps:$4 sm:$0xff]  }
 0x2f6   :  { %1638 = vmatprep.subr.bf16.mxu1 %v5874_v11  ;;  %1758 = vmatpush2.bf16.msra.mxu0 %v4454_v1  ;;  %5919 = vst [vmem:[#allocation39_spill] sm:$0xff] %v4470_v9  ;;  %v4473_v11 = vld [vmem:[#allocation7 + $0x1e4] ss:$24 sps:$4 sm:$0xff]  }
 0x2f7   :  { %1759 = vmatprep.subr.bf16.mxu0 %v4457_v3  ;;  %5920 = vst [vmem:[#allocation41_spill] sm:$0xff] %v4473_v11 }
 0x2f9   :  { %1639 = vmatpush2.bf16.msra.mxu1 %v5875_v12  ;;  %v4478_v12 = vld [vmem:[#allocation7 + $0x1e0] ss:$24 sps:$4 sm:$0xff]  }
 0x2fa   :  { %1640 = vmatprep.subr.bf16.mxu1 %v5876_v14  ;;  %1760 = vmatpush2.bf16.msra.mxu0 %v4462_v5  ;;  %5921 = vst [vmem:[#allocation43_spill] sm:$0xff] %v4478_v12  ;;  %v4481_v14 = vld [vmem:[#allocation7 + $0x1b4] ss:$24 sps:$4 sm:$0xff]  }
 0x2fb   :  { %1761 = vmatprep.subr.bf16.mxu0 %v4465_v7  ;;  %5922 = vst [vmem:[#allocation45_spill] sm:$0xff] %v4481_v14 }
 0x2fd   :  { %1641 = vmatpush2.bf16.msra.mxu1 %v5877_v16  ;;  %v4489_v16 = vld [vmem:[#allocation7 + $0x184] ss:$24 sps:$4 sm:$0xff]  }
 0x2fe   :  { %1642 = vmatprep.subr.bf16.mxu1 %v4097_v4  ;;  %1762 = vmatpush2.bf16.msra.mxu0 %v4470_v9  ;;  %v4486_v4 = vld [vmem:[#allocation7 + $0x1b0] ss:$24 sps:$4 sm:$0xff]   ;;  %5924 = vst [vmem:[#allocation49_spill] sm:$0xff] %v4489_v16 }
 0x2ff   :  { %1763 = vmatprep.subr.bf16.mxu0 %v4473_v11  ;;  %5923 = vst [vmem:[#allocation47_spill] sm:$0xff] %v4486_v4 }
 0x301   :  { %1643 = vmatpush2.bf16.msra.mxu1 %v4101_v10  ;;  %v4496_v10 = vld [vmem:[#allocation7 + $0x180] ss:$24 sps:$4 sm:$0xff]  }
 0x302   :  { %1644 = vmatprep.subr.bf16.mxu1 %v4105_v8  ;;  %1764 = vmatpush2.bf16.msra.mxu0 %v4478_v12  ;;  %v4493_v8 = vld [vmem:[#allocation7 + $0x15c] ss:$24 sps:$4 sm:$0xff]   ;;  %5926 = vst [vmem:[#allocation53_spill] sm:$0xff] %v4496_v10 }
 0x303   :  { %1765 = vmatprep.subr.bf16.mxu0 %v4481_v14  ;;  %5925 = vst [vmem:[#allocation51_spill] sm:$0xff] %v4493_v8 }
 0x305   :  { %1645 = vmatpush2.bf16.msra.mxu1 %v4109_v59  ;;  %v4499_v59 = vld [vmem:[#allocation7 + $0x164] ss:$24 sps:$4 sm:$0xff]  }
 0x306   :  { %1646 = vmatprep.subr.bf16.mxu1 %v4113_v55  ;;  %1766 = vmatpush2.bf16.msra.mxu0 %v4486_v4  ;;  %5927 = vst [vmem:[#allocation55_spill] sm:$0xff] %v4499_v59  ;;  %v4503_v55 = vld [vmem:[#allocation7 + $0x158] ss:$24 sps:$4 sm:$0xff]  }
 0x307   :  { %1767 = vmatprep.subr.bf16.mxu0 %v4489_v16  ;;  %5928 = vst [vmem:[#allocation57_spill] sm:$0xff] %v4503_v55 }
 0x309   :  { %1647 = vmatpush2.bf16.msra.mxu1 %v4117_v51  ;;  %v4509_v51 = vld [vmem:[#allocation7 + $0x128] ss:$24 sps:$4 sm:$0xff]  }
 0x30a   :  { %1778 = vmatprep.subr.bf16.mxu1 %v4493_v8  ;;  %1768 = vmatpush2.bf16.msra.mxu0 %v4496_v10  ;;  %5930 = vst [vmem:[#allocation60_spill] sm:$0xff] %v4509_v51 }
 0x30b   :  { %1819 = vmatprep.subr.bf16.mxu0 %v4499_v59 }
 0x30c   :  { %1649 = vmatmul.mubr.bf16.vlgmr.msra.gmra.mxu1 %v4368_v38  ;;  %v4545_v38 = vld [vmem:[#allocation7 + $0x8] ss:$24 sps:$4 sm:$0xff]  }
 0x30d   :  { %1779 = vmatpush1.bf16.msra.mxu1 %v4503_v55  ;;  %5942 = vst [vmem:[#allocation12_spill] sm:$0xff] %v4545_v38 }
 0x30e   :  { %1780 = vmatprep.subr.bf16.mxu1 %v4506_v47 }
 0x311   :  { %1781 = vmatpush1.bf16.msra.mxu1 %v4509_v51 }
 0x312   :  { %1782 = vmatprep.subr.bf16.mxu1 %v4512_v2  ;;  %v5957_v2 = vld [vmem:[#allocation70_spill] sm:$0xff] }
 0x315   :  { %1783 = vmatpush1.bf16.msra.mxu1 %v4515_v43  ;;  %v5956_v43 = vld [vmem:[#allocation71_spill] sm:$0xff] }
 0x316   :  { %1784 = vmatprep.subr.bf16.mxu1 %v4518_v40 }
 0x319   :  { %1785 = vmatpush1.bf16.msra.mxu1 %v4521_v61 }
 0x31a   :  { %1786 = vmatprep.subr.bf16.mxu1 %v4524_v36 }
 0x31d   :  { %1787 = vmatpush1.bf16.msra.mxu1 %v4527_v18 }
 0x31e   :  { %1788 = vmatprep.subr.bf16.mxu1 %v4530_v22 }
 0x321   :  { %1789 = vmatpush1.bf16.msra.mxu1 %v4533_v24  ;;  %v4551_v24 = vld [vmem:[#allocation7 + $0x2d8] ss:$24 sps:$4 sm:$0xff]  }
 0x322   :  { %1790 = vmatprep.subr.bf16.mxu1 %v4536_v19  ;;  %5944 = vst [vmem:[#allocation14_spill] sm:$0xff] %v4551_v24  ;;  %v4554_v19 = vld [vmem:[#allocation7 + $0x2ac] ss:$24 sps:$4 sm:$0xff]  }
 0x323   :  { %5945 = vst [vmem:[#allocation15_spill] sm:$0xff] %v4554_v19 }
 0x325   :  { %1791 = vmatpush1.bf16.msra.mxu1 %v4539_v0  ;;  %v4557_v0 = vld [vmem:[#allocation7 + $0x2a8] ss:$24 sps:$4 sm:$0xff]  }
 0x326   :  { %1792 = vmatprep.subr.bf16.mxu1 %v4542_v34  ;;  %5946 = vst [vmem:[#allocation16_spill] sm:$0xff] %v4557_v0  ;;  %v4560_v34 = vld [vmem:[#allocation7 + $0x27c] ss:$24 sps:$4 sm:$0xff]  }
 0x327   :  { %5947 = vst [vmem:[#allocation17_spill] sm:$0xff] %v4560_v34 }
 0x329   :  { %1793 = vmatpush1.bf16.msra.mxu1 %v4545_v38  ;;  %v4563_v38 = vld [vmem:[#allocation7 + $0x278] ss:$24 sps:$4 sm:$0xff]  }
 0x32a   :  { %1794 = vmatprep.subr.bf16.mxu1 %v4548_v13  ;;  %5948 = vst [vmem:[#allocation18_spill] sm:$0xff] %v4563_v38  ;;  %v4566_v13 = vld [vmem:[#allocation7 + $0x24c] ss:$24 sps:$4 sm:$0xff]  }
 0x32b   :  { %5949 = vst [vmem:[#allocation19_spill] sm:$0xff] %v4566_v13 }
 0x32d   :  { %1795 = vmatpush2.bf16.msra.mxu1 %v4551_v24  ;;  %v4569_v24 = vld [vmem:[#allocation7 + $0x248] ss:$24 sps:$4 sm:$0xff]  }
 0x32e   :  { %1796 = vmatprep.subr.bf16.mxu1 %v4554_v19  ;;  %5950 = vst [vmem:[#allocation20_spill] sm:$0xff] %v4569_v24  ;;  %v4572_v19 = vld [vmem:[#allocation7 + $0x21c] ss:$24 sps:$4 sm:$0xff]  }
 0x32f   :  { %5951 = vst [vmem:[#allocation21_spill] sm:$0xff] %v4572_v19 }
 0x331   :  { %1797 = vmatpush2.bf16.msra.mxu1 %v4557_v0  ;;  %v5955_v0 = vld [vmem:[#allocation31_spill] sm:$0xff] }
 0x332   :  { %1798 = vmatprep.subr.bf16.mxu1 %v4560_v34  ;;  %v5953_v34 = vld [vmem:[#allocation56_spill] sm:$0xff] }
 0x335   :  { %1799 = vmatpush2.bf16.msra.mxu1 %v4563_v38  ;;  %v5952_v38 = vld [vmem:[#allocation54_spill] sm:$0xff] }
 0x336   :  { %1800 = vmatprep.subr.bf16.mxu1 %v4566_v13  ;;  %v5954_v13 = vld [vmem:[#allocation58_spill] sm:$0xff] }
 0x339   :  { %1801 = vmatpush2.bf16.msra.mxu1 %v4569_v24 }
 0x33a   :  { %1802 = vmatprep.subr.bf16.mxu1 %v4572_v19 }
 0x33d   :  { %1803 = vmatpush2.bf16.msra.mxu1 %v5904_v26 }
 0x33e   :  { %1804 = vmatprep.subr.bf16.mxu1 %v5905_v28 }
 0x341   :  { %1805 = vmatpush2.bf16.msra.mxu1 %v5906_v30 }
 0x342   :  { %1806 = vmatprep.subr.bf16.mxu1 %v5907_v32 }
 0x345   :  { %1807 = vmatpush2.bf16.msra.mxu1 %v5952_v38 }
 0x346   :  { %1808 = vmatprep.subr.bf16.mxu1 %v5953_v34 }
 0x349   :  { %1809 = vmatpush2.bf16.msra.mxu1 %v5954_v13  ;;  %v5683_v13 = vrot.slane %v5957_v2, 3 }
 0x34a   :  { %1938 = vmatprep.subr.bf16.mxu1 %v5955_v0 }
 0x38c   :  { %v1568_v24 = vpop.f32.mrf.mxu1  ;;  %v1609_v22 = vpop.f32.mrf.mxu0 }
 0x38d   :  { %v1569_v30 = vadd.f32 %v1568_v24, %v4185_v49  ;;  %v1610_v47 = vadd.f32 %v1609_v22, %v4199_v27 }
 0x38e   :  { %v1570_v18 = vpop.f32.mrf.mxu1  ;;  %v1611_v19 = vpop.f32.mrf.mxu0 }
 0x38f   :  { %v1571_v32 = vadd.f32 %v1570_v18, %v4187_v25  ;;  %v1659_v40 = vrot.slane %v1569_v30, 6 }
 0x390   :  { %v1572_v36 = vpop.f32.mrf.mxu1  ;;  %v1613_v26 = vpop.f32.mrf.mxu0 }
 0x391   :  { %v1660_v38 = vrot.slane %v1571_v32, 6  ;;  %v1663_v34 = vadd.f32 %v1659_v40, %v5956_v43  ;;  %v1679_v26 = vrot.slane %v1610_v47, 6 }
 0x392   :  { %v1573_v61 = vpop.f32.mrf.mxu1  ;;  %v1614_v28 = vpop.f32.mrf.mxu0 }
 0x393   :  { %v1664_v0 = vadd.f32 %v1660_v38, %v5683_v13  ;;  %v3008_v51 = vmul.f32 -1.442695, %v1663_v34  ;;  %v1612_v61 = vadd.f32 %v1611_v19, %v4201_v41  ;;  %v1683_v18 = vadd.f32 %v1679_v26, %v5914_v21  ;;  %v5958_v28 = vld [vmem:[#allocation72_spill] sm:$0xff] }
 0x394   :  { %v5685_v30 = vrot.slane %v5958_v28, 3 }
 0x395   :  { %v3009_v36 = vmul.f32 -1.442695, %v1664_v0  ;;  %3329 = vpow2.f32 %v3008_v51  ;;  %v1680_v24 = vrot.slane %v1612_v61, 6  ;;  %v3010_v32 = vmul.f32 -1.442695, %v1683_v18 }
 0x397   :  { %3331 = vpow2.f32 %v3009_v36  ;;  %v1684_v40 = vadd.f32 %v1680_v24, %v5685_v30 }
 0x398   :  { %3333 = vpow2.f32 %v3010_v32 }
 0x399   :  { %v3011_v2 = vmul.f32 -1.442695, %v1684_v40 }
 0x39b   :  { %3335 = vpow2.f32 %v3011_v2 }
 0x3a2   :  { %v3330_v38 = vpop.eup %3329 }
 0x3a3   :  { %v1671_v22 = vadd.f32 1.0, %v3330_v38 }
 0x3a4   :  { %v3332_v34 = vpop.eup %3331 }
 0x3a5   :  { %v1672_v51 = vadd.f32 1.0, %v3332_v34  ;;  %3337 = vrcp.f32 %v1671_v22  ;;  %v3334_v47 = vpop.eup %3333 }
 0x3a6   :  { %v1691_v36 = vadd.f32 1.0, %v3334_v47 }
 0x3a7   :  { %3339 = vrcp.f32 %v1672_v51  ;;  %v5686_v51 = vrot.slane %v4218_v17, 3 }
 0x3a8   :  { %v3336_v19 = vpop.eup %3335  ;;  %3341 = vrcp.f32 %v1691_v36 }
 0x3a9   :  { %v1692_v13 = vadd.f32 1.0, %v3336_v19 }
 0x3ab   :  { %3343 = vrcp.f32 %v1692_v13 }
 0x3b2   :  { %v3338_v18 = vpop.eup %3337 }
 0x3b4   :  { %v3340_v2 = vpop.eup %3339 }
 0x3cc   :  { %v1650_v0 = vpop.f32.mrf.mxu1 }
 0x3cd   :  { %v1651_v61 = vadd.f32 %v1650_v0, %v4213_v57  ;;  %v3342_v0 = vpop.eup %3341 }
 0x3ce   :  { %v1652_v26 = vpop.f32.mrf.mxu1  ;;  %v1709_v36 = vsub.f32 1.0, %v3342_v0 }
 0x3cf   :  { %v1699_v28 = vrot.slane %v1651_v61, 6  ;;  %v1653_v24 = vadd.f32 %v1652_v26, %v4215_v53  ;;  %v3344_v61 = vpop.eup %3343  ;;  %v1715_v26 = vrot.slane %v4360_v20, 7 }
 0x3d0   :  { %v1654_v40 = vpop.f32.mrf.mxu1 }
 0x3d1   :  { %v1703_v32 = vmul.f32 %v3338_v18, %v1699_v28  ;;  %v1700_v38 = vrot.slane %v1653_v24, 6  ;;  %v1716_v24 = vrot.slane %v4362_v37, 7  ;;  %v1710_v18 = vsub.f32 1.0, %v3344_v61  ;;  %v4615_v37 = vld [vmem:[#allocation7 + $0x160] ss:$24 sps:$4 sm:$0xff]  }
 0x3d2   :  { %v1655_v34 = vpop.f32.mrf.mxu1  ;;  %v1719_v40 = vmul.f32 %v3342_v0, %v1715_v26  ;;  %v4623_v0 = vld [vmem:[#allocation7 + $0x130] ss:$24 sps:$4 sm:$0xff]   ;;  %v4631_v26 = vld [vmem:[#allocation7 + $0x100] ss:$24 sps:$4 sm:$0xff]  }
 0x3d3   :  { %v1705_v22 = vadd.f32 %v1703_v32, %v4222_v42  ;;  %v1704_v47 = vmul.f32 %v3340_v2, %v1700_v38  ;;  %v1720_v30 = vmul.f32 %v3344_v61, %v1716_v24  ;;  %v4626_v61 = vld [vmem:[#allocation7 + $0x104] ss:$24 sps:$4 sm:$0xff]  }
 0x3d4   :  { %v4642_v24 = vld [vmem:[#allocation7 + $0xa4] ss:$24 sps:$4 sm:$0xff]  }
 0x3d5   :  { %3345 = vtanh.f32 %v1705_v22  ;;  %v1706_v19 = vadd.f32 %v1704_v47, %v5686_v51  ;;  %v4679_v51 = vld [vmem:[#allocation7 + $0x2e0] ss:$24 sps:$4 sm:$0xff]  }
 0x3d6   :  { %5962 = vst [vmem:[#allocation25_spill] sm:$0xff] %v4679_v51 }
 0x3d7   :  { %3347 = vtanh.f32 %v1706_v19 }
 0x3e2   :  { %v3346_v28 = vpop.eup %3345 }
 0x3e3   :  { %v1711_v13 = vmul.f32 %v3346_v28, %v1709_v36  ;;  %v4634_v36 = vld [vmem:[#allocation7 + $0xd4] ss:$24 sps:$4 sm:$0xff]   ;;  %v4639_v28 = vld [vmem:[#allocation7 + $0xd0] ss:$24 sps:$4 sm:$0xff]  }
 0x3e4   :  { %v3348_v32 = vpop.eup %3347 }
 0x3e5   :  { %v1712_v34 = vmul.f32 %v3348_v32, %v1710_v18  ;;  %v4603_v38 = vadd.f32 %v1719_v40, %v1711_v13  ;;  %v4647_v18 = vld [vmem:[#allocation7 + $0xa0] ss:$24 sps:$4 sm:$0xff]   ;;  %v4650_v13 = vld [vmem:[#allocation7 + $0x74] ss:$24 sps:$4 sm:$0xff]   ;;  %v4655_v40 = vld [vmem:[#allocation7 + $0x70] ss:$24 sps:$4 sm:$0xff]  }
 0x3e6   :  { %v4658_v32 = vld [vmem:[#allocation7 + $0x44] ss:$24 sps:$4 sm:$0xff]  }
 0x3e7   :  { %v4605_v2 = vadd.f32 %v1720_v30, %v1712_v34  ;;  %v1729_v22 = vpack.c.bf16 %v4603_v38, %v4603_v38  ;;  %v4618_v30 = vld [vmem:[#allocation7 + $0x134] ss:$24 sps:$4 sm:$0xff]   ;;  %v4663_v34 = vld [vmem:[#allocation7 + $0x40] ss:$24 sps:$4 sm:$0xff]  }
 0x3e9   :  { %v1730_v20 = vpack.c.bf16 %v4605_v2, %v4605_v2  ;;  %v4611_v19 = vrot.slane %v1729_v22, 1  ;;  %v4666_v22 = vld [vmem:[#allocation7 + $0x14] ss:$24 sps:$4 sm:$0xff]  }
 0x3ea   :  { %5959 = vst [vmem:[#allocation22_spill] sm:$0xff] %v4666_v22 }
 0x3eb   :  { %v1734_v47 = vrot.slane %v1730_v20, 1  ;;  %v4671_v20 = vld [vmem:[#allocation7 + $0x10] ss:$24 sps:$4 sm:$0xff]  }
 0x3ec   :  { %5960 = vst [vmem:[#allocation23_spill] sm:$0xff] %v4671_v20 }
 0x3ed   :  { %1769 = vmatprep.mubr.bf16.mxu0 %v1734_v47  ;;  %1810 = vmatprep.mubr.bf16.mxu1 %v1734_v47 }
 0x3ee   :  { %1770 = vmatmul.mubr.bf16.vlgmr.msra.gmra.mxu0 %v4611_v19  ;;  %1811 = vmatmul.mubr.bf16.vlgmr.msra.gmra.mxu1 %v4611_v19 }
 0x3ef   :  { %1820 = vmatpush1.bf16.msra.mxu0 %v4615_v37  ;;  %1851 = vmatprep.mubr.bf16.mxu0 %v1734_v47  ;;  %v4674_v47 = vld [vmem:[#allocation7 + $0x2e4] ss:$24 sps:$4 sm:$0xff]  }
 0x3f0   :  { %1821 = vmatprep.subr.bf16.mxu0 %v4618_v30  ;;  %1939 = vmatpush1.bf16.msra.mxu1 %v4374_v15  ;;  %5961 = vst [vmem:[#allocation24_spill] sm:$0xff] %v4674_v47 }
 0x3f1   :  { %1940 = vmatprep.subr.bf16.mxu1 %v4377_v45 }
 0x3f3   :  { %1822 = vmatpush1.bf16.msra.mxu0 %v4623_v0 }
 0x3f4   :  { %1823 = vmatprep.subr.bf16.mxu0 %v4626_v61  ;;  %1941 = vmatpush1.bf16.msra.mxu1 %v4382_v39 }
 0x3f5   :  { %1942 = vmatprep.subr.bf16.mxu1 %v4385_v63 }
 0x3f7   :  { %1824 = vmatpush1.bf16.msra.mxu0 %v4631_v26 }
 0x3f8   :  { %1825 = vmatprep.subr.bf16.mxu0 %v4634_v36  ;;  %1943 = vmatpush1.bf16.msra.mxu1 %v4390_v6 }
 0x3f9   :  { %1944 = vmatprep.subr.bf16.mxu1 %v4393_v44 }
 0x3fb   :  { %1826 = vmatpush1.bf16.msra.mxu0 %v4639_v28 }
 0x3fc   :  { %1827 = vmatprep.subr.bf16.mxu0 %v4642_v24  ;;  %1945 = vmatpush1.bf16.msra.mxu1 %v4398_v33 }
 0x3fd   :  { %1946 = vmatprep.subr.bf16.mxu1 %v4401_v29 }
 0x3ff   :  { %1828 = vmatpush1.bf16.msra.mxu0 %v4647_v18 }
 0x400   :  { %1829 = vmatprep.subr.bf16.mxu0 %v4650_v13  ;;  %1947 = vmatpush1.bf16.msra.mxu1 %v4406_v35 }
 0x401   :  { %1948 = vmatprep.subr.bf16.mxu1 %v4409_v31 }
 0x403   :  { %1830 = vmatpush1.bf16.msra.mxu0 %v4655_v40 }
 0x404   :  { %1831 = vmatprep.subr.bf16.mxu0 %v4658_v32  ;;  %1949 = vmatpush1.bf16.msra.mxu1 %v4414_v23 }
 0x405   :  { %1950 = vmatprep.subr.bf16.mxu1 %v4417_v46 }
 0x407   :  { %1832 = vmatpush1.bf16.msra.mxu0 %v4663_v34 }
 0x408   :  { %1833 = vmatprep.subr.bf16.mxu0 %v4666_v22  ;;  %1951 = vmatpush1.bf16.msra.mxu1 %v4422_v48  ;;  %v4682_v22 = vld [vmem:[#allocation7 + $0x2b4] ss:$24 sps:$4 sm:$0xff]  }
 0x409   :  { %1952 = vmatprep.subr.bf16.mxu1 %v4425_v50  ;;  %5963 = vst [vmem:[#allocation27_spill] sm:$0xff] %v4682_v22 }
 0x40b   :  { %1834 = vmatpush1.bf16.msra.mxu0 %v4671_v20  ;;  %v4687_v20 = vld [vmem:[#allocation7 + $0x2b0] ss:$24 sps:$4 sm:$0xff]  }
 0x40c   :  { %1835 = vmatprep.subr.bf16.mxu0 %v4674_v47  ;;  %1953 = vmatpush1.bf16.msra.mxu1 %v4430_v52  ;;  %5964 = vst [vmem:[#allocation28_spill] sm:$0xff] %v4687_v20  ;;  %v4690_v47 = vld [vmem:[#allocation7 + $0x284] ss:$24 sps:$4 sm:$0xff]  }
 0x40d   :  { %1954 = vmatprep.subr.bf16.mxu1 %v4433_v54  ;;  %5965 = vst [vmem:[#allocation30_spill] sm:$0xff] %v4690_v47 }
 0x40f   :  { %1836 = vmatpush2.bf16.msra.mxu0 %v4679_v51  ;;  %v4695_v51 = vld [vmem:[#allocation7 + $0x280] ss:$24 sps:$4 sm:$0xff]  }
 0x410   :  { %1837 = vmatprep.subr.bf16.mxu0 %v4682_v22  ;;  %1955 = vmatpush2.bf16.msra.mxu1 %v4438_v56  ;;  %5966 = vst [vmem:[#allocation32_spill] sm:$0xff] %v4695_v51  ;;  %v4698_v22 = vld [vmem:[#allocation7 + $0x254] ss:$24 sps:$4 sm:$0xff]  }
 0x411   :  { %1956 = vmatprep.subr.bf16.mxu1 %v4441_v58  ;;  %5967 = vst [vmem:[#allocation34_spill] sm:$0xff] %v4698_v22 }
 0x413   :  { %1838 = vmatpush2.bf16.msra.mxu0 %v4687_v20  ;;  %v4703_v20 = vld [vmem:[#allocation7 + $0x250] ss:$24 sps:$4 sm:$0xff]  }
 0x414   :  { %1839 = vmatprep.subr.bf16.mxu0 %v4690_v47  ;;  %1957 = vmatpush2.bf16.msra.mxu1 %v4446_v60  ;;  %5968 = vst [vmem:[#allocation36_spill] sm:$0xff] %v4703_v20  ;;  %v4706_v47 = vld [vmem:[#allocation7 + $0x224] ss:$24 sps:$4 sm:$0xff]  }
 0x415   :  { %1958 = vmatprep.subr.bf16.mxu1 %v4449_v62  ;;  %5969 = vst [vmem:[#allocation38_spill] sm:$0xff] %v4706_v47 }
 0x417   :  { %1840 = vmatpush2.bf16.msra.mxu0 %v4695_v51  ;;  %v4711_v51 = vld [vmem:[#allocation7 + $0x220] ss:$24 sps:$4 sm:$0xff]  }
 0x418   :  { %1841 = vmatprep.subr.bf16.mxu0 %v4698_v22  ;;  %1959 = vmatpush2.bf16.msra.mxu1 %v4454_v1  ;;  %5970 = vst [vmem:[#allocation40_spill] sm:$0xff] %v4711_v51  ;;  %v4714_v22 = vld [vmem:[#allocation7 + $0x1f4] ss:$24 sps:$4 sm:$0xff]  }
 0x419   :  { %1960 = vmatprep.subr.bf16.mxu1 %v4457_v3  ;;  %5971 = vst [vmem:[#allocation42_spill] sm:$0xff] %v4714_v22 }
 0x41b   :  { %1842 = vmatpush2.bf16.msra.mxu0 %v4703_v20  ;;  %v4719_v20 = vld [vmem:[#allocation7 + $0x1f0] ss:$24 sps:$4 sm:$0xff]  }
 0x41c   :  { %1843 = vmatprep.subr.bf16.mxu0 %v4706_v47  ;;  %1961 = vmatpush2.bf16.msra.mxu1 %v4462_v5  ;;  %5972 = vst [vmem:[#allocation44_spill] sm:$0xff] %v4719_v20  ;;  %v4722_v47 = vld [vmem:[#allocation7 + $0x1c4] ss:$24 sps:$4 sm:$0xff]  }
 0x41d   :  { %1962 = vmatprep.subr.bf16.mxu1 %v4465_v7  ;;  %5973 = vst [vmem:[#allocation46_spill] sm:$0xff] %v4722_v47  ;;  %v6008_v7 = vld [vmem:[#allocation70_spill] sm:$0xff] }
 0x41f   :  { %1844 = vmatpush2.bf16.msra.mxu0 %v4711_v51  ;;  %v4727_v51 = vld [vmem:[#allocation7 + $0x1c0] ss:$24 sps:$4 sm:$0xff]  }
 0x420   :  { %1845 = vmatprep.subr.bf16.mxu0 %v4714_v22  ;;  %1963 = vmatpush2.bf16.msra.mxu1 %v4470_v9  ;;  %5974 = vst [vmem:[#allocation48_spill] sm:$0xff] %v4727_v51  ;;  %v4730_v22 = vld [vmem:[#allocation7 + $0x194] ss:$24 sps:$4 sm:$0xff]  }
 0x421   :  { %1964 = vmatprep.subr.bf16.mxu1 %v4473_v11  ;;  %5975 = vst [vmem:[#allocation50_spill] sm:$0xff] %v4730_v22 }
 0x423   :  { %1846 = vmatpush2.bf16.msra.mxu0 %v4719_v20  ;;  %v4735_v20 = vld [vmem:[#allocation7 + $0x190] ss:$24 sps:$4 sm:$0xff]  }
 0x424   :  { %1847 = vmatprep.subr.bf16.mxu0 %v4722_v47  ;;  %1965 = vmatpush2.bf16.msra.mxu1 %v4478_v12  ;;  %5976 = vst [vmem:[#allocation52_spill] sm:$0xff] %v4735_v20 }
 0x425   :  { %1966 = vmatprep.subr.bf16.mxu1 %v4481_v14  ;;  %v5981_v14 = vld [vmem:[#allocation63_spill] sm:$0xff] }
 0x427   :  { %1848 = vmatpush2.bf16.msra.mxu0 %v4727_v51  ;;  %v5977_v51 = vld [vmem:[#allocation59_spill] sm:$0xff] }
 0x428   :  { %1849 = vmatprep.subr.bf16.mxu0 %v4730_v22  ;;  %1967 = vmatpush2.bf16.msra.mxu1 %v4486_v4  ;;  %v5978_v22 = vld [vmem:[#allocation60_spill] sm:$0xff]  ;;  %v5979_v4 = vld [vmem:[#allocation61_spill] sm:$0xff] }
 0x429   :  { %1968 = vmatprep.subr.bf16.mxu1 %v4489_v16  ;;  %v5980_v16 = vld [vmem:[#allocation62_spill] sm:$0xff] }
 0x42b   :  { %1850 = vmatpush2.bf16.msra.mxu0 %v4735_v20  ;;  %v5982_v20 = vld [vmem:[#allocation64_spill] sm:$0xff] }
 0x42c   :  { %1979 = vmatprep.subr.bf16.mxu0 %v4493_v8  ;;  %1969 = vmatpush2.bf16.msra.mxu1 %v4496_v10  ;;  %v5983_v8 = vld [vmem:[#allocation65_spill] sm:$0xff]  ;;  %v5984_v10 = vld [vmem:[#allocation66_spill] sm:$0xff] }
 0x42d   :  { %2020 = vmatprep.subr.bf16.mxu1 %v4499_v59  ;;  %v5985_v59 = vld [vmem:[#allocation67_spill] sm:$0xff] }
 0x42e   :  { %1852 = vmatmul.mubr.bf16.vlgmr.msra.gmra.mxu0 %v4611_v19  ;;  %v5986_v19 = vld [vmem:[#allocation68_spill] sm:$0xff] }
 0x42f   :  { %1980 = vmatpush1.bf16.msra.mxu0 %v4503_v55  ;;  %v5987_v55 = vld [vmem:[#allocation69_spill] sm:$0xff] }
 0x430   :  { %1981 = vmatprep.subr.bf16.mxu0 %v5977_v51  ;;  %v5988_v51 = vld [vmem:[#allocation26_spill] sm:$0xff] }
 0x433   :  { %1982 = vmatpush1.bf16.msra.mxu0 %v5978_v22  ;;  %v5989_v22 = vld [vmem:[#allocation29_spill] sm:$0xff] }
 0x434   :  { %1983 = vmatprep.subr.bf16.mxu0 %v5979_v4  ;;  %v5990_v4 = vld [vmem:[#allocation12_spill] sm:$0xff] }
 0x437   :  { %1984 = vmatpush1.bf16.msra.mxu0 %v5980_v16  ;;  %v5991_v16 = vld [vmem:[#allocation13_spill] sm:$0xff] }
 0x438   :  { %1985 = vmatprep.subr.bf16.mxu0 %v5981_v14  ;;  %v5992_v14 = vld [vmem:[#allocation14_spill] sm:$0xff] }
 0x43b   :  { %1986 = vmatpush1.bf16.msra.mxu0 %v5982_v20  ;;  %v5993_v20 = vld [vmem:[#allocation15_spill] sm:$0xff] }
 0x43c   :  { %1987 = vmatprep.subr.bf16.mxu0 %v5983_v8  ;;  %v5994_v8 = vld [vmem:[#allocation16_spill] sm:$0xff] }
 0x43f   :  { %1988 = vmatpush1.bf16.msra.mxu0 %v5984_v10  ;;  %v5995_v10 = vld [vmem:[#allocation17_spill] sm:$0xff] }
 0x440   :  { %1989 = vmatprep.subr.bf16.mxu0 %v5985_v59  ;;  %v5996_v59 = vld [vmem:[#allocation18_spill] sm:$0xff] }
 0x443   :  { %1990 = vmatpush1.bf16.msra.mxu0 %v5986_v19  ;;  %v5997_v19 = vld [vmem:[#allocation19_spill] sm:$0xff] }
 0x444   :  { %1991 = vmatprep.subr.bf16.mxu0 %v5987_v55  ;;  %v5998_v55 = vld [vmem:[#allocation20_spill] sm:$0xff] }
 0x447   :  { %1992 = vmatpush1.bf16.msra.mxu0 %v5988_v51  ;;  %v5999_v51 = vld [vmem:[#allocation21_spill] sm:$0xff] }
 0x448   :  { %1993 = vmatprep.subr.bf16.mxu0 %v5989_v22  ;;  %v4766_v22 = vld [vmem:[#allocation7 + $0x218] ss:$24 sps:$4 sm:$0xff]  }
 0x449   :  { %6000 = vst [vmem:[#allocation73_spill] sm:$0xff] %v4766_v22 }
 0x44b   :  { %1994 = vmatpush1.bf16.msra.mxu0 %v5990_v4 }
 0x44c   :  { %1995 = vmatprep.subr.bf16.mxu0 %v5991_v16  ;;  %v4769_v16 = vld [vmem:[#allocation7 + $0x1ec] ss:$24 sps:$4 sm:$0xff]  }
 0x44d   :  { %6001 = vst [vmem:[#allocation54_spill] sm:$0xff] %v4769_v16 }
 0x44f   :  { %1996 = vmatpush2.bf16.msra.mxu0 %v5992_v14 }
 0x450   :  { %1997 = vmatprep.subr.bf16.mxu0 %v5993_v20  ;;  %v4772_v20 = vld [vmem:[#allocation7 + $0x1e8] ss:$24 sps:$4 sm:$0xff]  }
 0x451   :  { %6002 = vst [vmem:[#allocation56_spill] sm:$0xff] %v4772_v20 }
 0x453   :  { %1998 = vmatpush2.bf16.msra.mxu0 %v5994_v8 }
 0x454   :  { %1999 = vmatprep.subr.bf16.mxu0 %v5995_v10  ;;  %v4775_v10 = vld [vmem:[#allocation7 + $0x1bc] ss:$24 sps:$4 sm:$0xff]  }
 0x455   :  { %6003 = vst [vmem:[#allocation58_spill] sm:$0xff] %v4775_v10 }
 0x457   :  { %2000 = vmatpush2.bf16.msra.mxu0 %v5996_v59 }
 0x458   :  { %2001 = vmatprep.subr.bf16.mxu0 %v5997_v19  ;;  %v4778_v19 = vld [vmem:[#allocation7 + $0x1b8] ss:$24 sps:$4 sm:$0xff]  }
 0x459   :  { %6004 = vst [vmem:[#allocation74_spill] sm:$0xff] %v4778_v19 }
 0x45b   :  { %2002 = vmatpush2.bf16.msra.mxu0 %v5998_v55 }
 0x45c   :  { %2003 = vmatprep.subr.bf16.mxu0 %v5999_v51  ;;  %v4781_v51 = vld [vmem:[#allocation7 + $0x18c] ss:$24 sps:$4 sm:$0xff]  }
 0x45d   :  { %6005 = vst [vmem:[#allocation75_spill] sm:$0xff] %v4781_v51 }
 0x45f   :  { %2004 = vmatpush2.bf16.msra.mxu0 %v4766_v22  ;;  %v4784_v22 = vld [vmem:[#allocation7 + $0x188] ss:$24 sps:$4 sm:$0xff]  }
 0x460   :  { %2005 = vmatprep.subr.bf16.mxu0 %v4769_v16  ;;  %6006 = vst [vmem:[#allocation76_spill] sm:$0xff] %v4784_v22  ;;  %v6007_v16 = vld [vmem:[#allocation31_spill] sm:$0xff] }
 0x463   :  { %2006 = vmatpush2.bf16.msra.mxu0 %v4772_v20 }
 0x464   :  { %2007 = vmatprep.subr.bf16.mxu0 %v4775_v10 }
 0x467   :  { %2008 = vmatpush2.bf16.msra.mxu0 %v4778_v19 }
 0x468   :  { %2009 = vmatprep.subr.bf16.mxu0 %v4781_v51 }
 0x46b   :  { %2010 = vmatpush2.bf16.msra.mxu0 %v4784_v22  ;;  %v5751_v22 = vrot.slane %v6008_v7, 1 }
 0x46c   :  { %2135 = vmatprep.subr.bf16.mxu0 %v6007_v16 }
 0x4ae   :  { %v1771_v55 = vpop.f32.mrf.mxu0  ;;  %v1812_v20 = vpop.f32.mrf.mxu1 }
 0x4af   :  { %v1772_v19 = vadd.f32 %v1771_v55, %v4185_v49  ;;  %v1813_v3 = vadd.f32 %v1812_v20, %v4199_v27  ;;  %v6009_v55 = vld [vmem:[#allocation72_spill] sm:$0xff] }
 0x4b0   :  { %v1773_v59 = vpop.f32.mrf.mxu0  ;;  %v1814_v8 = vpop.f32.mrf.mxu1 }
 0x4b1   :  { %v1774_v47 = vadd.f32 %v1773_v59, %v4187_v25  ;;  %v1862_v11 = vrot.slane %v1772_v19, 5 }
 0x4b2   :  { %v1775_v14 = vpop.f32.mrf.mxu0  ;;  %v1816_v10 = vpop.f32.mrf.mxu1 }
 0x4b3   :  { %v1863_v51 = vrot.slane %v1774_v47, 5  ;;  %v1866_v9 = vadd.f32 %v1862_v11, %v5956_v43  ;;  %v5753_v47 = vrot.slane %v6009_v55, 1 }
 0x4b4   :  { %v1776_v4 = vpop.f32.mrf.mxu0  ;;  %v1817_v12 = vpop.f32.mrf.mxu1 }
 0x4b5   :  { %v1867_v16 = vadd.f32 %v1863_v51, %v5751_v22  ;;  %v3012_v5 = vmul.f32 -1.442695, %v1866_v9  ;;  %v1815_v12 = vadd.f32 %v1814_v8, %v4201_v41  ;;  %v1882_v4 = vrot.slane %v1813_v3, 5 }
 0x4b7   :  { %v3013_v14 = vmul.f32 -1.442695, %v1867_v16  ;;  %3349 = vpow2.f32 %v3012_v5  ;;  %v1883_v10 = vrot.slane %v1815_v12, 5  ;;  %v1886_v59 = vadd.f32 %v1882_v4, %v5914_v21 }
 0x4b9   :  { %3351 = vpow2.f32 %v3013_v14  ;;  %v1887_v11 = vadd.f32 %v1883_v10, %v5753_v47  ;;  %v3014_v19 = vmul.f32 -1.442695, %v1886_v59 }
 0x4bb   :  { %v3015_v7 = vmul.f32 -1.442695, %v1887_v11  ;;  %3353 = vpow2.f32 %v3014_v19 }
 0x4bd   :  { %3355 = vpow2.f32 %v3015_v7 }
 0x4c4   :  { %v3350_v51 = vpop.eup %3349 }
 0x4c5   :  { %v1874_v20 = vadd.f32 1.0, %v3350_v51 }
 0x4c6   :  { %v3352_v9 = vpop.eup %3351 }
 0x4c7   :  { %v1875_v5 = vadd.f32 1.0, %v3352_v9  ;;  %3357 = vrcp.f32 %v1874_v20 }
 0x4c8   :  { %v3354_v3 = vpop.eup %3353 }
 0x4c9   :  { %3359 = vrcp.f32 %v1875_v5  ;;  %v1894_v14 = vadd.f32 1.0, %v3354_v3  ;;  %v5754_v5 = vrot.slane %v4218_v17, 1 }
 0x4ca   :  { %v3356_v8 = vpop.eup %3355 }
 0x4cb   :  { %v1895_v22 = vadd.f32 1.0, %v3356_v8  ;;  %3361 = vrcp.f32 %v1894_v14 }
 0x4cd   :  { %3363 = vrcp.f32 %v1895_v22 }
 0x4d4   :  { %v3358_v59 = vpop.eup %3357 }
 0x4d6   :  { %v3360_v7 = vpop.eup %3359 }
 0x4ee   :  { %v1853_v16 = vpop.f32.mrf.mxu0 }
 0x4ef   :  { %v1854_v12 = vadd.f32 %v1853_v16, %v4213_v57  ;;  %v3362_v16 = vpop.eup %3361 }
 0x4f0   :  { %v1855_v4 = vpop.f32.mrf.mxu0  ;;  %v1912_v14 = vsub.f32 1.0, %v3362_v16 }
 0x4f1   :  { %v1902_v55 = vrot.slane %v1854_v12, 5  ;;  %v1856_v10 = vadd.f32 %v1855_v4, %v4215_v53  ;;  %v3364_v12 = vpop.eup %3363  ;;  %v1918_v4 = vrot.slane %v4603_v38, 7 }
 0x4f2   :  { %v1857_v11 = vpop.f32.mrf.mxu0 }
 0x4f3   :  { %v1906_v19 = vmul.f32 %v3358_v59, %v1902_v55  ;;  %v1903_v51 = vrot.slane %v1856_v10, 5  ;;  %v1919_v10 = vrot.slane %v4605_v2, 7  ;;  %v1913_v59 = vsub.f32 1.0, %v3364_v12 }
 0x4f4   :  { %v1858_v9 = vpop.f32.mrf.mxu0  ;;  %v1922_v11 = vmul.f32 %v3362_v16, %v1918_v4  ;;  %v6033_v16 = vld [vmem:[#allocation50_spill] sm:$0xff]  ;;  %v6035_v4 = vld [vmem:[#allocation49_spill] sm:$0xff] }
 0x4f5   :  { %v1908_v20 = vadd.f32 %v1906_v19, %v4222_v42  ;;  %v1907_v3 = vmul.f32 %v3360_v7, %v1903_v51  ;;  %v1923_v47 = vmul.f32 %v3364_v12, %v1919_v10  ;;  %v6034_v12 = vld [vmem:[#allocation47_spill] sm:$0xff]  ;;  %v6038_v10 = vld [vmem:[#allocation53_spill] sm:$0xff] }
 0x4f7   :  { %3365 = vtanh.f32 %v1908_v20  ;;  %v1909_v8 = vadd.f32 %v1907_v3, %v5754_v5 }
 0x4f9   :  { %3367 = vtanh.f32 %v1909_v8 }
 0x504   :  { %v3366_v55 = vpop.eup %3365 }
 0x505   :  { %v1914_v22 = vmul.f32 %v3366_v55, %v1912_v14  ;;  %v6036_v14 = vld [vmem:[#allocation52_spill] sm:$0xff]  ;;  %v6037_v55 = vld [vmem:[#allocation51_spill] sm:$0xff] }
 0x506   :  { %v3368_v19 = vpop.eup %3367 }
 0x507   :  { %v1915_v9 = vmul.f32 %v3368_v19, %v1913_v59  ;;  %v4808_v51 = vadd.f32 %v1922_v11, %v1914_v22  ;;  %v6039_v59 = vld [vmem:[#allocation55_spill] sm:$0xff]  ;;  %v6040_v22 = vld [vmem:[#allocation57_spill] sm:$0xff]  ;;  %v6042_v19 = vld [vmem:[#allocation60_spill] sm:$0xff] }
 0x508   :  { %v6041_v11 = vld [vmem:[#allocation59_spill] sm:$0xff] }
 0x509   :  { %v4810_v7 = vadd.f32 %v1923_v47, %v1915_v9  ;;  %v1926_v20 = vpack.c.bf16 %v4808_v51, %v4808_v51  ;;  %v6031_v47 = vld [vmem:[#allocation45_spill] sm:$0xff] }
 0x50a   :  { %v6043_v9 = vld [vmem:[#allocation61_spill] sm:$0xff] }
 0x50b   :  { %v1927_v38 = vpack.c.bf16 %v4810_v7, %v4810_v7  ;;  %v1929_v3 = vshrl.u32 %v1926_v20, 16  ;;  %v6044_v20 = vld [vmem:[#allocation62_spill] sm:$0xff] }
 0x50d   :  { %v1933_v8 = vshrl.u32 %v1927_v38, 16  ;;  %v4816_v2 = vrot.slane %v1929_v3, 1  ;;  %v6045_v38 = vld [vmem:[#allocation63_spill] sm:$0xff]  ;;  %v6046_v3 = vld [vmem:[#allocation64_spill] sm:$0xff] }
 0x50f   :  { %v1935_v5 = vrot.slane %v1933_v8, 1  ;;  %v6047_v8 = vld [vmem:[#allocation65_spill] sm:$0xff] }
 0x511   :  { %1970 = vmatprep.mubr.bf16.mxu1 %v1935_v5  ;;  %2011 = vmatprep.mubr.bf16.mxu0 %v1935_v5 }
 0x512   :  { %1971 = vmatmul.mubr.bf16.vlgmr.msra.gmra.mxu1 %v4816_v2  ;;  %2012 = vmatmul.mubr.bf16.vlgmr.msra.gmra.mxu0 %v4816_v2 }
 0x513   :  { %2021 = vmatpush1.bf16.msra.mxu1 %v4615_v37  ;;  %2052 = vmatprep.mubr.bf16.mxu1 %v1935_v5  ;;  %v6032_v5 = vld [vmem:[#allocation48_spill] sm:$0xff] }
 0x514   :  { %2022 = vmatprep.subr.bf16.mxu1 %v4618_v30  ;;  %2136 = vmatpush1.bf16.msra.mxu0 %v4374_v15  ;;  %v6010_v15 = vld [vmem:[#allocation22_spill] sm:$0xff] }
 0x515   :  { %2137 = vmatprep.subr.bf16.mxu0 %v4377_v45  ;;  %v6011_v45 = vld [vmem:[#allocation23_spill] sm:$0xff] }
 0x517   :  { %2023 = vmatpush1.bf16.msra.mxu1 %v4623_v0 }
 0x518   :  { %2024 = vmatprep.subr.bf16.mxu1 %v4626_v61  ;;  %2138 = vmatpush1.bf16.msra.mxu0 %v4382_v39  ;;  %v6012_v39 = vld [vmem:[#allocation24_spill] sm:$0xff] }
 0x519   :  { %2139 = vmatprep.subr.bf16.mxu0 %v4385_v63  ;;  %v6013_v63 = vld [vmem:[#allocation25_spill] sm:$0xff] }
 0x51b   :  { %2025 = vmatpush1.bf16.msra.mxu1 %v4631_v26 }
 0x51c   :  { %2026 = vmatprep.subr.bf16.mxu1 %v4634_v36  ;;  %2140 = vmatpush1.bf16.msra.mxu0 %v4390_v6  ;;  %v6014_v6 = vld [vmem:[#allocation27_spill] sm:$0xff] }
 0x51d   :  { %2141 = vmatprep.subr.bf16.mxu0 %v4393_v44  ;;  %v6015_v44 = vld [vmem:[#allocation28_spill] sm:$0xff] }
 0x51f   :  { %2027 = vmatpush1.bf16.msra.mxu1 %v4639_v28 }
 0x520   :  { %2028 = vmatprep.subr.bf16.mxu1 %v4642_v24  ;;  %2142 = vmatpush1.bf16.msra.mxu0 %v4398_v33  ;;  %v6016_v33 = vld [vmem:[#allocation30_spill] sm:$0xff] }
 0x521   :  { %2143 = vmatprep.subr.bf16.mxu0 %v4401_v29  ;;  %v6017_v29 = vld [vmem:[#allocation32_spill] sm:$0xff] }
 0x523   :  { %2029 = vmatpush1.bf16.msra.mxu1 %v4647_v18 }
 0x524   :  { %2030 = vmatprep.subr.bf16.mxu1 %v4650_v13  ;;  %2144 = vmatpush1.bf16.msra.mxu0 %v4406_v35  ;;  %v6018_v35 = vld [vmem:[#allocation34_spill] sm:$0xff] }
 0x525   :  { %2145 = vmatprep.subr.bf16.mxu0 %v4409_v31  ;;  %v6019_v31 = vld [vmem:[#allocation33_spill] sm:$0xff] }
 0x527   :  { %2031 = vmatpush1.bf16.msra.mxu1 %v4655_v40 }
 0x528   :  { %2032 = vmatprep.subr.bf16.mxu1 %v4658_v32  ;;  %2146 = vmatpush1.bf16.msra.mxu0 %v4414_v23  ;;  %v6020_v23 = vld [vmem:[#allocation36_spill] sm:$0xff] }
 0x529   :  { %2147 = vmatprep.subr.bf16.mxu0 %v4417_v46  ;;  %v6021_v46 = vld [vmem:[#allocation38_spill] sm:$0xff] }
 0x52b   :  { %2033 = vmatpush1.bf16.msra.mxu1 %v4663_v34 }
 0x52c   :  { %2034 = vmatprep.subr.bf16.mxu1 %v6010_v15  ;;  %2148 = vmatpush1.bf16.msra.mxu0 %v4422_v48  ;;  %v6022_v48 = vld [vmem:[#allocation35_spill] sm:$0xff] }
 0x52d   :  { %2149 = vmatprep.subr.bf16.mxu0 %v4425_v50  ;;  %v6023_v50 = vld [vmem:[#allocation37_spill] sm:$0xff] }
 0x52f   :  { %2035 = vmatpush1.bf16.msra.mxu1 %v6011_v45 }
 0x530   :  { %2036 = vmatprep.subr.bf16.mxu1 %v6012_v39  ;;  %2150 = vmatpush1.bf16.msra.mxu0 %v4430_v52  ;;  %v6024_v52 = vld [vmem:[#allocation40_spill] sm:$0xff] }
 0x531   :  { %2151 = vmatprep.subr.bf16.mxu0 %v4433_v54  ;;  %v6025_v54 = vld [vmem:[#allocation42_spill] sm:$0xff] }
 0x533   :  { %2037 = vmatpush2.bf16.msra.mxu1 %v6013_v63 }
 0x534   :  { %2038 = vmatprep.subr.bf16.mxu1 %v6014_v6  ;;  %2152 = vmatpush2.bf16.msra.mxu0 %v4438_v56  ;;  %v6026_v56 = vld [vmem:[#allocation39_spill] sm:$0xff] }
 0x535   :  { %2153 = vmatprep.subr.bf16.mxu0 %v4441_v58  ;;  %v6027_v58 = vld [vmem:[#allocation41_spill] sm:$0xff] }
 0x537   :  { %2039 = vmatpush2.bf16.msra.mxu1 %v6015_v44 }
 0x538   :  { %2040 = vmatprep.subr.bf16.mxu1 %v6016_v33  ;;  %2154 = vmatpush2.bf16.msra.mxu0 %v4446_v60  ;;  %v6028_v60 = vld [vmem:[#allocation44_spill] sm:$0xff] }
 0x539   :  { %2155 = vmatprep.subr.bf16.mxu0 %v4449_v62  ;;  %v6029_v62 = vld [vmem:[#allocation46_spill] sm:$0xff] }
 0x53b   :  { %2041 = vmatpush2.bf16.msra.mxu1 %v6017_v29 }
 0x53c   :  { %2042 = vmatprep.subr.bf16.mxu1 %v6018_v35  ;;  %2156 = vmatpush2.bf16.msra.mxu0 %v4454_v1  ;;  %v6030_v1 = vld [vmem:[#allocation43_spill] sm:$0xff] }
 0x53d   :  { %2157 = vmatprep.subr.bf16.mxu0 %v6019_v31  ;;  %v6048_v31 = vld [vmem:[#allocation66_spill] sm:$0xff] }
 0x53f   :  { %2043 = vmatpush2.bf16.msra.mxu1 %v6020_v23 }
 0x540   :  { %2044 = vmatprep.subr.bf16.mxu1 %v6021_v46  ;;  %2158 = vmatpush2.bf16.msra.mxu0 %v6022_v48  ;;  %v6049_v48 = vld [vmem:[#allocation67_spill] sm:$0xff] }
 0x541   :  { %2159 = vmatprep.subr.bf16.mxu0 %v6023_v50  ;;  %v6051_v50 = vld [vmem:[#allocation69_spill] sm:$0xff] }
 0x543   :  { %2045 = vmatpush2.bf16.msra.mxu1 %v6024_v52 }
 0x544   :  { %2046 = vmatprep.subr.bf16.mxu1 %v6025_v54  ;;  %2160 = vmatpush2.bf16.msra.mxu0 %v6026_v56  ;;  %v6052_v56 = vld [vmem:[#allocation26_spill] sm:$0xff] }
 0x545   :  { %2161 = vmatprep.subr.bf16.mxu0 %v6027_v58  ;;  %v6053_v58 = vld [vmem:[#allocation29_spill] sm:$0xff] }
 0x547   :  { %2047 = vmatpush2.bf16.msra.mxu1 %v6028_v60 }
 0x548   :  { %2048 = vmatprep.subr.bf16.mxu1 %v6029_v62  ;;  %2162 = vmatpush2.bf16.msra.mxu0 %v6030_v1  ;;  %v6054_v1 = vld [vmem:[#allocation12_spill] sm:$0xff] }
 0x549   :  { %2163 = vmatprep.subr.bf16.mxu0 %v6031_v47  ;;  %v6055_v47 = vld [vmem:[#allocation13_spill] sm:$0xff] }
 0x54b   :  { %2049 = vmatpush2.bf16.msra.mxu1 %v6032_v5 }
 0x54c   :  { %2050 = vmatprep.subr.bf16.mxu1 %v6033_v16  ;;  %2164 = vmatpush2.bf16.msra.mxu0 %v6034_v12  ;;  %v6056_v12 = vld [vmem:[#allocation14_spill] sm:$0xff] }
 0x54d   :  { %2165 = vmatprep.subr.bf16.mxu0 %v6035_v4  ;;  %v6057_v4 = vld [vmem:[#allocation15_spill] sm:$0xff] }
 0x54f   :  { %2051 = vmatpush2.bf16.msra.mxu1 %v6036_v14 }
 0x550   :  { %2176 = vmatprep.subr.bf16.mxu1 %v6037_v55  ;;  %2166 = vmatpush2.bf16.msra.mxu0 %v6038_v10  ;;  %v6058_v55 = vld [vmem:[#allocation16_spill] sm:$0xff]  ;;  %v6059_v10 = vld [vmem:[#allocation17_spill] sm:$0xff] }
 0x551   :  { %2217 = vmatprep.subr.bf16.mxu0 %v6039_v59  ;;  %v6060_v59 = vld [vmem:[#allocation18_spill] sm:$0xff] }
 0x552   :  { %2053 = vmatmul.mubr.bf16.vlgmr.msra.gmra.mxu1 %v4816_v2  ;;  %v6050_v2 = vld [vmem:[#allocation68_spill] sm:$0xff] }
 0x553   :  { %2177 = vmatpush1.bf16.msra.mxu1 %v6040_v22  ;;  %v6061_v22 = vld [vmem:[#allocation19_spill] sm:$0xff] }
 0x554   :  { %2178 = vmatprep.subr.bf16.mxu1 %v6041_v11  ;;  %v6062_v11 = vld [vmem:[#allocation20_spill] sm:$0xff] }
 0x557   :  { %2179 = vmatpush1.bf16.msra.mxu1 %v6042_v19  ;;  %v6063_v19 = vld [vmem:[#allocation21_spill] sm:$0xff] }
 0x558   :  { %2180 = vmatprep.subr.bf16.mxu1 %v6043_v9  ;;  %v6064_v9 = vld [vmem:[#allocation73_spill] sm:$0xff] }
 0x55b   :  { %2181 = vmatpush1.bf16.msra.mxu1 %v6044_v20  ;;  %v6065_v20 = vld [vmem:[#allocation54_spill] sm:$0xff] }
 0x55c   :  { %2182 = vmatprep.subr.bf16.mxu1 %v6045_v38  ;;  %v6066_v38 = vld [vmem:[#allocation56_spill] sm:$0xff] }
 0x55f   :  { %2183 = vmatpush1.bf16.msra.mxu1 %v6046_v3  ;;  %v6067_v3 = vld [vmem:[#allocation58_spill] sm:$0xff] }
 0x560   :  { %2184 = vmatprep.subr.bf16.mxu1 %v6047_v8  ;;  %v6068_v8 = vld [vmem:[#allocation74_spill] sm:$0xff] }
 0x563   :  { %2185 = vmatpush1.bf16.msra.mxu1 %v6048_v31  ;;  %v6069_v31 = vld [vmem:[#allocation75_spill] sm:$0xff] }
 0x564   :  { %2186 = vmatprep.subr.bf16.mxu1 %v6049_v48  ;;  %v6070_v48 = vld [vmem:[#allocation76_spill] sm:$0xff] }
 0x567   :  { %2187 = vmatpush1.bf16.msra.mxu1 %v6050_v2  ;;  %v4916_v2 = vld [vmem:[#allocation7 + $0x154] ss:$24 sps:$4 sm:$0xff]  }
 0x568   :  { %2188 = vmatprep.subr.bf16.mxu1 %v6051_v50  ;;  %6071 = vst [vmem:[#allocation31_spill] sm:$0xff] %v4916_v2 }
 0x56b   :  { %2189 = vmatpush1.bf16.msra.mxu1 %v6052_v56 }
 0x56c   :  { %2190 = vmatprep.subr.bf16.mxu1 %v6053_v58 }
 0x56f   :  { %2191 = vmatpush1.bf16.msra.mxu1 %v6054_v1 }
 0x570   :  { %2192 = vmatprep.subr.bf16.mxu1 %v6055_v47 }
 0x573   :  { %2193 = vmatpush2.bf16.msra.mxu1 %v6056_v12 }
 0x574   :  { %2194 = vmatprep.subr.bf16.mxu1 %v6057_v4 }
 0x577   :  { %2195 = vmatpush2.bf16.msra.mxu1 %v6058_v55 }
 0x578   :  { %2196 = vmatprep.subr.bf16.mxu1 %v6059_v10 }
 0x57b   :  { %2197 = vmatpush2.bf16.msra.mxu1 %v6060_v59 }
 0x57c   :  { %2198 = vmatprep.subr.bf16.mxu1 %v6061_v22 }
 0x57f   :  { %2199 = vmatpush2.bf16.msra.mxu1 %v6062_v11 }
 0x580   :  { %2200 = vmatprep.subr.bf16.mxu1 %v6063_v19 }
 0x583   :  { %2201 = vmatpush2.bf16.msra.mxu1 %v6064_v9 }
 0x584   :  { %2202 = vmatprep.subr.bf16.mxu1 %v6065_v20 }
 0x587   :  { %2203 = vmatpush2.bf16.msra.mxu1 %v6066_v38 }
 0x588   :  { %2204 = vmatprep.subr.bf16.mxu1 %v6067_v3 }
 0x58b   :  { %2205 = vmatpush2.bf16.msra.mxu1 %v6068_v8 }
 0x58c   :  { %2206 = vmatprep.subr.bf16.mxu1 %v6069_v31 }
 0x58f   :  { %2207 = vmatpush2.bf16.msra.mxu1 %v6070_v48  ;;  %v6072_v48 = vld [vmem:[#allocation70_spill] sm:$0xff] }
 0x590   :  { %2336 = vmatprep.subr.bf16.mxu1 %v4916_v2  ;;  %v6073_v31 = vrot.slane %v6072_v48, 7 }
 0x5d2   :  { %v1972_v50 = vpop.f32.mrf.mxu1  ;;  %v2013_v56 = vpop.f32.mrf.mxu0 }
 0x5d3   :  { %v1973_v10 = vadd.f32 %v1972_v50, %v4185_v49  ;;  %v2014_v3 = vadd.f32 %v2013_v56, %v4199_v27 }
 0x5d4   :  { %v1974_v58 = vpop.f32.mrf.mxu1  ;;  %v2015_v1 = vpop.f32.mrf.mxu0 }
 0x5d5   :  { %v1975_v59 = vadd.f32 %v1974_v58, %v4187_v25  ;;  %v2063_v22 = vrot.slane %v1973_v10, 4  ;;  %v6074_v58 = vld [vmem:[#allocation72_spill] sm:$0xff] }
 0x5d6   :  { %v1976_v47 = vpop.f32.mrf.mxu1  ;;  %v2017_v12 = vpop.f32.mrf.mxu0 }
 0x5d7   :  { %v2064_v11 = vrot.slane %v1975_v59, 4  ;;  %v2067_v19 = vadd.f32 %v2063_v22, %v5956_v43  ;;  %v2016_v47 = vadd.f32 %v2015_v1, %v4201_v41  ;;  %v2083_v12 = vrot.slane %v2014_v3, 4 }
 0x5d8   :  { %v1977_v4 = vpop.f32.mrf.mxu1  ;;  %v2018_v55 = vpop.f32.mrf.mxu0 }
 0x5d9   :  { %v2068_v8 = vadd.f32 %v2064_v11, %v6073_v31  ;;  %v3016_v2 = vmul.f32 -1.442695, %v2067_v19  ;;  %v2084_v4 = vrot.slane %v2016_v47, 4  ;;  %v2087_v50 = vadd.f32 %v2083_v12, %v5914_v21 }
 0x5da   :  { %v6075_v55 = vrot.slane %v6074_v58, 7 }
 0x5db   :  { %v3017_v38 = vmul.f32 -1.442695, %v2068_v8  ;;  %3369 = vpow2.f32 %v3016_v2  ;;  %v3018_v59 = vmul.f32 -1.442695, %v2087_v50 }
 0x5dc   :  { %v2088_v10 = vadd.f32 %v2084_v4, %v6075_v55 }
 0x5dd   :  { %3371 = vpow2.f32 %v3017_v38 }
 0x5de   :  { %v3019_v22 = vmul.f32 -1.442695, %v2088_v10  ;;  %3373 = vpow2.f32 %v3018_v59 }
 0x5e0   :  { %3375 = vpow2.f32 %v3019_v22 }
 0x5e8   :  { %v3370_v43 = vpop.eup %3369 }
 0x5e9   :  { %v2075_v11 = vadd.f32 1.0, %v3370_v43 }
 0x5ea   :  { %v3372_v31 = vpop.eup %3371 }
 0x5eb   :  { %v2076_v56 = vadd.f32 1.0, %v3372_v31  ;;  %3377 = vrcp.f32 %v2075_v11  ;;  %v3374_v8 = vpop.eup %3373 }
 0x5ec   :  { %v2095_v38 = vadd.f32 1.0, %v3374_v8 }
 0x5ed   :  { %3379 = vrcp.f32 %v2076_v56  ;;  %v3376_v2 = vpop.eup %3375  ;;  %v6076_v56 = vrot.slane %v4218_v17, 7 }
 0x5ee   :  { %v2096_v47 = vadd.f32 1.0, %v3376_v2  ;;  %3381 = vrcp.f32 %v2095_v38  ;;  %v2120_v38 = vrot.slane %v4810_v7, 7  ;;  %v4950_v7 = vld [vmem:[#allocation7 + $0x150] ss:$24 sps:$4 sm:$0xff]  }
 0x5f0   :  { %3383 = vrcp.f32 %v2096_v47 }
 0x5f8   :  { %v3378_v50 = vpop.eup %3377 }
 0x5fa   :  { %v3380_v59 = vpop.eup %3379 }
 0x5fb   :  { %v3382_v2 = vpop.eup %3381 }
 0x612   :  { %v2054_v3 = vpop.f32.mrf.mxu1 }
 0x613   :  { %v2055_v1 = vadd.f32 %v2054_v3, %v4213_v57  ;;  %v3384_v3 = vpop.eup %3383 }
 0x614   :  { %v2056_v19 = vpop.f32.mrf.mxu1 }
 0x615   :  { %v2103_v12 = vrot.slane %v2055_v1, 4  ;;  %v2057_v4 = vadd.f32 %v2056_v19, %v4215_v53  ;;  %v2119_v1 = vrot.slane %v4808_v51, 7  ;;  %v2113_v19 = vsub.f32 1.0, %v3382_v2 }
 0x616   :  { %v2058_v55 = vpop.f32.mrf.mxu1 }
 0x617   :  { %v2107_v10 = vmul.f32 %v3378_v50, %v2103_v12  ;;  %v2104_v43 = vrot.slane %v2057_v4, 4  ;;  %v2114_v12 = vsub.f32 1.0, %v3384_v3  ;;  %v2123_v50 = vmul.f32 %v3382_v2, %v2119_v1  ;;  %v4958_v2 = vld [vmem:[#allocation7 + $0x120] ss:$24 sps:$4 sm:$0xff]   ;;  %v5082_v1 = vld [vmem:[#allocation7 + $0x12c] ss:$24 sps:$4 sm:$0xff]  }
 0x618   :  { %v2059_v22 = vpop.f32.mrf.mxu1  ;;  %6079 = vst [vmem:[#allocation24_spill] sm:$0xff] %v5082_v1 }
 0x619   :  { %v2109_v31 = vadd.f32 %v2107_v10, %v4222_v42  ;;  %v2108_v11 = vmul.f32 %v3380_v59, %v2104_v43  ;;  %v2124_v10 = vmul.f32 %v3384_v3, %v2120_v38  ;;  %v4969_v3 = vld [vmem:[#allocation7 + $0xc4] ss:$24 sps:$4 sm:$0xff]  }
 0x61a   :  { %v5094_v38 = vld [vmem:[#allocation7 + $0xcc] ss:$24 sps:$4 sm:$0xff]  }
 0x61b   :  { %3385 = vtanh.f32 %v2109_v31  ;;  %v2110_v8 = vadd.f32 %v2108_v11, %v6076_v56  ;;  %6083 = vst [vmem:[#allocation30_spill] sm:$0xff] %v5094_v38 }
 0x61d   :  { %3387 = vtanh.f32 %v2110_v8  ;;  %v4953_v8 = vld [vmem:[#allocation7 + $0x124] ss:$24 sps:$4 sm:$0xff]  }
 0x628   :  { %v3386_v55 = vpop.eup %3385 }
 0x629   :  { %v2115_v4 = vmul.f32 %v3386_v55, %v2113_v19  ;;  %v5088_v19 = vld [vmem:[#allocation7 + $0xfc] ss:$24 sps:$4 sm:$0xff]   ;;  %v5091_v55 = vld [vmem:[#allocation7 + $0xf8] ss:$24 sps:$4 sm:$0xff]  }
 0x62a   :  { %v3388_v47 = vpop.eup %3387  ;;  %6081 = vst [vmem:[#allocation27_spill] sm:$0xff] %v5088_v19  ;;  %6082 = vst [vmem:[#allocation28_spill] sm:$0xff] %v5091_v55 }
 0x62b   :  { %v2116_v22 = vmul.f32 %v3388_v47, %v2114_v12  ;;  %v4936_v43 = vadd.f32 %v2123_v50, %v2115_v4  ;;  %v5097_v12 = vld [vmem:[#allocation7 + $0xc8] ss:$24 sps:$4 sm:$0xff]   ;;  %v5100_v4 = vld [vmem:[#allocation7 + $0x9c] ss:$24 sps:$4 sm:$0xff]   ;;  %v5103_v50 = vld [vmem:[#allocation7 + $0x98] ss:$24 sps:$4 sm:$0xff]  }
 0x62c   :  { %6084 = vst [vmem:[#allocation32_spill] sm:$0xff] %v5097_v12  ;;  %6085 = vst [vmem:[#allocation34_spill] sm:$0xff] %v5100_v4  ;;  %v5106_v47 = vld [vmem:[#allocation7 + $0x6c] ss:$24 sps:$4 sm:$0xff]  }
 0x62d   :  { %v4938_v59 = vadd.f32 %v2124_v10, %v2116_v22  ;;  %v2127_v31 = vpack.c.bf16 %v4936_v43, %v4936_v43  ;;  %6086 = vst [vmem:[#allocation33_spill] sm:$0xff] %v5103_v50  ;;  %6087 = vst [vmem:[#allocation36_spill] sm:$0xff] %v5106_v47  ;;  %v5109_v22 = vld [vmem:[#allocation7 + $0x68] ss:$24 sps:$4 sm:$0xff]   ;;  %v5112_v10 = vld [vmem:[#allocation7 + $0x3c] ss:$24 sps:$4 sm:$0xff]  }
 0x62e   :  { %6088 = vst [vmem:[#allocation38_spill] sm:$0xff] %v5109_v22  ;;  %6089 = vst [vmem:[#allocation35_spill] sm:$0xff] %v5112_v10 }
 0x62f   :  { %v2128_v51 = vpack.c.bf16 %v4938_v59, %v4938_v59  ;;  %v4944_v56 = vrot.slane %v2127_v31, 2  ;;  %v5115_v31 = vld [vmem:[#allocation7 + $0x38] ss:$24 sps:$4 sm:$0xff]  }
 0x630   :  { %6090 = vst [vmem:[#allocation37_spill] sm:$0xff] %v5115_v31 }
 0x631   :  { %v2132_v11 = vrot.slane %v2128_v51, 2  ;;  %v5118_v51 = vld [vmem:[#allocation7 + $0xc] ss:$24 sps:$4 sm:$0xff]  }
 0x632   :  { %6091 = vst [vmem:[#allocation40_spill] sm:$0xff] %v5118_v51 }
 0x633   :  { %2167 = vmatprep.mubr.bf16.mxu0 %v2132_v11  ;;  %2208 = vmatprep.mubr.bf16.mxu1 %v2132_v11 }
 0x634   :  { %2168 = vmatmul.mubr.bf16.vlgmr.msra.gmra.mxu0 %v4944_v56  ;;  %2209 = vmatmul.mubr.bf16.vlgmr.msra.gmra.mxu1 %v4944_v56 }
 0x635   :  { %2218 = vmatpush1.bf16.msra.mxu0 %v4615_v37  ;;  %2249 = vmatprep.mubr.bf16.mxu0 %v2132_v11  ;;  %v4961_v37 = vld [vmem:[#allocation7 + $0xf4] ss:$24 sps:$4 sm:$0xff]   ;;  %v5121_v11 = vld [vmem:[#allocation7 + $0x8] ss:$24 sps:$4 sm:$0xff]  }
 0x636   :  { %2219 = vmatprep.subr.bf16.mxu0 %v4618_v30  ;;  %2337 = vmatpush1.bf16.msra.mxu1 %v4950_v7  ;;  %v4966_v30 = vld [vmem:[#allocation7 + $0xf0] ss:$24 sps:$4 sm:$0xff]   ;;  %6092 = vst [vmem:[#allocation42_spill] sm:$0xff] %v5121_v11 }
 0x637   :  { %2338 = vmatprep.subr.bf16.mxu1 %v4953_v8 }
 0x639   :  { %2220 = vmatpush1.bf16.msra.mxu0 %v4623_v0  ;;  %v4974_v0 = vld [vmem:[#allocation7 + $0xc0] ss:$24 sps:$4 sm:$0xff]  }
 0x63a   :  { %2221 = vmatprep.subr.bf16.mxu0 %v4626_v61  ;;  %2339 = vmatpush1.bf16.msra.mxu1 %v4958_v2  ;;  %v4977_v61 = vld [vmem:[#allocation7 + $0x94] ss:$24 sps:$4 sm:$0xff]  }
 0x63b   :  { %2340 = vmatprep.subr.bf16.mxu1 %v4961_v37 }
 0x63d   :  { %2222 = vmatpush1.bf16.msra.mxu0 %v4631_v26  ;;  %v4982_v26 = vld [vmem:[#allocation7 + $0x90] ss:$24 sps:$4 sm:$0xff]  }
 0x63e   :  { %2223 = vmatprep.subr.bf16.mxu0 %v4634_v36  ;;  %2341 = vmatpush1.bf16.msra.mxu1 %v4966_v30  ;;  %v4985_v36 = vld [vmem:[#allocation7 + $0x64] ss:$24 sps:$4 sm:$0xff]  }
 0x63f   :  { %2342 = vmatprep.subr.bf16.mxu1 %v4969_v3 }
 0x641   :  { %2224 = vmatpush1.bf16.msra.mxu0 %v4639_v28  ;;  %v4990_v28 = vld [vmem:[#allocation7 + $0x60] ss:$24 sps:$4 sm:$0xff]  }
 0x642   :  { %2225 = vmatprep.subr.bf16.mxu0 %v4642_v24  ;;  %2343 = vmatpush1.bf16.msra.mxu1 %v4974_v0  ;;  %v4993_v24 = vld [vmem:[#allocation7 + $0x34] ss:$24 sps:$4 sm:$0xff]  }
 0x643   :  { %2344 = vmatprep.subr.bf16.mxu1 %v4977_v61 }
 0x645   :  { %2226 = vmatpush1.bf16.msra.mxu0 %v4647_v18  ;;  %v4998_v18 = vld [vmem:[#allocation7 + $0x30] ss:$24 sps:$4 sm:$0xff]  }
 0x646   :  { %2227 = vmatprep.subr.bf16.mxu0 %v4650_v13  ;;  %2345 = vmatpush1.bf16.msra.mxu1 %v4982_v26  ;;  %v5001_v13 = vld [vmem:[#allocation7 + $0x4] ss:$24 sps:$4 sm:$0xff]  }
 0x647   :  { %2346 = vmatprep.subr.bf16.mxu1 %v4985_v36 }
 0x649   :  { %2228 = vmatpush1.bf16.msra.mxu0 %v4655_v40  ;;  %v5006_v40 = vld [vmem:[#allocation7] ss:$24 sps:$4 sm:$0xff]  }
 0x64a   :  { %2229 = vmatprep.subr.bf16.mxu0 %v4658_v32  ;;  %2347 = vmatpush1.bf16.msra.mxu1 %v4990_v28  ;;  %v5009_v32 = vld [vmem:[#allocation7 + $0x2d4] ss:$24 sps:$4 sm:$0xff]  }
 0x64b   :  { %2348 = vmatprep.subr.bf16.mxu1 %v4993_v24 }
 0x64d   :  { %2230 = vmatpush1.bf16.msra.mxu0 %v4663_v34  ;;  %v5014_v34 = vld [vmem:[#allocation7 + $0x2d0] ss:$24 sps:$4 sm:$0xff]  }
 0x64e   :  { %2231 = vmatprep.subr.bf16.mxu0 %v6010_v15  ;;  %2349 = vmatpush1.bf16.msra.mxu1 %v4998_v18  ;;  %v5017_v15 = vld [vmem:[#allocation7 + $0x2a4] ss:$24 sps:$4 sm:$0xff]  }
 0x64f   :  { %2350 = vmatprep.subr.bf16.mxu1 %v5001_v13 }
 0x651   :  { %2232 = vmatpush1.bf16.msra.mxu0 %v6011_v45  ;;  %v5022_v45 = vld [vmem:[#allocation7 + $0x2a0] ss:$24 sps:$4 sm:$0xff]  }
 0x652   :  { %2233 = vmatprep.subr.bf16.mxu0 %v6012_v39  ;;  %2351 = vmatpush1.bf16.msra.mxu1 %v5006_v40  ;;  %v5025_v39 = vld [vmem:[#allocation7 + $0x274] ss:$24 sps:$4 sm:$0xff]  }
 0x653   :  { %2352 = vmatprep.subr.bf16.mxu1 %v5009_v32 }
 0x655   :  { %2234 = vmatpush2.bf16.msra.mxu0 %v6013_v63  ;;  %v5030_v63 = vld [vmem:[#allocation7 + $0x270] ss:$24 sps:$4 sm:$0xff]  }
 0x656   :  { %2235 = vmatprep.subr.bf16.mxu0 %v6014_v6  ;;  %2353 = vmatpush2.bf16.msra.mxu1 %v5014_v34  ;;  %v5033_v6 = vld [vmem:[#allocation7 + $0x244] ss:$24 sps:$4 sm:$0xff]  }
 0x657   :  { %2354 = vmatprep.subr.bf16.mxu1 %v5017_v15 }
 0x659   :  { %2236 = vmatpush2.bf16.msra.mxu0 %v6015_v44  ;;  %v5038_v44 = vld [vmem:[#allocation7 + $0x240] ss:$24 sps:$4 sm:$0xff]  }
 0x65a   :  { %2237 = vmatprep.subr.bf16.mxu0 %v6016_v33  ;;  %2355 = vmatpush2.bf16.msra.mxu1 %v5022_v45  ;;  %v5041_v33 = vld [vmem:[#allocation7 + $0x214] ss:$24 sps:$4 sm:$0xff]  }
 0x65b   :  { %2356 = vmatprep.subr.bf16.mxu1 %v5025_v39 }
 0x65d   :  { %2238 = vmatpush2.bf16.msra.mxu0 %v6017_v29  ;;  %v5046_v29 = vld [vmem:[#allocation7 + $0x210] ss:$24 sps:$4 sm:$0xff]  }
 0x65e   :  { %2239 = vmatprep.subr.bf16.mxu0 %v6018_v35  ;;  %2357 = vmatpush2.bf16.msra.mxu1 %v5030_v63  ;;  %v5049_v35 = vld [vmem:[#allocation7 + $0x1e4] ss:$24 sps:$4 sm:$0xff]  }
 0x65f   :  { %2358 = vmatprep.subr.bf16.mxu1 %v5033_v6 }
 0x661   :  { %2240 = vmatpush2.bf16.msra.mxu0 %v6020_v23  ;;  %v5054_v23 = vld [vmem:[#allocation7 + $0x1e0] ss:$24 sps:$4 sm:$0xff]  }
 0x662   :  { %2241 = vmatprep.subr.bf16.mxu0 %v6021_v46  ;;  %2359 = vmatpush2.bf16.msra.mxu1 %v5038_v44  ;;  %v5057_v46 = vld [vmem:[#allocation7 + $0x1b4] ss:$24 sps:$4 sm:$0xff]  }
 0x663   :  { %2360 = vmatprep.subr.bf16.mxu1 %v5041_v33 }
 0x665   :  { %2242 = vmatpush2.bf16.msra.mxu0 %v6024_v52  ;;  %v5062_v52 = vld [vmem:[#allocation7 + $0x1b0] ss:$24 sps:$4 sm:$0xff]  }
 0x666   :  { %2243 = vmatprep.subr.bf16.mxu0 %v6025_v54  ;;  %2361 = vmatpush2.bf16.msra.mxu1 %v5046_v29  ;;  %v5065_v54 = vld [vmem:[#allocation7 + $0x184] ss:$24 sps:$4 sm:$0xff]  }
 0x667   :  { %2362 = vmatprep.subr.bf16.mxu1 %v5049_v35 }
 0x669   :  { %2244 = vmatpush2.bf16.msra.mxu0 %v6028_v60  ;;  %v5069_v60 = vld [vmem:[#allocation7 + $0x15c] ss:$24 sps:$4 sm:$0xff]  }
 0x66a   :  { %2245 = vmatprep.subr.bf16.mxu0 %v6029_v62  ;;  %2363 = vmatpush2.bf16.msra.mxu1 %v5054_v23  ;;  %v5072_v62 = vld [vmem:[#allocation7 + $0x180] ss:$24 sps:$4 sm:$0xff]  }
 0x66b   :  { %2364 = vmatprep.subr.bf16.mxu1 %v5057_v46 }
 0x66d   :  { %2246 = vmatpush2.bf16.msra.mxu0 %v6032_v5  ;;  %v5075_v5 = vld [vmem:[#allocation7 + $0x164] ss:$24 sps:$4 sm:$0xff]  }
 0x66e   :  { %2247 = vmatprep.subr.bf16.mxu0 %v6033_v16  ;;  %2365 = vmatpush2.bf16.msra.mxu1 %v5062_v52  ;;  %6077 = vst [vmem:[#allocation22_spill] sm:$0xff] %v5075_v5  ;;  %v5079_v16 = vld [vmem:[#allocation7 + $0x158] ss:$24 sps:$4 sm:$0xff]  }
 0x66f   :  { %2366 = vmatprep.subr.bf16.mxu1 %v5065_v54  ;;  %6078 = vst [vmem:[#allocation23_spill] sm:$0xff] %v5079_v16 }
 0x671   :  { %2248 = vmatpush2.bf16.msra.mxu0 %v6036_v14  ;;  %v5085_v14 = vld [vmem:[#allocation7 + $0x128] ss:$24 sps:$4 sm:$0xff]  }
 0x672   :  { %2377 = vmatprep.subr.bf16.mxu0 %v5069_v60  ;;  %2367 = vmatpush2.bf16.msra.mxu1 %v5072_v62  ;;  %6080 = vst [vmem:[#allocation25_spill] sm:$0xff] %v5085_v14 }
 0x673   :  { %2418 = vmatprep.subr.bf16.mxu1 %v5075_v5 }
 0x674   :  { %2250 = vmatmul.mubr.bf16.vlgmr.msra.gmra.mxu0 %v4944_v56  ;;  %v5124_v56 = vld [vmem:[#allocation7 + $0x2dc] ss:$24 sps:$4 sm:$0xff]  }
 0x675   :  { %2378 = vmatpush1.bf16.msra.mxu0 %v5079_v16  ;;  %6093 = vst [vmem:[#allocation39_spill] sm:$0xff] %v5124_v56 }
 0x676   :  { %2379 = vmatprep.subr.bf16.mxu0 %v5082_v1 }
 0x679   :  { %2380 = vmatpush1.bf16.msra.mxu0 %v5085_v14  ;;  %v6108_v14 = vld [vmem:[#allocation71_spill] sm:$0xff] }
 0x67a   :  { %2381 = vmatprep.subr.bf16.mxu0 %v5088_v19 }
 0x67d   :  { %2382 = vmatpush1.bf16.msra.mxu0 %v5091_v55 }
 0x67e   :  { %2383 = vmatprep.subr.bf16.mxu0 %v5094_v38 }
 0x681   :  { %2384 = vmatpush1.bf16.msra.mxu0 %v5097_v12 }
 0x682   :  { %2385 = vmatprep.subr.bf16.mxu0 %v5100_v4 }
 0x685   :  { %2386 = vmatpush1.bf16.msra.mxu0 %v5103_v50  ;;  %v6107_v50 = vld [vmem:[#allocation31_spill] sm:$0xff] }
 0x686   :  { %2387 = vmatprep.subr.bf16.mxu0 %v5106_v47  ;;  %v6105_v47 = vld [vmem:[#allocation75_spill] sm:$0xff] }
 0x689   :  { %2388 = vmatpush1.bf16.msra.mxu0 %v5109_v22  ;;  %v5127_v22 = vld [vmem:[#allocation7 + $0x2d8] ss:$24 sps:$4 sm:$0xff]  }
 0x68a   :  { %2389 = vmatprep.subr.bf16.mxu0 %v5112_v10  ;;  %6094 = vst [vmem:[#allocation41_spill] sm:$0xff] %v5127_v22  ;;  %v5130_v10 = vld [vmem:[#allocation7 + $0x2ac] ss:$24 sps:$4 sm:$0xff]  }
 0x68b   :  { %6095 = vst [vmem:[#allocation44_spill] sm:$0xff] %v5130_v10 }
 0x68d   :  { %2390 = vmatpush1.bf16.msra.mxu0 %v5115_v31  ;;  %v5133_v31 = vld [vmem:[#allocation7 + $0x2a8] ss:$24 sps:$4 sm:$0xff]  }
 0x68e   :  { %2391 = vmatprep.subr.bf16.mxu0 %v5118_v51  ;;  %6096 = vst [vmem:[#allocation46_spill] sm:$0xff] %v5133_v31  ;;  %v5136_v51 = vld [vmem:[#allocation7 + $0x27c] ss:$24 sps:$4 sm:$0xff]  }
 0x68f   :  { %6097 = vst [vmem:[#allocation43_spill] sm:$0xff] %v5136_v51 }
 0x691   :  { %2392 = vmatpush1.bf16.msra.mxu0 %v5121_v11  ;;  %v5139_v11 = vld [vmem:[#allocation7 + $0x278] ss:$24 sps:$4 sm:$0xff]  }
 0x692   :  { %2393 = vmatprep.subr.bf16.mxu0 %v5124_v56  ;;  %6098 = vst [vmem:[#allocation45_spill] sm:$0xff] %v5139_v11  ;;  %v5142_v56 = vld [vmem:[#allocation7 + $0x24c] ss:$24 sps:$4 sm:$0xff]  }
 0x693   :  { %6099 = vst [vmem:[#allocation48_spill] sm:$0xff] %v5142_v56 }
 0x695   :  { %2394 = vmatpush2.bf16.msra.mxu0 %v5127_v22  ;;  %v5145_v22 = vld [vmem:[#allocation7 + $0x248] ss:$24 sps:$4 sm:$0xff]  }
 0x696   :  { %2395 = vmatprep.subr.bf16.mxu0 %v5130_v10  ;;  %6100 = vst [vmem:[#allocation50_spill] sm:$0xff] %v5145_v22  ;;  %v5148_v10 = vld [vmem:[#allocation7 + $0x21c] ss:$24 sps:$4 sm:$0xff]  }
 0x697   :  { %6101 = vst [vmem:[#allocation47_spill] sm:$0xff] %v5148_v10 }
 0x699   :  { %2396 = vmatpush2.bf16.msra.mxu0 %v5133_v31  ;;  %v6103_v31 = vld [vmem:[#allocation58_spill] sm:$0xff] }
 0x69a   :  { %2397 = vmatprep.subr.bf16.mxu0 %v5136_v51  ;;  %v6102_v51 = vld [vmem:[#allocation56_spill] sm:$0xff] }
 0x69d   :  { %2398 = vmatpush2.bf16.msra.mxu0 %v5139_v11  ;;  %v6104_v11 = vld [vmem:[#allocation74_spill] sm:$0xff] }
 0x69e   :  { %2399 = vmatprep.subr.bf16.mxu0 %v5142_v56  ;;  %v6106_v56 = vld [vmem:[#allocation76_spill] sm:$0xff] }
 0x6a1   :  { %2400 = vmatpush2.bf16.msra.mxu0 %v5145_v22 }
 0x6a2   :  { %2401 = vmatprep.subr.bf16.mxu0 %v5148_v10 }
 0x6a5   :  { %2402 = vmatpush2.bf16.msra.mxu0 %v6064_v9 }
 0x6a6   :  { %2403 = vmatprep.subr.bf16.mxu0 %v6065_v20 }
 0x6a9   :  { %2404 = vmatpush2.bf16.msra.mxu0 %v6102_v51 }
 0x6aa   :  { %2405 = vmatprep.subr.bf16.mxu0 %v6103_v31 }
 0x6ad   :  { %2406 = vmatpush2.bf16.msra.mxu0 %v6104_v11 }
 0x6ae   :  { %2407 = vmatprep.subr.bf16.mxu0 %v6105_v47 }
 0x6b1   :  { %2408 = vmatpush2.bf16.msra.mxu0 %v6106_v56  ;;  %v6109_v56 = vrot.slane %v6072_v48, 5 }
 0x6b2   :  { %2533 = vmatprep.subr.bf16.mxu0 %v6107_v50 }
 0x6f4   :  { %v2169_v22 = vpop.f32.mrf.mxu0  ;;  %v2210_v4 = vpop.f32.mrf.mxu1 }
 0x6f5   :  { %v2170_v51 = vadd.f32 %v2169_v22, %v4185_v49  ;;  %v2211_v16 = vadd.f32 %v2210_v4, %v4199_v27 }
 0x6f6   :  { %v2171_v12 = vpop.f32.mrf.mxu0  ;;  %v2212_v10 = vpop.f32.mrf.mxu1 }
 0x6f7   :  { %v2172_v31 = vadd.f32 %v2171_v12, %v4187_v25  ;;  %v2260_v19 = vrot.slane %v2170_v51, 3  ;;  %v6110_v12 = vrot.slane %v6074_v58, 5 }
 0x6f8   :  { %v2173_v38 = vpop.f32.mrf.mxu0  ;;  %v2214_v9 = vpop.f32.mrf.mxu1 }
 0x6f9   :  { %v2261_v11 = vrot.slane %v2172_v31, 3  ;;  %v2264_v47 = vadd.f32 %v2260_v19, %v6108_v14  ;;  %v2213_v38 = vadd.f32 %v2212_v10, %v4201_v41 }
 0x6fa   :  { %v2174_v55 = vpop.f32.mrf.mxu0  ;;  %v2215_v20 = vpop.f32.mrf.mxu1 }
 0x6fb   :  { %v2265_v1 = vadd.f32 %v2261_v11, %v6109_v56  ;;  %v3020_v50 = vmul.f32 -1.442695, %v2264_v47  ;;  %v2280_v55 = vrot.slane %v2211_v16, 3  ;;  %v2281_v9 = vrot.slane %v2213_v38, 3 }
 0x6fd   :  { %v3021_v5 = vmul.f32 -1.442695, %v2265_v1  ;;  %3389 = vpow2.f32 %v3020_v50  ;;  %v2284_v22 = vadd.f32 %v2280_v55, %v5914_v21  ;;  %v2285_v20 = vadd.f32 %v2281_v9, %v6110_v12 }
 0x6ff   :  { %3391 = vpow2.f32 %v3021_v5  ;;  %v3022_v51 = vmul.f32 -1.442695, %v2284_v22  ;;  %v3023_v19 = vmul.f32 -1.442695, %v2285_v20 }
 0x701   :  { %3393 = vpow2.f32 %v3022_v51 }
 0x702   :  { %3395 = vpow2.f32 %v3023_v19 }
 0x70a   :  { %v3390_v31 = vpop.eup %3389 }
 0x70b   :  { %v2272_v47 = vadd.f32 1.0, %v3390_v31 }
 0x70c   :  { %v3392_v11 = vpop.eup %3391 }
 0x70d   :  { %v2273_v4 = vadd.f32 1.0, %v3392_v11  ;;  %3397 = vrcp.f32 %v2272_v47 }
 0x70e   :  { %v3394_v1 = vpop.eup %3393 }
 0x70f   :  { %3399 = vrcp.f32 %v2273_v4  ;;  %v3396_v10 = vpop.eup %3395  ;;  %v2292_v5 = vadd.f32 1.0, %v3394_v1  ;;  %v6111_v4 = vrot.slane %v4218_v17, 5 }
 0x710   :  { %v2293_v38 = vadd.f32 1.0, %v3396_v10 }
 0x711   :  { %3401 = vrcp.f32 %v2292_v5  ;;  %v2317_v5 = vrot.slane %v4938_v59, 7 }
 0x712   :  { %3403 = vrcp.f32 %v2293_v38 }
 0x71a   :  { %v3398_v22 = vpop.eup %3397 }
 0x71c   :  { %v3400_v19 = vpop.eup %3399 }
 0x71e   :  { %v3402_v10 = vpop.eup %3401 }
 0x734   :  { %v2251_v16 = vpop.f32.mrf.mxu0 }
 0x735   :  { %v2252_v56 = vadd.f32 %v2251_v16, %v4213_v57  ;;  %v3404_v16 = vpop.eup %3403 }
 0x736   :  { %v2253_v50 = vpop.f32.mrf.mxu0 }
 0x737   :  { %v2300_v55 = vrot.slane %v2252_v56, 3  ;;  %v2254_v9 = vadd.f32 %v2253_v50, %v4215_v53  ;;  %v2316_v56 = vrot.slane %v4936_v43, 7  ;;  %v2310_v50 = vsub.f32 1.0, %v3402_v10 }
 0x738   :  { %v2255_v12 = vpop.f32.mrf.mxu0 }
 0x739   :  { %v2304_v20 = vmul.f32 %v3398_v22, %v2300_v55  ;;  %v2301_v51 = vrot.slane %v2254_v9, 3  ;;  %v2311_v55 = vsub.f32 1.0, %v3404_v16  ;;  %v2320_v22 = vmul.f32 %v3402_v10, %v2316_v56  ;;  %v5188_v10 = vld [vmem:[#allocation7 + $0x160] ss:$24 sps:$4 sm:$0xff]   ;;  %v5196_v56 = vld [vmem:[#allocation7 + $0x130] ss:$24 sps:$4 sm:$0xff]  }
 0x73a   :  { %v2256_v31 = vpop.f32.mrf.mxu0 }
 0x73b   :  { %v2306_v11 = vadd.f32 %v2304_v20, %v4222_v42  ;;  %v2305_v47 = vmul.f32 %v3400_v19, %v2301_v51  ;;  %v2321_v20 = vmul.f32 %v3404_v16, %v2317_v5  ;;  %v5191_v16 = vld [vmem:[#allocation7 + $0x134] ss:$24 sps:$4 sm:$0xff]  }
 0x73c   :  { %v5207_v5 = vld [vmem:[#allocation7 + $0xd4] ss:$24 sps:$4 sm:$0xff]  }
 0x73d   :  { %3405 = vtanh.f32 %v2306_v11  ;;  %v2307_v1 = vadd.f32 %v2305_v47, %v6111_v4 }
 0x73f   :  { %3407 = vtanh.f32 %v2307_v1 }
 0x74a   :  { %v3406_v12 = vpop.eup %3405 }
 0x74b   :  { %v2312_v9 = vmul.f32 %v3406_v12, %v2310_v50  ;;  %v5199_v50 = vld [vmem:[#allocation7 + $0x104] ss:$24 sps:$4 sm:$0xff]   ;;  %v5204_v12 = vld [vmem:[#allocation7 + $0x100] ss:$24 sps:$4 sm:$0xff]  }
 0x74c   :  { %v3408_v38 = vpop.eup %3407 }
 0x74d   :  { %v2313_v31 = vmul.f32 %v3408_v38, %v2311_v55  ;;  %v5176_v51 = vadd.f32 %v2320_v22, %v2312_v9  ;;  %v6115_v55 = vld [vmem:[#allocation25_spill] sm:$0xff]  ;;  %v6118_v9 = vld [vmem:[#allocation30_spill] sm:$0xff]  ;;  %v6119_v22 = vld [vmem:[#allocation32_spill] sm:$0xff] }
 0x74e   :  { %v6122_v38 = vld [vmem:[#allocation36_spill] sm:$0xff] }
 0x74f   :  { %v5178_v19 = vadd.f32 %v2321_v20, %v2313_v31  ;;  %v2324_v11 = vpack.c.bf16 %v5176_v51, %v5176_v51  ;;  %v6123_v31 = vld [vmem:[#allocation38_spill] sm:$0xff]  ;;  %v6124_v20 = vld [vmem:[#allocation35_spill] sm:$0xff] }
 0x751   :  { %v2325_v43 = vpack.c.bf16 %v5178_v19, %v5178_v19  ;;  %v2327_v47 = vshrl.u32 %v2324_v11, 16  ;;  %v6125_v11 = vld [vmem:[#allocation37_spill] sm:$0xff] }
 0x753   :  { %v2331_v4 = vshrl.u32 %v2325_v43, 16  ;;  %v5184_v59 = vrot.slane %v2327_v47, 2  ;;  %v6126_v43 = vld [vmem:[#allocation40_spill] sm:$0xff]  ;;  %v6127_v47 = vld [vmem:[#allocation42_spill] sm:$0xff] }
 0x755   :  { %v2333_v1 = vrot.slane %v2331_v4, 2  ;;  %v6128_v4 = vld [vmem:[#allocation39_spill] sm:$0xff] }
 0x757   :  { %2368 = vmatprep.mubr.bf16.mxu1 %v2333_v1  ;;  %2409 = vmatprep.mubr.bf16.mxu0 %v2333_v1 }
 0x758   :  { %2369 = vmatmul.mubr.bf16.vlgmr.msra.gmra.mxu1 %v5184_v59  ;;  %2410 = vmatmul.mubr.bf16.vlgmr.msra.gmra.mxu0 %v5184_v59 }
 0x759   :  { %2419 = vmatpush1.bf16.msra.mxu1 %v5188_v10  ;;  %2450 = vmatprep.mubr.bf16.mxu1 %v2333_v1  ;;  %v6129_v1 = vld [vmem:[#allocation41_spill] sm:$0xff] }
 0x75a   :  { %2420 = vmatprep.subr.bf16.mxu1 %v5191_v16  ;;  %2534 = vmatpush1.bf16.msra.mxu0 %v4950_v7  ;;  %v5212_v7 = vld [vmem:[#allocation7 + $0xd0] ss:$24 sps:$4 sm:$0xff]  }
 0x75b   :  { %2535 = vmatprep.subr.bf16.mxu0 %v4953_v8  ;;  %v5215_v8 = vld [vmem:[#allocation7 + $0xa4] ss:$24 sps:$4 sm:$0xff]  }
 0x75d   :  { %2421 = vmatpush1.bf16.msra.mxu1 %v5196_v56 }
 0x75e   :  { %2422 = vmatprep.subr.bf16.mxu1 %v5199_v50  ;;  %2536 = vmatpush1.bf16.msra.mxu0 %v4958_v2  ;;  %v5220_v2 = vld [vmem:[#allocation7 + $0xa0] ss:$24 sps:$4 sm:$0xff]  }
 0x75f   :  { %2537 = vmatprep.subr.bf16.mxu0 %v4961_v37  ;;  %v5223_v37 = vld [vmem:[#allocation7 + $0x74] ss:$24 sps:$4 sm:$0xff]  }
 0x761   :  { %2423 = vmatpush1.bf16.msra.mxu1 %v5204_v12 }
 0x762   :  { %2424 = vmatprep.subr.bf16.mxu1 %v5207_v5  ;;  %2538 = vmatpush1.bf16.msra.mxu0 %v4966_v30  ;;  %v5228_v30 = vld [vmem:[#allocation7 + $0x70] ss:$24 sps:$4 sm:$0xff]  }
 0x763   :  { %2539 = vmatprep.subr.bf16.mxu0 %v4969_v3  ;;  %v5231_v3 = vld [vmem:[#allocation7 + $0x44] ss:$24 sps:$4 sm:$0xff]  }
 0x765   :  { %2425 = vmatpush1.bf16.msra.mxu1 %v5212_v7 }
 0x766   :  { %2426 = vmatprep.subr.bf16.mxu1 %v5215_v8  ;;  %2540 = vmatpush1.bf16.msra.mxu0 %v4974_v0  ;;  %v5236_v0 = vld [vmem:[#allocation7 + $0x40] ss:$24 sps:$4 sm:$0xff]  }
 0x767   :  { %2541 = vmatprep.subr.bf16.mxu0 %v4977_v61  ;;  %v5239_v61 = vld [vmem:[#allocation7 + $0x14] ss:$24 sps:$4 sm:$0xff]  }
 0x769   :  { %2427 = vmatpush1.bf16.msra.mxu1 %v5220_v2 }
 0x76a   :  { %2428 = vmatprep.subr.bf16.mxu1 %v5223_v37  ;;  %2542 = vmatpush1.bf16.msra.mxu0 %v4982_v26  ;;  %v5244_v26 = vld [vmem:[#allocation7 + $0x10] ss:$24 sps:$4 sm:$0xff]  }
 0x76b   :  { %2543 = vmatprep.subr.bf16.mxu0 %v4985_v36  ;;  %v5247_v36 = vld [vmem:[#allocation7 + $0x2e4] ss:$24 sps:$4 sm:$0xff]  }
 0x76d   :  { %2429 = vmatpush1.bf16.msra.mxu1 %v5228_v30 }
 0x76e   :  { %2430 = vmatprep.subr.bf16.mxu1 %v5231_v3  ;;  %2544 = vmatpush1.bf16.msra.mxu0 %v4990_v28  ;;  %v5252_v28 = vld [vmem:[#allocation7 + $0x2e0] ss:$24 sps:$4 sm:$0xff]  }
 0x76f   :  { %2545 = vmatprep.subr.bf16.mxu0 %v4993_v24  ;;  %v5255_v24 = vld [vmem:[#allocation7 + $0x2b4] ss:$24 sps:$4 sm:$0xff]  }
 0x771   :  { %2431 = vmatpush1.bf16.msra.mxu1 %v5236_v0 }
 0x772   :  { %2432 = vmatprep.subr.bf16.mxu1 %v5239_v61  ;;  %2546 = vmatpush1.bf16.msra.mxu0 %v4998_v18  ;;  %v5260_v18 = vld [vmem:[#allocation7 + $0x2b0] ss:$24 sps:$4 sm:$0xff]  }
 0x773   :  { %2547 = vmatprep.subr.bf16.mxu0 %v5001_v13  ;;  %v5263_v13 = vld [vmem:[#allocation7 + $0x284] ss:$24 sps:$4 sm:$0xff]  }
 0x775   :  { %2433 = vmatpush1.bf16.msra.mxu1 %v5244_v26 }
 0x776   :  { %2434 = vmatprep.subr.bf16.mxu1 %v5247_v36  ;;  %2548 = vmatpush1.bf16.msra.mxu0 %v5006_v40  ;;  %v5268_v40 = vld [vmem:[#allocation7 + $0x280] ss:$24 sps:$4 sm:$0xff]  }
 0x777   :  { %2549 = vmatprep.subr.bf16.mxu0 %v5009_v32  ;;  %v5271_v32 = vld [vmem:[#allocation7 + $0x254] ss:$24 sps:$4 sm:$0xff]  }
 0x779   :  { %2435 = vmatpush2.bf16.msra.mxu1 %v5252_v28 }
 0x77a   :  { %2436 = vmatprep.subr.bf16.mxu1 %v5255_v24  ;;  %2550 = vmatpush2.bf16.msra.mxu0 %v5014_v34  ;;  %v5276_v34 = vld [vmem:[#allocation7 + $0x250] ss:$24 sps:$4 sm:$0xff]  }
 0x77b   :  { %2551 = vmatprep.subr.bf16.mxu0 %v5017_v15  ;;  %v5279_v15 = vld [vmem:[#allocation7 + $0x224] ss:$24 sps:$4 sm:$0xff]  }
 0x77d   :  { %2437 = vmatpush2.bf16.msra.mxu1 %v5260_v18 }
 0x77e   :  { %2438 = vmatprep.subr.bf16.mxu1 %v5263_v13  ;;  %2552 = vmatpush2.bf16.msra.mxu0 %v5022_v45  ;;  %v5284_v45 = vld [vmem:[#allocation7 + $0x220] ss:$24 sps:$4 sm:$0xff]  }
 0x77f   :  { %2553 = vmatprep.subr.bf16.mxu0 %v5025_v39  ;;  %v5287_v39 = vld [vmem:[#allocation7 + $0x1f4] ss:$24 sps:$4 sm:$0xff]  }
 0x781   :  { %2439 = vmatpush2.bf16.msra.mxu1 %v5268_v40 }
 0x782   :  { %2440 = vmatprep.subr.bf16.mxu1 %v5271_v32  ;;  %2554 = vmatpush2.bf16.msra.mxu0 %v5030_v63  ;;  %v5292_v63 = vld [vmem:[#allocation7 + $0x1f0] ss:$24 sps:$4 sm:$0xff]  }
 0x783   :  { %2555 = vmatprep.subr.bf16.mxu0 %v5033_v6  ;;  %v5295_v6 = vld [vmem:[#allocation7 + $0x1c4] ss:$24 sps:$4 sm:$0xff]  }
 0x785   :  { %2441 = vmatpush2.bf16.msra.mxu1 %v5276_v34 }
 0x786   :  { %2442 = vmatprep.subr.bf16.mxu1 %v5279_v15  ;;  %2556 = vmatpush2.bf16.msra.mxu0 %v5038_v44  ;;  %v5300_v44 = vld [vmem:[#allocation7 + $0x1c0] ss:$24 sps:$4 sm:$0xff]  }
 0x787   :  { %2557 = vmatprep.subr.bf16.mxu0 %v5041_v33  ;;  %v5303_v33 = vld [vmem:[#allocation7 + $0x194] ss:$24 sps:$4 sm:$0xff]  }
 0x789   :  { %2443 = vmatpush2.bf16.msra.mxu1 %v5284_v45 }
 0x78a   :  { %2444 = vmatprep.subr.bf16.mxu1 %v5287_v39  ;;  %2558 = vmatpush2.bf16.msra.mxu0 %v5046_v29  ;;  %v5308_v29 = vld [vmem:[#allocation7 + $0x190] ss:$24 sps:$4 sm:$0xff]  }
 0x78b   :  { %2559 = vmatprep.subr.bf16.mxu0 %v5049_v35  ;;  %v6112_v35 = vld [vmem:[#allocation22_spill] sm:$0xff] }
 0x78d   :  { %2445 = vmatpush2.bf16.msra.mxu1 %v5292_v63 }
 0x78e   :  { %2446 = vmatprep.subr.bf16.mxu1 %v5295_v6  ;;  %2560 = vmatpush2.bf16.msra.mxu0 %v5054_v23  ;;  %v6113_v23 = vld [vmem:[#allocation23_spill] sm:$0xff] }
 0x78f   :  { %2561 = vmatprep.subr.bf16.mxu0 %v5057_v46  ;;  %v6114_v46 = vld [vmem:[#allocation24_spill] sm:$0xff] }
 0x791   :  { %2447 = vmatpush2.bf16.msra.mxu1 %v5300_v44 }
 0x792   :  { %2448 = vmatprep.subr.bf16.mxu1 %v5303_v33  ;;  %2562 = vmatpush2.bf16.msra.mxu0 %v5062_v52  ;;  %v6116_v52 = vld [vmem:[#allocation27_spill] sm:$0xff] }
 0x793   :  { %2563 = vmatprep.subr.bf16.mxu0 %v5065_v54  ;;  %v6117_v54 = vld [vmem:[#allocation28_spill] sm:$0xff] }
 0x795   :  { %2449 = vmatpush2.bf16.msra.mxu1 %v5308_v29 }
 0x796   :  { %2574 = vmatprep.subr.bf16.mxu1 %v5069_v60  ;;  %2564 = vmatpush2.bf16.msra.mxu0 %v5072_v62  ;;  %v6120_v60 = vld [vmem:[#allocation34_spill] sm:$0xff]  ;;  %v6121_v62 = vld [vmem:[#allocation33_spill] sm:$0xff] }
 0x797   :  { %2615 = vmatprep.subr.bf16.mxu0 %v6112_v35  ;;  %v6131_v35 = vld [vmem:[#allocation46_spill] sm:$0xff] }
 0x798   :  { %2451 = vmatmul.mubr.bf16.vlgmr.msra.gmra.mxu1 %v5184_v59  ;;  %v6130_v59 = vld [vmem:[#allocation44_spill] sm:$0xff] }
 0x799   :  { %2575 = vmatpush1.bf16.msra.mxu1 %v6113_v23  ;;  %v6132_v23 = vld [vmem:[#allocation43_spill] sm:$0xff] }
 0x79a   :  { %2576 = vmatprep.subr.bf16.mxu1 %v6114_v46  ;;  %v6133_v46 = vld [vmem:[#allocation45_spill] sm:$0xff] }
 0x79d   :  { %2577 = vmatpush1.bf16.msra.mxu1 %v6115_v55  ;;  %v6134_v55 = vld [vmem:[#allocation48_spill] sm:$0xff] }
 0x79e   :  { %2578 = vmatprep.subr.bf16.mxu1 %v6116_v52  ;;  %v6135_v52 = vld [vmem:[#allocation50_spill] sm:$0xff] }
 0x7a1   :  { %2579 = vmatpush1.bf16.msra.mxu1 %v6117_v54  ;;  %v6136_v54 = vld [vmem:[#allocation47_spill] sm:$0xff] }
 0x7a2   :  { %2580 = vmatprep.subr.bf16.mxu1 %v6118_v9  ;;  %v3634_v9 = vld [vmem:[#allocation7 + $0x218] ss:$24 sps:$4 sm:$0xff]  }
 0x7a5   :  { %2581 = vmatpush1.bf16.msra.mxu1 %v6119_v22  ;;  %v3635_v22 = vld [vmem:[#allocation7 + $0x1ec] ss:$24 sps:$4 sm:$0xff]  }
 0x7a6   :  { %2582 = vmatprep.subr.bf16.mxu1 %v6120_v60  ;;  %v3636_v60 = vld [vmem:[#allocation7 + $0x1e8] ss:$24 sps:$4 sm:$0xff]  }
 0x7a9   :  { %2583 = vmatpush1.bf16.msra.mxu1 %v6121_v62  ;;  %v3637_v62 = vld [vmem:[#allocation7 + $0x1bc] ss:$24 sps:$4 sm:$0xff]  }
 0x7aa   :  { %2584 = vmatprep.subr.bf16.mxu1 %v6122_v38  ;;  %v3638_v38 = vld [vmem:[#allocation7 + $0x1b8] ss:$24 sps:$4 sm:$0xff]  }
 0x7ad   :  { %2585 = vmatpush1.bf16.msra.mxu1 %v6123_v31  ;;  %v3639_v31 = vld [vmem:[#allocation7 + $0x18c] ss:$24 sps:$4 sm:$0xff]  }
 0x7ae   :  { %2586 = vmatprep.subr.bf16.mxu1 %v6124_v20  ;;  %v3640_v20 = vld [vmem:[#allocation7 + $0x188] ss:$24 sps:$4 sm:$0xff]  }
 0x7b1   :  { %2587 = vmatpush1.bf16.msra.mxu1 %v6125_v11 }
 0x7b2   :  { %2588 = vmatprep.subr.bf16.mxu1 %v6126_v43 }
 0x7b5   :  { %2589 = vmatpush1.bf16.msra.mxu1 %v6127_v47 }
 0x7b6   :  { %2590 = vmatprep.subr.bf16.mxu1 %v6128_v4 }
 0x7b9   :  { %2591 = vmatpush2.bf16.msra.mxu1 %v6129_v1 }
 0x7ba   :  { %2592 = vmatprep.subr.bf16.mxu1 %v6130_v59 }
 0x7bd   :  { %2593 = vmatpush2.bf16.msra.mxu1 %v6131_v35 }
 0x7be   :  { %2594 = vmatprep.subr.bf16.mxu1 %v6132_v23 }
 0x7c1   :  { %2595 = vmatpush2.bf16.msra.mxu1 %v6133_v46 }
 0x7c2   :  { %2596 = vmatprep.subr.bf16.mxu1 %v6134_v55 }
 0x7c5   :  { %2597 = vmatpush2.bf16.msra.mxu1 %v6135_v52 }
 0x7c6   :  { %2598 = vmatprep.subr.bf16.mxu1 %v6136_v54 }
 0x7c9   :  { %2599 = vmatpush2.bf16.msra.mxu1 %v3634_v9 }
 0x7ca   :  { %2600 = vmatprep.subr.bf16.mxu1 %v3635_v22  ;;  %v6137_v22 = vrot.slane %v6072_v48, 3 }
 0x7cd   :  { %2601 = vmatpush2.bf16.msra.mxu1 %v3636_v60 }
 0x7ce   :  { %2602 = vmatprep.subr.bf16.mxu1 %v3637_v62 }
 0x7d1   :  { %2603 = vmatpush2.bf16.msra.mxu1 %v3638_v38 }
 0x7d2   :  { %2604 = vmatprep.subr.bf16.mxu1 %v3639_v31 }
 0x7d5   :  { %2605 = vmatpush2.bf16.msra.mxu1 %v3640_v20 }
 0x818   :  { %v2370_v11 = vpop.f32.mrf.mxu1  ;;  %v2411_v43 = vpop.f32.mrf.mxu0 }
 0x819   :  { %v2371_v46 = vadd.f32 %v2370_v11, %v4185_v49  ;;  %v2412_v38 = vadd.f32 %v2411_v43, %v4199_v27 }
 0x81a   :  { %v2372_v47 = vpop.f32.mrf.mxu1  ;;  %v2413_v4 = vpop.f32.mrf.mxu0 }
 0x81b   :  { %v2373_v55 = vadd.f32 %v2372_v47, %v4187_v25  ;;  %v2461_v52 = vrot.slane %v2371_v46, 2  ;;  %v2414_v20 = vadd.f32 %v2413_v4, %v4201_v41  ;;  %v6138_v47 = vrot.slane %v6074_v58, 3 }
 0x81c   :  { %v2374_v1 = vpop.f32.mrf.mxu1  ;;  %v2415_v59 = vpop.f32.mrf.mxu0 }
 0x81d   :  { %v2462_v54 = vrot.slane %v2373_v55, 2  ;;  %v2465_v9 = vadd.f32 %v2461_v52, %v6108_v14  ;;  %v2481_v1 = vrot.slane %v2412_v38, 2  ;;  %v2482_v59 = vrot.slane %v2414_v20, 2 }
 0x81e   :  { %v2375_v35 = vpop.f32.mrf.mxu1  ;;  %v2416_v23 = vpop.f32.mrf.mxu0 }
 0x81f   :  { %v2466_v60 = vadd.f32 %v2462_v54, %v6137_v22  ;;  %v3024_v62 = vmul.f32 -1.442695, %v2465_v9  ;;  %v2485_v11 = vadd.f32 %v2481_v1, %v5914_v21  ;;  %v2486_v35 = vadd.f32 %v2482_v59, %v6138_v47 }
 0x821   :  { %v3025_v31 = vmul.f32 -1.442695, %v2466_v60  ;;  %3409 = vpow2.f32 %v3024_v62  ;;  %v3026_v23 = vmul.f32 -1.442695, %v2485_v11  ;;  %v3027_v46 = vmul.f32 -1.442695, %v2486_v35 }
 0x823   :  { %3411 = vpow2.f32 %v3025_v31 }
 0x824   :  { %3413 = vpow2.f32 %v3026_v23 }
 0x825   :  { %3415 = vpow2.f32 %v3027_v46 }
 0x82e   :  { %v3410_v55 = vpop.eup %3409 }
 0x82f   :  { %v2473_v54 = vadd.f32 1.0, %v3410_v55 }
 0x830   :  { %v3412_v52 = vpop.eup %3411 }
 0x831   :  { %v2474_v43 = vadd.f32 1.0, %v3412_v52  ;;  %3417 = vrcp.f32 %v2473_v54  ;;  %v3414_v9 = vpop.eup %3413  ;;  %v6139_v54 = vrot.slane %v4218_v17, 3 }
 0x832   :  { %v3416_v4 = vpop.eup %3415  ;;  %v2493_v60 = vadd.f32 1.0, %v3414_v9 }
 0x833   :  { %3419 = vrcp.f32 %v2474_v43  ;;  %v2494_v31 = vadd.f32 1.0, %v3416_v4 }
 0x834   :  { %3421 = vrcp.f32 %v2493_v60  ;;  %v2518_v60 = vrot.slane %v5178_v19, 7  ;;  %v2755_v19 = vld [vmem:[%s5520_s6 + $0xf8] sm:$0xff] }
 0x835   :  { %3423 = vrcp.f32 %v2494_v31  ;;  %3032 = vmatprep.subr.mxu1 %v2755_v19 }
 0x83e   :  { %v3418_v59 = vpop.eup %3417 }
 0x840   :  { %v3420_v23 = vpop.eup %3419 }
 0x841   :  { %v3422_v9 = vpop.eup %3421 }
 0x842   :  { %v3424_v4 = vpop.eup %3423 }
 0x858   :  { %v2452_v22 = vpop.f32.mrf.mxu1 }
 0x859   :  { %v2453_v62 = vadd.f32 %v2452_v22, %v4213_v57  ;;  %v2517_v22 = vrot.slane %v5176_v51, 7 }
 0x85a   :  { %v2454_v38 = vpop.f32.mrf.mxu1 }
 0x85b   :  { %v2501_v20 = vrot.slane %v2453_v62, 2  ;;  %v2455_v1 = vadd.f32 %v2454_v38, %v4215_v53  ;;  %v2511_v62 = vsub.f32 1.0, %v3422_v9 }
 0x85c   :  { %v2456_v11 = vpop.f32.mrf.mxu1 }
 0x85d   :  { %v2505_v47 = vmul.f32 %v3418_v59, %v2501_v20  ;;  %v2502_v35 = vrot.slane %v2455_v1, 2  ;;  %v2512_v20 = vsub.f32 1.0, %v3424_v4  ;;  %v2521_v59 = vmul.f32 %v3422_v9, %v2517_v22 }
 0x85e   :  { %v2457_v46 = vpop.f32.mrf.mxu1 }
 0x85f   :  { %v2507_v55 = vadd.f32 %v2505_v47, %v4222_v42  ;;  %v2506_v52 = vmul.f32 %v3420_v23, %v2502_v35  ;;  %v2522_v47 = vmul.f32 %v3424_v4, %v2518_v60 }
 0x861   :  { %3425 = vtanh.f32 %v2507_v55  ;;  %v2508_v43 = vadd.f32 %v2506_v52, %v6139_v54 }
 0x863   :  { %3427 = vtanh.f32 %v2508_v43 }
 0x86e   :  { %v3426_v38 = vpop.eup %3425 }
 0x86f   :  { %v2513_v1 = vmul.f32 %v3426_v38, %v2511_v62 }
 0x870   :  { %v3428_v31 = vpop.eup %3427 }
 0x871   :  { %v2514_v11 = vmul.f32 %v3428_v31, %v2512_v20  ;;  %v5356_v35 = vadd.f32 %v2521_v59, %v2513_v1 }
 0x873   :  { %v5358_v23 = vadd.f32 %v2522_v47, %v2514_v11  ;;  %v2525_v46 = vpack.c.bf16 %v5356_v35, %v5356_v35  ;;  %v6140_v47 = vrot.slane %v6072_v48, 1 }
 0x875   :  { %v2526_v51 = vpack.c.bf16 %v5358_v23, %v5358_v23  ;;  %v2529_v52 = vrot.slane %v2525_v46, 3 }
 0x877   :  { %v2530_v55 = vrot.slane %v2526_v51, 3 }
 0x879   :  { %2565 = vmatprep.mubr.bf16.mxu0 %v2530_v55  ;;  %2606 = vmatprep.mubr.bf16.mxu1 %v2530_v55 }
 0x87a   :  { %2566 = vmatmul.mubr.bf16.vlgmr.msra.gmra.mxu0 %v2529_v52  ;;  %2607 = vmatmul.mubr.bf16.vlgmr.msra.gmra.mxu1 %v2529_v52 }
 0x87b   :  { %2616 = vmatpush1.bf16.msra.mxu0 %v5188_v10  ;;  %2647 = vmatprep.mubr.bf16.mxu0 %v2530_v55  ;;  %v2739_v10 = vld [vmem:[%s5520_s6 + $0x78] sm:$0xff] }
 0x87c   :  { %2617 = vmatprep.subr.bf16.mxu0 %v5191_v16  ;;  %3033 = vmatpush3.msra.mxu1 %v2739_v10  ;;  %v2754_v16 = vld [vmem:[%s5520_s6 + $0xf0] sm:$0xff] }
 0x87d   :  { %3034 = vmatprep.subr.mxu1 %v2754_v16 }
 0x87f   :  { %2618 = vmatpush1.bf16.msra.mxu0 %v5196_v56  ;;  %v2738_v56 = vld [vmem:[%s5520_s6 + $0x70] sm:$0xff] }
 0x880   :  { %2619 = vmatprep.subr.bf16.mxu0 %v5199_v50  ;;  %3035 = vmatpush3.msra.mxu1 %v2738_v56  ;;  %v2753_v50 = vld [vmem:[%s5520_s6 + $0xe8] sm:$0xff] }
 0x881   :  { %3036 = vmatprep.subr.mxu1 %v2753_v50 }
 0x883   :  { %2620 = vmatpush1.bf16.msra.mxu0 %v5204_v12  ;;  %v2737_v12 = vld [vmem:[%s5520_s6 + $0x68] sm:$0xff] }
 0x884   :  { %2621 = vmatprep.subr.bf16.mxu0 %v5207_v5  ;;  %3037 = vmatpush3.msra.mxu1 %v2737_v12  ;;  %v2752_v5 = vld [vmem:[%s5520_s6 + $0xe0] sm:$0xff] }
 0x885   :  { %3038 = vmatprep.subr.mxu1 %v2752_v5 }
 0x887   :  { %2622 = vmatpush1.bf16.msra.mxu0 %v5212_v7  ;;  %v2736_v7 = vld [vmem:[%s5520_s6 + $0x60] sm:$0xff] }
 0x888   :  { %2623 = vmatprep.subr.bf16.mxu0 %v5215_v8  ;;  %3039 = vmatpush3.msra.mxu1 %v2736_v7  ;;  %v2751_v8 = vld [vmem:[%s5520_s6 + $0xd8] sm:$0xff] }
 0x889   :  { %3040 = vmatprep.subr.mxu1 %v2751_v8 }
 0x88b   :  { %2624 = vmatpush1.bf16.msra.mxu0 %v5220_v2  ;;  %v2735_v2 = vld [vmem:[%s5520_s6 + $0x58] sm:$0xff] }
 0x88c   :  { %2625 = vmatprep.subr.bf16.mxu0 %v5223_v37  ;;  %3041 = vmatpush3.msra.mxu1 %v2735_v2  ;;  %v2750_v37 = vld [vmem:[%s5520_s6 + $0xd0] sm:$0xff] }
 0x88d   :  { %3042 = vmatprep.subr.mxu1 %v2750_v37 }
 0x88f   :  { %2626 = vmatpush1.bf16.msra.mxu0 %v5228_v30  ;;  %v2734_v30 = vld [vmem:[%s5520_s6 + $0x50] sm:$0xff] }
 0x890   :  { %2627 = vmatprep.subr.bf16.mxu0 %v5231_v3  ;;  %v2749_v3 = vld [vmem:[%s5520_s6 + $0xc8] sm:$0xff]  ;;  %3043 = vmatpush3.msra.mxu1 %v2734_v30 }
 0x891   :  { %3044 = vmatprep.subr.mxu1 %v2749_v3 }
 0x893   :  { %2628 = vmatpush1.bf16.msra.mxu0 %v5236_v0  ;;  %v2733_v0 = vld [vmem:[%s5520_s6 + $0x48] sm:$0xff] }
 0x894   :  { %2629 = vmatprep.subr.bf16.mxu0 %v5239_v61  ;;  %v2748_v61 = vld [vmem:[%s5520_s6 + $0xc0] sm:$0xff]  ;;  %3045 = vmatpush3.msra.mxu1 %v2733_v0 }
 0x895   :  { %3046 = vmatprep.subr.mxu1 %v2748_v61 }
 0x897   :  { %2630 = vmatpush1.bf16.msra.mxu0 %v5244_v26  ;;  %v2732_v26 = vld [vmem:[%s5520_s6 + $0x40] sm:$0xff] }
 0x898   :  { %2631 = vmatprep.subr.bf16.mxu0 %v5247_v36  ;;  %v2747_v36 = vld [vmem:[%s5520_s6 + $0xb8] sm:$0xff]  ;;  %3047 = vmatpush3.msra.mxu1 %v2732_v26 }
 0x899   :  { %3048 = vmatprep.subr.mxu1 %v2747_v36 }
 0x89b   :  { %2632 = vmatpush2.bf16.msra.mxu0 %v5252_v28  ;;  %v2731_v28 = vld [vmem:[%s5520_s6 + $0x38] sm:$0xff] }
 0x89c   :  { %2633 = vmatprep.subr.bf16.mxu0 %v5255_v24  ;;  %v2746_v24 = vld [vmem:[%s5520_s6 + $0xb0] sm:$0xff]  ;;  %3049 = vmatpush3.msra.mxu1 %v2731_v28 }
 0x89d   :  { %3050 = vmatprep.subr.mxu1 %v2746_v24 }
 0x89f   :  { %2634 = vmatpush2.bf16.msra.mxu0 %v5260_v18  ;;  %v2730_v18 = vld [vmem:[%s5520_s6 + $0x30] sm:$0xff] }
 0x8a0   :  { %2635 = vmatprep.subr.bf16.mxu0 %v5263_v13  ;;  %v2745_v13 = vld [vmem:[%s5520_s6 + $0xa8] sm:$0xff]  ;;  %3051 = vmatpush3.msra.mxu1 %v2730_v18 }
 0x8a1   :  { %3052 = vmatprep.subr.mxu1 %v2745_v13 }
 0x8a3   :  { %2636 = vmatpush2.bf16.msra.mxu0 %v5268_v40  ;;  %v2729_v40 = vld [vmem:[%s5520_s6 + $0x28] sm:$0xff] }
 0x8a4   :  { %2637 = vmatprep.subr.bf16.mxu0 %v5271_v32  ;;  %v2744_v32 = vld [vmem:[%s5520_s6 + $0xa0] sm:$0xff]  ;;  %3053 = vmatpush3.msra.mxu1 %v2729_v40  ;;  %v6142_v40 = vrot.slane %v4218_v17, 1 }
 0x8a5   :  { %3054 = vmatprep.subr.mxu1 %v2744_v32 }
 0x8a7   :  { %2638 = vmatpush2.bf16.msra.mxu0 %v5276_v34  ;;  %v2728_v34 = vld [vmem:[%s5520_s6 + $0x20] sm:$0xff] }
 0x8a8   :  { %2639 = vmatprep.subr.bf16.mxu0 %v5279_v15  ;;  %v2743_v15 = vld [vmem:[%s5520_s6 + $0x98] sm:$0xff]  ;;  %3055 = vmatpush3.msra.mxu1 %v2728_v34 }
 0x8a9   :  { %3056 = vmatprep.subr.mxu1 %v2743_v15 }
 0x8ab   :  { %2640 = vmatpush2.bf16.msra.mxu0 %v5284_v45  ;;  %v2727_v45 = vld [vmem:[%s5520_s6 + $0x18] sm:$0xff] }
 0x8ac   :  { %2641 = vmatprep.subr.bf16.mxu0 %v5287_v39  ;;  %v2742_v39 = vld [vmem:[%s5520_s6 + $0x90] sm:$0xff]  ;;  %3057 = vmatpush3.msra.mxu1 %v2727_v45 }
 0x8ad   :  { %3058 = vmatprep.subr.mxu1 %v2742_v39  ;;  %v2715_v39 = vrot.slane %v5358_v23, 7 }
 0x8af   :  { %2642 = vmatpush2.bf16.msra.mxu0 %v5292_v63  ;;  %v2726_v63 = vld [vmem:[%s5520_s6 + $0x10] sm:$0xff] }
 0x8b0   :  { %2643 = vmatprep.subr.bf16.mxu0 %v5295_v6  ;;  %v2741_v6 = vld [vmem:[%s5520_s6 + $0x88] sm:$0xff]  ;;  %3059 = vmatpush3.msra.mxu1 %v2726_v63 }
 0x8b1   :  { %3060 = vmatprep.subr.mxu1 %v2741_v6 }
 0x8b3   :  { %2644 = vmatpush2.bf16.msra.mxu0 %v5300_v44  ;;  %v2725_v44 = vld [vmem:[%s5520_s6 + $0x8] sm:$0xff] }
 0x8b4   :  { %2645 = vmatprep.subr.bf16.mxu0 %v5303_v33  ;;  %v2740_v33 = vld [vmem:[%s5520_s6 + $0x80] sm:$0xff]  ;;  %3061 = vmatpush3.msra.mxu1 %v2725_v44 }
 0x8b5   :  { %3062 = vmatprep.subr.mxu1 %v2740_v33 }
 0x8b7   :  { %2646 = vmatpush2.bf16.msra.mxu0 %v5308_v29  ;;  %v2724_v29 = vld [vmem:[%s5520_s6] sm:$0xff] }
 0x8b8   :  { %3063 = vmatpush3.msra.mxu1 %v2724_v29 }
 0x8ba   :  { %2648 = vmatmul.mubr.bf16.vlgmr.msra.gmra.mxu0 %v2529_v52 }
 0x93a   :  { %v2567_v54 = vpop.f32.mrf.mxu0  ;;  %v2608_v43 = vpop.f32.mrf.mxu1 }
 0x93b   :  { %v2568_v20 = vadd.f32 %v2567_v54, %v4185_v49  ;;  %v2609_v55 = vadd.f32 %v2608_v43, %v4199_v27 }
 0x93c   :  { %v2569_v9 = vpop.f32.mrf.mxu0  ;;  %v2610_v4 = vpop.f32.mrf.mxu1 }
 0x93d   :  { %v2570_v1 = vadd.f32 %v2569_v9, %v4187_v25  ;;  %v2658_v59 = vrot.slane %v2568_v20, 1  ;;  %v2611_v19 = vadd.f32 %v2610_v4, %v4201_v41  ;;  %v2678_v10 = vrot.slane %v2609_v55, 1 }
 0x93e   :  { %v2571_v22 = vpop.f32.mrf.mxu0  ;;  %v2612_v62 = vpop.f32.mrf.mxu1  ;;  %v6141_v25 = vrot.slane %v6074_v58, 1 }
 0x93f   :  { %v2659_v31 = vrot.slane %v2570_v1, 1  ;;  %v2662_v11 = vadd.f32 %v2658_v59, %v6108_v14  ;;  %v2679_v16 = vrot.slane %v2611_v19, 1  ;;  %v2682_v49 = vadd.f32 %v2678_v10, %v5914_v21 }
 0x940   :  { %v2572_v38 = vpop.f32.mrf.mxu0  ;;  %v2613_v60 = vpop.f32.mrf.mxu1 }
 0x941   :  { %v2663_v46 = vadd.f32 %v2659_v31, %v6140_v47  ;;  %v3028_v51 = vmul.f32 -1.442695, %v2662_v11  ;;  %v2683_v56 = vadd.f32 %v2679_v16, %v6141_v25  ;;  %v3030_v50 = vmul.f32 -1.442695, %v2682_v49 }
 0x943   :  { %v3029_v52 = vmul.f32 -1.442695, %v2663_v46  ;;  %3429 = vpow2.f32 %v3028_v51  ;;  %v3031_v14 = vmul.f32 -1.442695, %v2683_v56 }
 0x945   :  { %3431 = vpow2.f32 %v3029_v52 }
 0x946   :  { %3433 = vpow2.f32 %v3030_v50 }
 0x947   :  { %3435 = vpow2.f32 %v3031_v14 }
 0x950   :  { %v3430_v12 = vpop.eup %3429 }
 0x951   :  { %v2670_v5 = vadd.f32 1.0, %v3430_v12 }
 0x952   :  { %v3432_v48 = vpop.eup %3431 }
 0x953   :  { %v2671_v27 = vadd.f32 1.0, %v3432_v48  ;;  %3437 = vrcp.f32 %v2670_v5  ;;  %v3434_v7 = vpop.eup %3433 }
 0x954   :  { %v3436_v41 = vpop.eup %3435  ;;  %v2690_v2 = vadd.f32 1.0, %v3434_v7 }
 0x955   :  { %3439 = vrcp.f32 %v2671_v27  ;;  %v2691_v30 = vadd.f32 1.0, %v3436_v41 }
 0x956   :  { %3441 = vrcp.f32 %v2690_v2 }
 0x957   :  { %3443 = vrcp.f32 %v2691_v30 }
 0x960   :  { %v3438_v0 = vpop.eup %3437 }
 0x962   :  { %v3440_v28 = vpop.eup %3439 }
 0x963   :  { %v3442_v32 = vpop.eup %3441 }
 0x964   :  { %v3444_v34 = vpop.eup %3443  ;;  %v2708_v15 = vsub.f32 1.0, %v3442_v32 }
 0x965   :  { %v2709_v63 = vsub.f32 1.0, %v3444_v34 }
 0x97a   :  { %v2649_v8 = vpop.f32.mrf.mxu0 }
 0x97b   :  { %v2650_v37 = vadd.f32 %v2649_v8, %v4213_v57 }
 0x97c   :  { %v2651_v21 = vpop.f32.mrf.mxu0 }
 0x97d   :  { %v2698_v58 = vrot.slane %v2650_v37, 1  ;;  %v2652_v3 = vadd.f32 %v2651_v21, %v4215_v53  ;;  %v2714_v53 = vrot.slane %v5356_v35, 7  ;;  %v2756_v35 = vld [vmem:[%s5521_s7] sm:$0x1] }
 0x97e   :  { %v2653_v61 = vpop.f32.mrf.mxu0 }
 0x97f   :  { %v2702_v26 = vmul.f32 %v3438_v0, %v2698_v58  ;;  %v2699_v36 = vrot.slane %v2652_v3, 1  ;;  %v2718_v44 = vmul.f32 %v3442_v32, %v2714_v53 }
 0x980   :  { %v2654_v24 = vpop.f32.mrf.mxu0 }
 0x981   :  { %v2704_v18 = vadd.f32 %v2702_v26, %v4222_v42  ;;  %v2703_v13 = vmul.f32 %v3440_v28, %v2699_v36  ;;  %v2719_v42 = vmul.f32 %v3444_v34, %v2715_v39 }
 0x983   :  { %3445 = vtanh.f32 %v2704_v18  ;;  %v2705_v57 = vadd.f32 %v2703_v13, %v6142_v40 }
 0x985   :  { %3447 = vtanh.f32 %v2705_v57 }
 0x990   :  { %v3446_v45 = vpop.eup %3445 }
 0x991   :  { %v2710_v6 = vmul.f32 %v3446_v45, %v2708_v15 }
 0x992   :  { %v3448_v33 = vpop.eup %3447 }
 0x993   :  { %v2711_v29 = vmul.f32 %v3448_v33, %v2709_v63  ;;  %v2720_v54 = vadd.f32 %v2718_v44, %v2710_v6 }
 0x995   :  { %v2721_v43 = vadd.f32 %v2719_v42, %v2711_v29  ;;  %v2722_v9 = vmax.f32 %v2720_v54, 0.0 }
 0x997   :  { %v2723_v17 = vmax.f32 %v2721_v43, 0.0  ;;  %v2759_v22 = vrot.slane %v2722_v9, 7 }
 0x999   :  { %v2760_v4 = vrot.slane %v2723_v17, 7 }
 0x99b   :  { %2827 = vmatprep.mubr.f32.mxu1 %v2760_v4 }
 0x99c   :  { %2828 = vmatmul.mubr.f32.vlgmr.msra.gmra.mxu1 %v2759_v22 }
 0xa5c   :  { %v3064_v62 = vpop.f32.mrf.mxu1 }
 0xa5e   :  { %v3065_v23 = vpop.f32.mrf.mxu1 }
 0xa5f   :  { %v3066_v38 = vadd.f32 %v3065_v23, %v3064_v62 }
 0xa61   :  { %v2830_v60 = vadd.f32 %v3066_v38, %v2756_v35 }
 0xa63   :  { %2834 = vst.msk [vmem:[%s5522_s8] sm:$0x1] %vm2833_vm0, %v2830_v60 }
 0xa64   :  { %2839 = vsyncpa [#allocation6], 1 }
 0xa65   :  { %2840 = vsyncpa [#allocation8], 1 }

</bundles_post_ra>
